<compile_context>
chip_gen: v5e
topology: v5e:2x2
jax: 0.10.0
libtpu: 0.0.40
codegen_flags: <defaults>
</compile_context>

<pallas_src>
import functools

import jax
import jax.numpy as jnp
from jax import lax
from jax.experimental import pallas as pl
from jax.experimental.pallas import tpu as pltpu


# ----------------------------------------------------------------------------
# Static tap tables shared by the wrapper (weight packing) and the kernel
# (read offsets).
#
# Layer-2 (conv s2) taps: conv tap (di, dj) reads a1 phase (p, q) at flattened
# row offset `delta` relative to the output row.  a1 phase (p, q)[u, v]
# = a1[2u+p, 2v+q]; phase buffers hold the 4x4 data block at [1:5, 1:5] of a
# zero-padded 5x5 grid, so delta = (1+du)*5 + (1+dv) with du, dv in {-1, 0}.
L2_TAPS = [
    # (p, q, delta, di, dj)
    (1, 1, 0, 0, 0),
    (1, 0, 1, 0, 1),
    (1, 1, 1, 0, 2),
    (0, 1, 5, 1, 0),
    (0, 0, 6, 1, 1),
    (0, 1, 6, 1, 2),
    (1, 1, 5, 2, 0),
    (1, 0, 6, 2, 1),
    (1, 1, 6, 2, 2),
]

# Sub-pixel decomposition of ConvTranspose2d(k=3, s=2, p=1, op=1): output
# phase (P, Q) is a stride-1 conv over the *un-dilated* input with taps at
# input offsets (dy, dx), using the "equivalent conv" weight tap (di, dj)
# (weights spatially flipped and in/out channel axes swapped).
SUBPIX_TAPS = {
    (0, 0): [(0, 0, 1, 1)],
    (0, 1): [(0, 0, 1, 0), (0, 1, 1, 2)],
    (1, 0): [(0, 0, 0, 1), (1, 0, 2, 1)],
    (1, 1): [(0, 0, 0, 0), (0, 1, 0, 2), (1, 0, 2, 0), (1, 1, 2, 2)],
}


# ------------------------------ Pallas kernel --------------------------------

def _autoencoder_kernel(patches_ref, w1_ref, w2_ref, b2_ref, w3_ref, b3_ref,
                        w4_ref, b4_ref, mask_ref, out_ref,
                        a1_ref, a2_ref, a3_ref, *, nrows):
    f32 = jnp.float32
    mask = mask_ref[...]                     # (nrows, 1): 1 on data positions

    # Clear scratch once (the shifted reads below may touch the tail rows).
    a1_ref[...] = jnp.zeros_like(a1_ref)
    a2_ref[...] = jnp.zeros_like(a2_ref)
    a3_ref[...] = jnp.zeros_like(a3_ref)

    # ---- Layer 1: Conv2d(4->16, s2, p1) + ReLU ------------------------------
    # Single matmul over parity-ordered, zero-padded patch rows.  The last
    # patch column is a 0/1 indicator; the bias is folded into w1 as an extra
    # row, so pad rows stay exactly 0 after the ReLU.
    out1 = jnp.maximum(
        jnp.dot(patches_ref[...], w1_ref[...], preferred_element_type=f32),
        0.0)                                  # (4 * nrows, 16)
    for k in range(4):                        # k = 2*p + q  (a1 output phase)
        a1_ref[k, 0:nrows, :] = out1[k * nrows:(k + 1) * nrows, :]

    # ---- Layer 2: Conv2d(16->32, s2, p1) + ReLU -----------------------------
    acc2 = jnp.zeros((nrows, 32), f32)
    for (p, q, delta, di, dj) in L2_TAPS:
        acc2 = acc2 + jnp.dot(a1_ref[2 * p + q, delta:delta + nrows, :],
                              w2_ref[3 * di + dj],
                              preferred_element_type=f32)
    a2 = jnp.maximum(acc2 + b2_ref[...], 0.0)
    a2_ref[0:nrows, :] = a2 * mask            # zero the junk row/col positions

    # ---- Layer 3: ConvTranspose2d(32->16, s2, p1, op1) + ReLU ---------------
    for (P, Q), taps in SUBPIX_TAPS.items():
        acc3 = jnp.zeros((nrows, 16), f32)
        for (dy, dx, di, dj) in taps:
            delta = dy * 5 + dx
            acc3 = acc3 + jnp.dot(a2_ref[delta:delta + nrows, :],
                                  w3_ref[3 * di + dj],
                                  preferred_element_type=f32)
        a3 = jnp.maximum(acc3 + b3_ref[...], 0.0)
        a3_ref[2 * P + Q, 0:nrows, :] = a3 * mask

    # ---- Layer 4: ConvTranspose2d(16->3, s2, p1, op1) + Sigmoid -------------
    # The 4 sub-pixel output phases (P, Q) are packed into disjoint 32-lane
    # blocks of one 128-lane tile (lane block 32*(2P+Q) holds that phase's 3
    # channels); the per-(dy, dx) weight w4_ref[2*dy+dx] already has its
    # columns scattered into the right blocks (zero where a phase does not use
    # that tap).  Work is split by the parity (p2, q2) of the a3 position so
    # every read is a contiguous slice of one a3 phase buffer: 16 matmuls
    # total, every output store fully lane-dense.
    # Output row block 2*p2+q2, lane block 2*P+Q holds final pixels
    # (y, x) = (4u + 2*p2 + P, 4v + 2*q2 + Q).
    for p2 in range(2):
        for q2 in range(2):
            acc4 = jnp.zeros((nrows, 128), f32)
            for dy in range(2):
                for dx in range(2):
                    ph = 2 * ((p2 + dy) % 2) + ((q2 + dx) % 2)
                    delta = ((p2 + dy) // 2) * 5 + ((q2 + dx) // 2)
                    acc4 = acc4 + jnp.dot(a3_ref[ph, delta:delta + nrows, :],
                                          w4_ref[2 * dy + dx],
                                          preferred_element_type=f32)
            out_ref[2 * p2 + q2, :, :] = jax.nn.sigmoid(acc4 + b4_ref[...])


# ------------------------------- wrapper --------------------------------------

def autoencoder_forward(x_nchw, p):
    N, C, H, W = x_nchw.shape
    assert (C, H, W) == (4, 16, 16), x_nchw.shape
    nrows = N * 25            # flattened (N, 5, 5) activation rows
    brows = nrows + 8         # tail pad so shifted reads (delta <= 6) stay in range

    x = jnp.transpose(x_nchw, (0, 2, 3, 1)).astype(jnp.float32)      # NHWC

    # Layer-1 patches: im2col at stride 2, rows grouped by the parity (p, q)
    # of the output position and laid out as zero-padded 5x5 blocks (data at
    # [1:5, 1:5]), so layer 1's output can be stored straight into the
    # phase-decomposed layout layer 2 reads.  Last column = 0/1 indicator.
    xp = jnp.pad(x, ((0, 0), (1, 1), (1, 1), (0, 0)))                # (N,18,18,4)
    cols = [xp[:, di:di + 16:2, dj:dj + 16:2, :]
            for di in range(3) for dj in range(3)]
    pf = jnp.concatenate(cols, axis=-1)                              # (N,8,8,36)
    blocks = []
    for pp in (0, 1):
        for qq in (0, 1):
            blk = pf[:, pp::2, qq::2, :]                             # (N,4,4,36)
            blk = jnp.pad(blk, ((0, 0), (1, 0), (1, 0), (0, 0)))     # (N,5,5,36)
            ind = jnp.pad(jnp.ones((N, 4, 4, 1), jnp.float32),
                          ((0, 0), (1, 0), (1, 0), (0, 0)))          # (N,5,5,1)
            blocks.append(jnp.concatenate([blk, ind], -1).reshape(nrows, 37))
    patches = jnp.concatenate(blocks, axis=0)                        # (4*nrows,37)

    # Pack weights for the kernel (layers 2-3: 9 taps each, indexed 3*di+dj).
    w1f = jnp.transpose(p["w1"], (2, 3, 1, 0)).reshape(36, 16)
    w1a = jnp.concatenate([w1f, p["b1"].reshape(1, 16)], axis=0)     # bias folded
    w2t = jnp.transpose(p["w2"], (2, 3, 1, 0)).reshape(9, 16, 32)
    b2 = p["b2"].reshape(1, 32)
    w3t = jnp.transpose(jnp.flip(p["w3"], (2, 3)), (2, 3, 0, 1)).reshape(9, 32, 16)
    b3 = p["b3"].reshape(1, 16)

    # Layer-4 weights: equivalent-conv form (3,3,16,3), then scatter each output
    # phase (P,Q) into lane block 32*(2P+Q) of a per-(dy,dx) (16,128) matrix.
    w4e = jnp.transpose(jnp.flip(p["w4"], (2, 3)), (2, 3, 0, 1))     # (3,3,16,3)
    w4pack = jnp.zeros((2, 2, 16, 128), jnp.float32)
    for (P, Q), taps in SUBPIX_TAPS.items():
        c0 = 32 * (2 * P + Q)
        for (dy, dx, di, dj) in taps:
            w4pack = w4pack.at[dy, dx, :, c0:c0 + 3].set(w4e[di, dj])
    w4pack = w4pack.reshape(4, 16, 128)
    b4pack = jnp.zeros((1, 128), jnp.float32)
    for k in range(4):
        b4pack = b4pack.at[0, 32 * k:32 * k + 3].set(p["b4"])

    # Data-position mask for the flattened (N,5,5) layout.
    i = jnp.arange(nrows, dtype=jnp.int32) % 25
    mask = (((i // 5) < 4) & ((i % 5) < 4)).astype(jnp.float32).reshape(nrows, 1)

    vmem = pl.BlockSpec(memory_space=pltpu.MemorySpace.VMEM)
    flops = 2 * (4 * nrows * 37 * 16 + 9 * nrows * 16 * 32
                 + 9 * nrows * 32 * 16 + 16 * nrows * 16 * 128)
    bytes_accessed = 4 * (patches.size + w1a.size + w2t.size + b2.size
                          + w3t.size + b3.size + w4pack.size + b4pack.size
                          + mask.size + 4 * nrows * 128)

    raw = pl.pallas_call(
        functools.partial(_autoencoder_kernel, nrows=nrows),
        out_shape=jax.ShapeDtypeStruct((4, nrows, 128), jnp.float32),
        in_specs=[vmem] * 9,
        out_specs=vmem,
        scratch_shapes=[
            pltpu.VMEM((4, brows, 16), jnp.float32),   # a1 phase buffers
            pltpu.VMEM((brows, 32), jnp.float32),      # a2
            pltpu.VMEM((4, brows, 16), jnp.float32),   # a3 phase buffers
        ],
        compiler_params=pltpu.CompilerParams(vmem_limit_bytes=32 * 1024 * 1024),
        cost_estimate=pl.CostEstimate(flops=flops,
                                      transcendentals=4 * nrows * 128,
                                      bytes_accessed=bytes_accessed),
    )(patches, w1a, w2t, b2, w3t, b3, w4pack, b4pack, mask)

    # Un-block the lane-dense packed output:
    # raw[2*p2+q2, n*25 + u*5 + v, 32*(2P+Q) + c] -> y[n, c, 4u+2p2+P, 4v+2q2+Q]
    blk = raw.reshape(2, 2, N, 5, 5, 4, 32)[:, :, :, :4, :4, :, :3]
    blk = blk.reshape(2, 2, N, 4, 4, 2, 2, 3)       # (p2,q2,n,u,v,P,Q,c)
    y = jnp.transpose(blk, (2, 7, 3, 0, 5, 4, 1, 6)).reshape(N, 3, 16, 16)
    return y


# ----------------------------- params / reference -----------------------------

def init_params(key):
    ks = jax.random.split(key, 8)
    s = 0.1
    return {
        "w1": s * jax.random.normal(ks[0], (16, 4, 3, 3), jnp.float32),
        "b1": s * jax.random.normal(ks[1], (16,), jnp.float32),
        "w2": s * jax.random.normal(ks[2], (32, 16, 3, 3), jnp.float32),
        "b2": s * jax.random.normal(ks[3], (32,), jnp.float32),
        "w3": s * jax.random.normal(ks[4], (32, 16, 3, 3), jnp.float32),
        "b3": s * jax.random.normal(ks[5], (16,), jnp.float32),
        "w4": s * jax.random.normal(ks[6], (16, 3, 3, 3), jnp.float32),
        "b4": s * jax.random.normal(ks[7], (3,), jnp.float32),
    }


def _ref_forward(x_nchw, p):
    x = jnp.transpose(x_nchw, (0, 2, 3, 1))
    dn = ("NHWC", "HWIO", "NHWC")

    def conv(x, w_oihw, b, stride, pad):
        w = jnp.transpose(w_oihw, (2, 3, 1, 0))
        y = lax.conv_general_dilated(x, w, (stride, stride),
                                     [(pad, pad), (pad, pad)],
                                     dimension_numbers=dn)
        return y + b

    def convT(x, w_iohw, b, stride, pad, op):
        k = w_iohw.shape[2]
        w_conv = jnp.flip(jnp.transpose(w_iohw, (1, 0, 2, 3)), axis=(2, 3))
        w = jnp.transpose(w_conv, (2, 3, 1, 0))
        plo, phi = k - 1 - pad, k - 1 - pad + op
        y = lax.conv_general_dilated(x, w, (1, 1), [(plo, phi), (plo, phi)],
                                     lhs_dilation=(stride, stride),
                                     dimension_numbers=dn)
        return y + b

    x = jax.nn.relu(conv(x, p["w1"], p["b1"], 2, 1))
    x = jax.nn.relu(conv(x, p["w2"], p["b2"], 2, 1))
    x = jax.nn.relu(convT(x, p["w3"], p["b3"], 2, 1, 1))
    x = jax.nn.sigmoid(convT(x, p["w4"], p["b4"], 2, 1, 1))
    return jnp.transpose(x, (0, 3, 1, 2))


# ---------------------------------- main --------------------------------------

if __name__ == "__main__":
    key = jax.random.PRNGKey(0)
    pkey, xkey = jax.random.split(key)
    params = init_params(pkey)
    x = jax.random.normal(xkey, (2, 4, 16, 16), jnp.float32)   # NCHW, like PyTorch

    fwd = jax.jit(autoencoder_forward)
    out = jax.block_until_ready(fwd(x, params))
    assert out.shape == (2, 3, 16, 16), out.shape

    ref = jax.block_until_ready(jax.jit(_ref_forward)(x, params))
    assert jnp.allclose(out, ref, atol=1e-5, rtol=1e-5), (
        float(jnp.max(jnp.abs(out - ref))))

    print("KERNEL_OK")
</pallas_src>

<mosaic_0001>
module attributes {stable_mosaic.version = 11 : i64} {
  func.func @_autoencoder_kernel(%arg0: memref<200x37xf32, #tpu.memory_space<vmem>>, %arg1: memref<37x16xf32, #tpu.memory_space<vmem>>, %arg2: memref<9x16x32xf32, #tpu.memory_space<vmem>>, %arg3: memref<1x32xf32, #tpu.memory_space<vmem>>, %arg4: memref<9x32x16xf32, #tpu.memory_space<vmem>>, %arg5: memref<1x16xf32, #tpu.memory_space<vmem>>, %arg6: memref<4x16x128xf32, #tpu.memory_space<vmem>>, %arg7: memref<1x128xf32, #tpu.memory_space<vmem>>, %arg8: memref<50x1xf32, #tpu.memory_space<vmem>>, %arg9: memref<4x50x128xf32, #tpu.memory_space<vmem>>, %arg10: memref<4x58x16xf32, #tpu.memory_space<vmem>>, %arg11: memref<58x32xf32, #tpu.memory_space<vmem>>, %arg12: memref<4x58x16xf32, #tpu.memory_space<vmem>>) attributes {dimension_semantics = [], scalar_prefetch = 0 : i64, scratch_operands = 3 : i64, tpu.core_type = #tpu.core_type<tc>} {
    %c0 = arith.constant 0 : index
    %c0_0 = arith.constant 0 : index
    %0 = vector.load %arg8[%c0, %c0_0] : memref<50x1xf32, #tpu.memory_space<vmem>>, vector<50x1xf32>
    %cst = arith.constant 0.000000e+00 : f32
    %1 = vector.broadcast %cst : f32 to vector<4x58x16xf32>
    %c0_1 = arith.constant 0 : index
    %c0_2 = arith.constant 0 : index
    %c0_3 = arith.constant 0 : index
    %2 = vector.load %arg10[%c0_1, %c0_2, %c0_3] : memref<4x58x16xf32, #tpu.memory_space<vmem>>, vector<4x58x16xf32>
    tpu.vector_store %arg10[%c0_1, %c0_2, %c0_3], %1 {strides = array<i32>} : memref<4x58x16xf32, #tpu.memory_space<vmem>>, vector<4x58x16xf32>,
    %cst_4 = arith.constant 0.000000e+00 : f32
    %3 = vector.broadcast %cst_4 : f32 to vector<58x32xf32>
    %c0_5 = arith.constant 0 : index
    %c0_6 = arith.constant 0 : index
    %4 = vector.load %arg11[%c0_5, %c0_6] : memref<58x32xf32, #tpu.memory_space<vmem>>, vector<58x32xf32>
    tpu.vector_store %arg11[%c0_5, %c0_6], %3 {strides = array<i32>} : memref<58x32xf32, #tpu.memory_space<vmem>>, vector<58x32xf32>,
    %cst_7 = arith.constant 0.000000e+00 : f32
    %5 = vector.broadcast %cst_7 : f32 to vector<4x58x16xf32>
    %c0_8 = arith.constant 0 : index
    %c0_9 = arith.constant 0 : index
    %c0_10 = arith.constant 0 : index
    %6 = vector.load %arg12[%c0_8, %c0_9, %c0_10] : memref<4x58x16xf32, #tpu.memory_space<vmem>>, vector<4x58x16xf32>
    tpu.vector_store %arg12[%c0_8, %c0_9, %c0_10], %5 {strides = array<i32>} : memref<4x58x16xf32, #tpu.memory_space<vmem>>, vector<4x58x16xf32>,
    %c0_11 = arith.constant 0 : index
    %c0_12 = arith.constant 0 : index
    %7 = vector.load %arg0[%c0_11, %c0_12] : memref<200x37xf32, #tpu.memory_space<vmem>>, vector<200x37xf32>
    %c0_13 = arith.constant 0 : index
    %c0_14 = arith.constant 0 : index
    %8 = vector.load %arg1[%c0_13, %c0_14] : memref<37x16xf32, #tpu.memory_space<vmem>>, vector<37x16xf32>
    %cst_15 = arith.constant dense<0.000000e+00> : vector<200x16xf32>
    %9 = tpu.matmul %7, %8, %cst_15 {dimension_numbers = #tpu.dot_dimension_numbers<[1], [0], [0], [1], [0, 0, 1, 1], [], []>} : vector<200x37xf32>, vector<37x16xf32>, vector<200x16xf32> -> vector<200x16xf32>
    %cst_16 = arith.constant 0.000000e+00 : f32
    %10 = vector.broadcast %cst_16 : f32 to vector<200x16xf32>
    %11 = arith.maximumf %9, %10 : vector<200x16xf32>
    %12 = vector.extract_strided_slice %11 {offsets = [0, 0], sizes = [50, 16], strides = [1, 1]} : vector<200x16xf32> to vector<50x16xf32>
    %c0_17 = arith.constant 0 : index
    %c0_18 = arith.constant 0 : index
    %c0_19 = arith.constant 0 : index
    %13 = vector.load %arg10[%c0_17, %c0_18, %c0_19] : memref<4x58x16xf32, #tpu.memory_space<vmem>>, vector<1x50x16xf32>
    %14 = vector.shape_cast %13 : vector<1x50x16xf32> to vector<50x16xf32>
    %15 = vector.shape_cast %12 : vector<50x16xf32> to vector<1x50x16xf32>
    tpu.vector_store %arg10[%c0_17, %c0_18, %c0_19], %15 {strides = array<i32>} : memref<4x58x16xf32, #tpu.memory_space<vmem>>, vector<1x50x16xf32>,
    %16 = vector.extract_strided_slice %11 {offsets = [50, 0], sizes = [50, 16], strides = [1, 1]} : vector<200x16xf32> to vector<50x16xf32>
    %c1 = arith.constant 1 : index
    %c0_20 = arith.constant 0 : index
    %c0_21 = arith.constant 0 : index
    %17 = vector.load %arg10[%c1, %c0_20, %c0_21] : memref<4x58x16xf32, #tpu.memory_space<vmem>>, vector<1x50x16xf32>
    %18 = vector.shape_cast %17 : vector<1x50x16xf32> to vector<50x16xf32>
    %19 = vector.shape_cast %16 : vector<50x16xf32> to vector<1x50x16xf32>
    tpu.vector_store %arg10[%c1, %c0_20, %c0_21], %19 {strides = array<i32>} : memref<4x58x16xf32, #tpu.memory_space<vmem>>, vector<1x50x16xf32>,
    %20 = vector.extract_strided_slice %11 {offsets = [100, 0], sizes = [50, 16], strides = [1, 1]} : vector<200x16xf32> to vector<50x16xf32>
    %c2 = arith.constant 2 : index
    %c0_22 = arith.constant 0 : index
    %c0_23 = arith.constant 0 : index
    %21 = vector.load %arg10[%c2, %c0_22, %c0_23] : memref<4x58x16xf32, #tpu.memory_space<vmem>>, vector<1x50x16xf32>
    %22 = vector.shape_cast %21 : vector<1x50x16xf32> to vector<50x16xf32>
    %23 = vector.shape_cast %20 : vector<50x16xf32> to vector<1x50x16xf32>
    tpu.vector_store %arg10[%c2, %c0_22, %c0_23], %23 {strides = array<i32>} : memref<4x58x16xf32, #tpu.memory_space<vmem>>, vector<1x50x16xf32>,
    %24 = vector.extract_strided_slice %11 {offsets = [150, 0], sizes = [50, 16], strides = [1, 1]} : vector<200x16xf32> to vector<50x16xf32>
    %c3 = arith.constant 3 : index
    %c0_24 = arith.constant 0 : index
    %c0_25 = arith.constant 0 : index
    %25 = vector.load %arg10[%c3, %c0_24, %c0_25] : memref<4x58x16xf32, #tpu.memory_space<vmem>>, vector<1x50x16xf32>
    %26 = vector.shape_cast %25 : vector<1x50x16xf32> to vector<50x16xf32>
    %27 = vector.shape_cast %24 : vector<50x16xf32> to vector<1x50x16xf32>
    tpu.vector_store %arg10[%c3, %c0_24, %c0_25], %27 {strides = array<i32>} : memref<4x58x16xf32, #tpu.memory_space<vmem>>, vector<1x50x16xf32>,
    %cst_26 = arith.constant 0.000000e+00 : f32
    %28 = vector.broadcast %cst_26 : f32 to vector<50x32xf32>
    %c3_27 = arith.constant 3 : index
    %c0_28 = arith.constant 0 : index
    %c0_29 = arith.constant 0 : index
    %29 = vector.load %arg10[%c3_27, %c0_28, %c0_29] : memref<4x58x16xf32, #tpu.memory_space<vmem>>, vector<1x50x16xf32>
    %30 = vector.shape_cast %29 : vector<1x50x16xf32> to vector<50x16xf32>
    %c0_30 = arith.constant 0 : index
    %c0_31 = arith.constant 0 : index
    %c0_32 = arith.constant 0 : index
    %31 = vector.load %arg2[%c0_30, %c0_31, %c0_32] : memref<9x16x32xf32, #tpu.memory_space<vmem>>, vector<1x16x32xf32>
    %32 = vector.shape_cast %31 : vector<1x16x32xf32> to vector<16x32xf32>
    %cst_33 = arith.constant dense<0.000000e+00> : vector<50x32xf32>
    %33 = tpu.matmul %30, %32, %cst_33 {dimension_numbers = #tpu.dot_dimension_numbers<[1], [0], [0], [1], [0, 0, 1, 1], [], []>} : vector<50x16xf32>, vector<16x32xf32>, vector<50x32xf32> -> vector<50x32xf32>
    %34 = arith.addf %28, %33 : vector<50x32xf32>
    %c2_34 = arith.constant 2 : index
    %c1_35 = arith.constant 1 : index
    %c0_36 = arith.constant 0 : index
    %35 = vector.load %arg10[%c2_34, %c1_35, %c0_36] : memref<4x58x16xf32, #tpu.memory_space<vmem>>, vector<1x50x16xf32>
    %36 = vector.shape_cast %35 : vector<1x50x16xf32> to vector<50x16xf32>
    %c1_37 = arith.constant 1 : index
    %c0_38 = arith.constant 0 : index
    %c0_39 = arith.constant 0 : index
    %37 = vector.load %arg2[%c1_37, %c0_38, %c0_39] : memref<9x16x32xf32, #tpu.memory_space<vmem>>, vector<1x16x32xf32>
    %38 = vector.shape_cast %37 : vector<1x16x32xf32> to vector<16x32xf32>
    %cst_40 = arith.constant dense<0.000000e+00> : vector<50x32xf32>
    %39 = tpu.matmul %36, %38, %cst_40 {dimension_numbers = #tpu.dot_dimension_numbers<[1], [0], [0], [1], [0, 0, 1, 1], [], []>} : vector<50x16xf32>, vector<16x32xf32>, vector<50x32xf32> -> vector<50x32xf32>
    %40 = arith.addf %34, %39 : vector<50x32xf32>
    %c3_41 = arith.constant 3 : index
    %c1_42 = arith.constant 1 : index
    %c0_43 = arith.constant 0 : index
    %41 = vector.load %arg10[%c3_41, %c1_42, %c0_43] : memref<4x58x16xf32, #tpu.memory_space<vmem>>, vector<1x50x16xf32>
    %42 = vector.shape_cast %41 : vector<1x50x16xf32> to vector<50x16xf32>
    %c2_44 = arith.constant 2 : index
    %c0_45 = arith.constant 0 : index
    %c0_46 = arith.constant 0 : index
    %43 = vector.load %arg2[%c2_44, %c0_45, %c0_46] : memref<9x16x32xf32, #tpu.memory_space<vmem>>, vector<1x16x32xf32>
    %44 = vector.shape_cast %43 : vector<1x16x32xf32> to vector<16x32xf32>
    %cst_47 = arith.constant dense<0.000000e+00> : vector<50x32xf32>
    %45 = tpu.matmul %42, %44, %cst_47 {dimension_numbers = #tpu.dot_dimension_numbers<[1], [0], [0], [1], [0, 0, 1, 1], [], []>} : vector<50x16xf32>, vector<16x32xf32>, vector<50x32xf32> -> vector<50x32xf32>
    %46 = arith.addf %40, %45 : vector<50x32xf32>
    %c1_48 = arith.constant 1 : index
    %c5 = arith.constant 5 : index
    %c0_49 = arith.constant 0 : index
    %47 = vector.load %arg10[%c1_48, %c5, %c0_49] : memref<4x58x16xf32, #tpu.memory_space<vmem>>, vector<1x50x16xf32>
    %48 = vector.shape_cast %47 : vector<1x50x16xf32> to vector<50x16xf32>
    %c3_50 = arith.constant 3 : index
    %c0_51 = arith.constant 0 : index
    %c0_52 = arith.constant 0 : index
    %49 = vector.load %arg2[%c3_50, %c0_51, %c0_52] : memref<9x16x32xf32, #tpu.memory_space<vmem>>, vector<1x16x32xf32>
    %50 = vector.shape_cast %49 : vector<1x16x32xf32> to vector<16x32xf32>
    %cst_53 = arith.constant dense<0.000000e+00> : vector<50x32xf32>
    %51 = tpu.matmul %48, %50, %cst_53 {dimension_numbers = #tpu.dot_dimension_numbers<[1], [0], [0], [1], [0, 0, 1, 1], [], []>} : vector<50x16xf32>, vector<16x32xf32>, vector<50x32xf32> -> vector<50x32xf32>
    %52 = arith.addf %46, %51 : vector<50x32xf32>
    %c0_54 = arith.constant 0 : index
    %c6 = arith.constant 6 : index
    %c0_55 = arith.constant 0 : index
    %53 = vector.load %arg10[%c0_54, %c6, %c0_55] : memref<4x58x16xf32, #tpu.memory_space<vmem>>, vector<1x50x16xf32>
    %54 = vector.shape_cast %53 : vector<1x50x16xf32> to vector<50x16xf32>
    %c4 = arith.constant 4 : index
    %c0_56 = arith.constant 0 : index
    %c0_57 = arith.constant 0 : index
    %55 = vector.load %arg2[%c4, %c0_56, %c0_57] : memref<9x16x32xf32, #tpu.memory_space<vmem>>, vector<1x16x32xf32>
    %56 = vector.shape_cast %55 : vector<1x16x32xf32> to vector<16x32xf32>
    %cst_58 = arith.constant dense<0.000000e+00> : vector<50x32xf32>
    %57 = tpu.matmul %54, %56, %cst_58 {dimension_numbers = #tpu.dot_dimension_numbers<[1], [0], [0], [1], [0, 0, 1, 1], [], []>} : vector<50x16xf32>, vector<16x32xf32>, vector<50x32xf32> -> vector<50x32xf32>
    %58 = arith.addf %52, %57 : vector<50x32xf32>
    %c1_59 = arith.constant 1 : index
    %c6_60 = arith.constant 6 : index
    %c0_61 = arith.constant 0 : index
    %59 = vector.load %arg10[%c1_59, %c6_60, %c0_61] : memref<4x58x16xf32, #tpu.memory_space<vmem>>, vector<1x50x16xf32>
    %60 = vector.shape_cast %59 : vector<1x50x16xf32> to vector<50x16xf32>
    %c5_62 = arith.constant 5 : index
    %c0_63 = arith.constant 0 : index
    %c0_64 = arith.constant 0 : index
    %61 = vector.load %arg2[%c5_62, %c0_63, %c0_64] : memref<9x16x32xf32, #tpu.memory_space<vmem>>, vector<1x16x32xf32>
    %62 = vector.shape_cast %61 : vector<1x16x32xf32> to vector<16x32xf32>
    %cst_65 = arith.constant dense<0.000000e+00> : vector<50x32xf32>
    %63 = tpu.matmul %60, %62, %cst_65 {dimension_numbers = #tpu.dot_dimension_numbers<[1], [0], [0], [1], [0, 0, 1, 1], [], []>} : vector<50x16xf32>, vector<16x32xf32>, vector<50x32xf32> -> vector<50x32xf32>
    %64 = arith.addf %58, %63 : vector<50x32xf32>
    %c3_66 = arith.constant 3 : index
    %c5_67 = arith.constant 5 : index
    %c0_68 = arith.constant 0 : index
    %65 = vector.load %arg10[%c3_66, %c5_67, %c0_68] : memref<4x58x16xf32, #tpu.memory_space<vmem>>, vector<1x50x16xf32>
    %66 = vector.shape_cast %65 : vector<1x50x16xf32> to vector<50x16xf32>
    %c6_69 = arith.constant 6 : index
    %c0_70 = arith.constant 0 : index
    %c0_71 = arith.constant 0 : index
    %67 = vector.load %arg2[%c6_69, %c0_70, %c0_71] : memref<9x16x32xf32, #tpu.memory_space<vmem>>, vector<1x16x32xf32>
    %68 = vector.shape_cast %67 : vector<1x16x32xf32> to vector<16x32xf32>
    %cst_72 = arith.constant dense<0.000000e+00> : vector<50x32xf32>
    %69 = tpu.matmul %66, %68, %cst_72 {dimension_numbers = #tpu.dot_dimension_numbers<[1], [0], [0], [1], [0, 0, 1, 1], [], []>} : vector<50x16xf32>, vector<16x32xf32>, vector<50x32xf32> -> vector<50x32xf32>
    %70 = arith.addf %64, %69 : vector<50x32xf32>
    %c2_73 = arith.constant 2 : index
    %c6_74 = arith.constant 6 : index
    %c0_75 = arith.constant 0 : index
    %71 = vector.load %arg10[%c2_73, %c6_74, %c0_75] : memref<4x58x16xf32, #tpu.memory_space<vmem>>, vector<1x50x16xf32>
    %72 = vector.shape_cast %71 : vector<1x50x16xf32> to vector<50x16xf32>
    %c7 = arith.constant 7 : index
    %c0_76 = arith.constant 0 : index
    %c0_77 = arith.constant 0 : index
    %73 = vector.load %arg2[%c7, %c0_76, %c0_77] : memref<9x16x32xf32, #tpu.memory_space<vmem>>, vector<1x16x32xf32>
    %74 = vector.shape_cast %73 : vector<1x16x32xf32> to vector<16x32xf32>
    %cst_78 = arith.constant dense<0.000000e+00> : vector<50x32xf32>
    %75 = tpu.matmul %72, %74, %cst_78 {dimension_numbers = #tpu.dot_dimension_numbers<[1], [0], [0], [1], [0, 0, 1, 1], [], []>} : vector<50x16xf32>, vector<16x32xf32>, vector<50x32xf32> -> vector<50x32xf32>
    %76 = arith.addf %70, %75 : vector<50x32xf32>
    %c3_79 = arith.constant 3 : index
    %c6_80 = arith.constant 6 : index
    %c0_81 = arith.constant 0 : index
    %77 = vector.load %arg10[%c3_79, %c6_80, %c0_81] : memref<4x58x16xf32, #tpu.memory_space<vmem>>, vector<1x50x16xf32>
    %78 = vector.shape_cast %77 : vector<1x50x16xf32> to vector<50x16xf32>
    %c8 = arith.constant 8 : index
    %c0_82 = arith.constant 0 : index
    %c0_83 = arith.constant 0 : index
    %79 = vector.load %arg2[%c8, %c0_82, %c0_83] : memref<9x16x32xf32, #tpu.memory_space<vmem>>, vector<1x16x32xf32>
    %80 = vector.shape_cast %79 : vector<1x16x32xf32> to vector<16x32xf32>
    %cst_84 = arith.constant dense<0.000000e+00> : vector<50x32xf32>
    %81 = tpu.matmul %78, %80, %cst_84 {dimension_numbers = #tpu.dot_dimension_numbers<[1], [0], [0], [1], [0, 0, 1, 1], [], []>} : vector<50x16xf32>, vector<16x32xf32>, vector<50x32xf32> -> vector<50x32xf32>
    %82 = arith.addf %76, %81 : vector<50x32xf32>
    %c0_85 = arith.constant 0 : index
    %c0_86 = arith.constant 0 : index
    %83 = vector.load %arg3[%c0_85, %c0_86] : memref<1x32xf32, #tpu.memory_space<vmem>>, vector<1x32xf32>
    %84 = vector.broadcast %83 : vector<1x32xf32> to vector<50x32xf32>
    %85 = arith.addf %82, %84 : vector<50x32xf32>
    %cst_87 = arith.constant 0.000000e+00 : f32
    %86 = vector.broadcast %cst_87 : f32 to vector<50x32xf32>
    %87 = arith.maximumf %85, %86 : vector<50x32xf32>
    %88 = vector.broadcast %0 : vector<50x1xf32> to vector<50x32xf32>
    %89 = arith.mulf %87, %88 : vector<50x32xf32>
    %c0_88 = arith.constant 0 : index
    %c0_89 = arith.constant 0 : index
    %90 = vector.load %arg11[%c0_88, %c0_89] : memref<58x32xf32, #tpu.memory_space<vmem>>, vector<50x32xf32>
    tpu.vector_store %arg11[%c0_88, %c0_89], %89 {strides = array<i32>} : memref<58x32xf32, #tpu.memory_space<vmem>>, vector<50x32xf32>,
    %cst_90 = arith.constant 0.000000e+00 : f32
    %91 = vector.broadcast %cst_90 : f32 to vector<50x16xf32>
    %c0_91 = arith.constant 0 : index
    %c0_92 = arith.constant 0 : index
    %92 = vector.load %arg11[%c0_91, %c0_92] : memref<58x32xf32, #tpu.memory_space<vmem>>, vector<50x32xf32>
    %c4_93 = arith.constant 4 : index
    %c0_94 = arith.constant 0 : index
    %c0_95 = arith.constant 0 : index
    %93 = vector.load %arg4[%c4_93, %c0_94, %c0_95] : memref<9x32x16xf32, #tpu.memory_space<vmem>>, vector<1x32x16xf32>
    %94 = vector.shape_cast %93 : vector<1x32x16xf32> to vector<32x16xf32>
    %cst_96 = arith.constant dense<0.000000e+00> : vector<50x16xf32>
    %95 = tpu.matmul %92, %94, %cst_96 {dimension_numbers = #tpu.dot_dimension_numbers<[1], [0], [0], [1], [0, 0, 1, 1], [], []>} : vector<50x32xf32>, vector<32x16xf32>, vector<50x16xf32> -> vector<50x16xf32>
    %96 = arith.addf %91, %95 : vector<50x16xf32>
    %c0_97 = arith.constant 0 : index
    %c0_98 = arith.constant 0 : index
    %97 = vector.load %arg5[%c0_97, %c0_98] : memref<1x16xf32, #tpu.memory_space<vmem>>, vector<1x16xf32>
    %98 = vector.broadcast %97 : vector<1x16xf32> to vector<50x16xf32>
    %99 = arith.addf %96, %98 : vector<50x16xf32>
    %cst_99 = arith.constant 0.000000e+00 : f32
    %100 = vector.broadcast %cst_99 : f32 to vector<50x16xf32>
    %101 = arith.maximumf %99, %100 : vector<50x16xf32>
    %102 = vector.broadcast %0 : vector<50x1xf32> to vector<50x16xf32>
    %103 = arith.mulf %101, %102 : vector<50x16xf32>
    %c0_100 = arith.constant 0 : index
    %c0_101 = arith.constant 0 : index
    %c0_102 = arith.constant 0 : index
    %104 = vector.load %arg12[%c0_100, %c0_101, %c0_102] : memref<4x58x16xf32, #tpu.memory_space<vmem>>, vector<1x50x16xf32>
    %105 = vector.shape_cast %104 : vector<1x50x16xf32> to vector<50x16xf32>
    %106 = vector.shape_cast %103 : vector<50x16xf32> to vector<1x50x16xf32>
    tpu.vector_store %arg12[%c0_100, %c0_101, %c0_102], %106 {strides = array<i32>} : memref<4x58x16xf32, #tpu.memory_space<vmem>>, vector<1x50x16xf32>,
    %cst_103 = arith.constant 0.000000e+00 : f32
    %107 = vector.broadcast %cst_103 : f32 to vector<50x16xf32>
    %c0_104 = arith.constant 0 : index
    %c0_105 = arith.constant 0 : index
    %108 = vector.load %arg11[%c0_104, %c0_105] : memref<58x32xf32, #tpu.memory_space<vmem>>, vector<50x32xf32>
    %c3_106 = arith.constant 3 : index
    %c0_107 = arith.constant 0 : index
    %c0_108 = arith.constant 0 : index
    %109 = vector.load %arg4[%c3_106, %c0_107, %c0_108] : memref<9x32x16xf32, #tpu.memory_space<vmem>>, vector<1x32x16xf32>
    %110 = vector.shape_cast %109 : vector<1x32x16xf32> to vector<32x16xf32>
    %cst_109 = arith.constant dense<0.000000e+00> : vector<50x16xf32>
    %111 = tpu.matmul %108, %110, %cst_109 {dimension_numbers = #tpu.dot_dimension_numbers<[1], [0], [0], [1], [0, 0, 1, 1], [], []>} : vector<50x32xf32>, vector<32x16xf32>, vector<50x16xf32> -> vector<50x16xf32>
    %112 = arith.addf %107, %111 : vector<50x16xf32>
    %c1_110 = arith.constant 1 : index
    %c0_111 = arith.constant 0 : index
    %113 = vector.load %arg11[%c1_110, %c0_111] : memref<58x32xf32, #tpu.memory_space<vmem>>, vector<50x32xf32>
    %c5_112 = arith.constant 5 : index
    %c0_113 = arith.constant 0 : index
    %c0_114 = arith.constant 0 : index
    %114 = vector.load %arg4[%c5_112, %c0_113, %c0_114] : memref<9x32x16xf32, #tpu.memory_space<vmem>>, vector<1x32x16xf32>
    %115 = vector.shape_cast %114 : vector<1x32x16xf32> to vector<32x16xf32>
    %cst_115 = arith.constant dense<0.000000e+00> : vector<50x16xf32>
    %116 = tpu.matmul %113, %115, %cst_115 {dimension_numbers = #tpu.dot_dimension_numbers<[1], [0], [0], [1], [0, 0, 1, 1], [], []>} : vector<50x32xf32>, vector<32x16xf32>, vector<50x16xf32> -> vector<50x16xf32>
    %117 = arith.addf %112, %116 : vector<50x16xf32>
    %c0_116 = arith.constant 0 : index
    %c0_117 = arith.constant 0 : index
    %118 = vector.load %arg5[%c0_116, %c0_117] : memref<1x16xf32, #tpu.memory_space<vmem>>, vector<1x16xf32>
    %119 = vector.broadcast %118 : vector<1x16xf32> to vector<50x16xf32>
    %120 = arith.addf %117, %119 : vector<50x16xf32>
    %cst_118 = arith.constant 0.000000e+00 : f32
    %121 = vector.broadcast %cst_118 : f32 to vector<50x16xf32>
    %122 = arith.maximumf %120, %121 : vector<50x16xf32>
    %123 = vector.broadcast %0 : vector<50x1xf32> to vector<50x16xf32>
    %124 = arith.mulf %122, %123 : vector<50x16xf32>
    %c1_119 = arith.constant 1 : index
    %c0_120 = arith.constant 0 : index
    %c0_121 = arith.constant 0 : index
    %125 = vector.load %arg12[%c1_119, %c0_120, %c0_121] : memref<4x58x16xf32, #tpu.memory_space<vmem>>, vector<1x50x16xf32>
    %126 = vector.shape_cast %125 : vector<1x50x16xf32> to vector<50x16xf32>
    %127 = vector.shape_cast %124 : vector<50x16xf32> to vector<1x50x16xf32>
    tpu.vector_store %arg12[%c1_119, %c0_120, %c0_121], %127 {strides = array<i32>} : memref<4x58x16xf32, #tpu.memory_space<vmem>>, vector<1x50x16xf32>,
    %cst_122 = arith.constant 0.000000e+00 : f32
    %128 = vector.broadcast %cst_122 : f32 to vector<50x16xf32>
    %c0_123 = arith.constant 0 : index
    %c0_124 = arith.constant 0 : index
    %129 = vector.load %arg11[%c0_123, %c0_124] : memref<58x32xf32, #tpu.memory_space<vmem>>, vector<50x32xf32>
    %c1_125 = arith.constant 1 : index
    %c0_126 = arith.constant 0 : index
    %c0_127 = arith.constant 0 : index
    %130 = vector.load %arg4[%c1_125, %c0_126, %c0_127] : memref<9x32x16xf32, #tpu.memory_space<vmem>>, vector<1x32x16xf32>
    %131 = vector.shape_cast %130 : vector<1x32x16xf32> to vector<32x16xf32>
    %cst_128 = arith.constant dense<0.000000e+00> : vector<50x16xf32>
    %132 = tpu.matmul %129, %131, %cst_128 {dimension_numbers = #tpu.dot_dimension_numbers<[1], [0], [0], [1], [0, 0, 1, 1], [], []>} : vector<50x32xf32>, vector<32x16xf32>, vector<50x16xf32> -> vector<50x16xf32>
    %133 = arith.addf %128, %132 : vector<50x16xf32>
    %c5_129 = arith.constant 5 : index
    %c0_130 = arith.constant 0 : index
    %134 = vector.load %arg11[%c5_129, %c0_130] : memref<58x32xf32, #tpu.memory_space<vmem>>, vector<50x32xf32>
    %c7_131 = arith.constant 7 : index
    %c0_132 = arith.constant 0 : index
    %c0_133 = arith.constant 0 : index
    %135 = vector.load %arg4[%c7_131, %c0_132, %c0_133] : memref<9x32x16xf32, #tpu.memory_space<vmem>>, vector<1x32x16xf32>
    %136 = vector.shape_cast %135 : vector<1x32x16xf32> to vector<32x16xf32>
    %cst_134 = arith.constant dense<0.000000e+00> : vector<50x16xf32>
    %137 = tpu.matmul %134, %136, %cst_134 {dimension_numbers = #tpu.dot_dimension_numbers<[1], [0], [0], [1], [0, 0, 1, 1], [], []>} : vector<50x32xf32>, vector<32x16xf32>, vector<50x16xf32> -> vector<50x16xf32>
    %138 = arith.addf %133, %137 : vector<50x16xf32>
    %c0_135 = arith.constant 0 : index
    %c0_136 = arith.constant 0 : index
    %139 = vector.load %arg5[%c0_135, %c0_136] : memref<1x16xf32, #tpu.memory_space<vmem>>, vector<1x16xf32>
    %140 = vector.broadcast %139 : vector<1x16xf32> to vector<50x16xf32>
    %141 = arith.addf %138, %140 : vector<50x16xf32>
    %cst_137 = arith.constant 0.000000e+00 : f32
    %142 = vector.broadcast %cst_137 : f32 to vector<50x16xf32>
    %143 = arith.maximumf %141, %142 : vector<50x16xf32>
    %144 = vector.broadcast %0 : vector<50x1xf32> to vector<50x16xf32>
    %145 = arith.mulf %143, %144 : vector<50x16xf32>
    %c2_138 = arith.constant 2 : index
    %c0_139 = arith.constant 0 : index
    %c0_140 = arith.constant 0 : index
    %146 = vector.load %arg12[%c2_138, %c0_139, %c0_140] : memref<4x58x16xf32, #tpu.memory_space<vmem>>, vector<1x50x16xf32>
    %147 = vector.shape_cast %146 : vector<1x50x16xf32> to vector<50x16xf32>
    %148 = vector.shape_cast %145 : vector<50x16xf32> to vector<1x50x16xf32>
    tpu.vector_store %arg12[%c2_138, %c0_139, %c0_140], %148 {strides = array<i32>} : memref<4x58x16xf32, #tpu.memory_space<vmem>>, vector<1x50x16xf32>,
    %cst_141 = arith.constant 0.000000e+00 : f32
    %149 = vector.broadcast %cst_141 : f32 to vector<50x16xf32>
    %c0_142 = arith.constant 0 : index
    %c0_143 = arith.constant 0 : index
    %150 = vector.load %arg11[%c0_142, %c0_143] : memref<58x32xf32, #tpu.memory_space<vmem>>, vector<50x32xf32>
    %c0_144 = arith.constant 0 : index
    %c0_145 = arith.constant 0 : index
    %c0_146 = arith.constant 0 : index
    %151 = vector.load %arg4[%c0_144, %c0_145, %c0_146] : memref<9x32x16xf32, #tpu.memory_space<vmem>>, vector<1x32x16xf32>
    %152 = vector.shape_cast %151 : vector<1x32x16xf32> to vector<32x16xf32>
    %cst_147 = arith.constant dense<0.000000e+00> : vector<50x16xf32>
    %153 = tpu.matmul %150, %152, %cst_147 {dimension_numbers = #tpu.dot_dimension_numbers<[1], [0], [0], [1], [0, 0, 1, 1], [], []>} : vector<50x32xf32>, vector<32x16xf32>, vector<50x16xf32> -> vector<50x16xf32>
    %154 = arith.addf %149, %153 : vector<50x16xf32>
    %c1_148 = arith.constant 1 : index
    %c0_149 = arith.constant 0 : index
    %155 = vector.load %arg11[%c1_148, %c0_149] : memref<58x32xf32, #tpu.memory_space<vmem>>, vector<50x32xf32>
    %c2_150 = arith.constant 2 : index
    %c0_151 = arith.constant 0 : index
    %c0_152 = arith.constant 0 : index
    %156 = vector.load %arg4[%c2_150, %c0_151, %c0_152] : memref<9x32x16xf32, #tpu.memory_space<vmem>>, vector<1x32x16xf32>
    %157 = vector.shape_cast %156 : vector<1x32x16xf32> to vector<32x16xf32>
    %cst_153 = arith.constant dense<0.000000e+00> : vector<50x16xf32>
    %158 = tpu.matmul %155, %157, %cst_153 {dimension_numbers = #tpu.dot_dimension_numbers<[1], [0], [0], [1], [0, 0, 1, 1], [], []>} : vector<50x32xf32>, vector<32x16xf32>, vector<50x16xf32> -> vector<50x16xf32>
    %159 = arith.addf %154, %158 : vector<50x16xf32>
    %c5_154 = arith.constant 5 : index
    %c0_155 = arith.constant 0 : index
    %160 = vector.load %arg11[%c5_154, %c0_155] : memref<58x32xf32, #tpu.memory_space<vmem>>, vector<50x32xf32>
    %c6_156 = arith.constant 6 : index
    %c0_157 = arith.constant 0 : index
    %c0_158 = arith.constant 0 : index
    %161 = vector.load %arg4[%c6_156, %c0_157, %c0_158] : memref<9x32x16xf32, #tpu.memory_space<vmem>>, vector<1x32x16xf32>
    %162 = vector.shape_cast %161 : vector<1x32x16xf32> to vector<32x16xf32>
    %cst_159 = arith.constant dense<0.000000e+00> : vector<50x16xf32>
    %163 = tpu.matmul %160, %162, %cst_159 {dimension_numbers = #tpu.dot_dimension_numbers<[1], [0], [0], [1], [0, 0, 1, 1], [], []>} : vector<50x32xf32>, vector<32x16xf32>, vector<50x16xf32> -> vector<50x16xf32>
    %164 = arith.addf %159, %163 : vector<50x16xf32>
    %c6_160 = arith.constant 6 : index
    %c0_161 = arith.constant 0 : index
    %165 = vector.load %arg11[%c6_160, %c0_161] : memref<58x32xf32, #tpu.memory_space<vmem>>, vector<50x32xf32>
    %c8_162 = arith.constant 8 : index
    %c0_163 = arith.constant 0 : index
    %c0_164 = arith.constant 0 : index
    %166 = vector.load %arg4[%c8_162, %c0_163, %c0_164] : memref<9x32x16xf32, #tpu.memory_space<vmem>>, vector<1x32x16xf32>
    %167 = vector.shape_cast %166 : vector<1x32x16xf32> to vector<32x16xf32>
    %cst_165 = arith.constant dense<0.000000e+00> : vector<50x16xf32>
    %168 = tpu.matmul %165, %167, %cst_165 {dimension_numbers = #tpu.dot_dimension_numbers<[1], [0], [0], [1], [0, 0, 1, 1], [], []>} : vector<50x32xf32>, vector<32x16xf32>, vector<50x16xf32> -> vector<50x16xf32>
    %169 = arith.addf %164, %168 : vector<50x16xf32>
    %c0_166 = arith.constant 0 : index
    %c0_167 = arith.constant 0 : index
    %170 = vector.load %arg5[%c0_166, %c0_167] : memref<1x16xf32, #tpu.memory_space<vmem>>, vector<1x16xf32>
    %171 = vector.broadcast %170 : vector<1x16xf32> to vector<50x16xf32>
    %172 = arith.addf %169, %171 : vector<50x16xf32>
    %cst_168 = arith.constant 0.000000e+00 : f32
    %173 = vector.broadcast %cst_168 : f32 to vector<50x16xf32>
    %174 = arith.maximumf %172, %173 : vector<50x16xf32>
    %175 = vector.broadcast %0 : vector<50x1xf32> to vector<50x16xf32>
    %176 = arith.mulf %174, %175 : vector<50x16xf32>
    %c3_169 = arith.constant 3 : index
    %c0_170 = arith.constant 0 : index
    %c0_171 = arith.constant 0 : index
    %177 = vector.load %arg12[%c3_169, %c0_170, %c0_171] : memref<4x58x16xf32, #tpu.memory_space<vmem>>, vector<1x50x16xf32>
    %178 = vector.shape_cast %177 : vector<1x50x16xf32> to vector<50x16xf32>
    %179 = vector.shape_cast %176 : vector<50x16xf32> to vector<1x50x16xf32>
    tpu.vector_store %arg12[%c3_169, %c0_170, %c0_171], %179 {strides = array<i32>} : memref<4x58x16xf32, #tpu.memory_space<vmem>>, vector<1x50x16xf32>,
    %cst_172 = arith.constant 0.000000e+00 : f32
    %180 = vector.broadcast %cst_172 : f32 to vector<50x128xf32>
    %c0_173 = arith.constant 0 : index
    %c0_174 = arith.constant 0 : index
    %c0_175 = arith.constant 0 : index
    %181 = vector.load %arg12[%c0_173, %c0_174, %c0_175] : memref<4x58x16xf32, #tpu.memory_space<vmem>>, vector<1x50x16xf32>
    %182 = vector.shape_cast %181 : vector<1x50x16xf32> to vector<50x16xf32>
    %c0_176 = arith.constant 0 : index
    %c0_177 = arith.constant 0 : index
    %c0_178 = arith.constant 0 : index
    %183 = vector.load %arg6[%c0_176, %c0_177, %c0_178] : memref<4x16x128xf32, #tpu.memory_space<vmem>>, vector<1x16x128xf32>
    %184 = vector.shape_cast %183 : vector<1x16x128xf32> to vector<16x128xf32>
    %cst_179 = arith.constant dense<0.000000e+00> : vector<50x128xf32>
    %185 = tpu.matmul %182, %184, %cst_179 {dimension_numbers = #tpu.dot_dimension_numbers<[1], [0], [0], [1], [0, 0, 1, 1], [], []>} : vector<50x16xf32>, vector<16x128xf32>, vector<50x128xf32> -> vector<50x128xf32>
    %186 = arith.addf %180, %185 : vector<50x128xf32>
    %c1_180 = arith.constant 1 : index
    %c0_181 = arith.constant 0 : index
    %c0_182 = arith.constant 0 : index
    %187 = vector.load %arg12[%c1_180, %c0_181, %c0_182] : memref<4x58x16xf32, #tpu.memory_space<vmem>>, vector<1x50x16xf32>
    %188 = vector.shape_cast %187 : vector<1x50x16xf32> to vector<50x16xf32>
    %c1_183 = arith.constant 1 : index
    %c0_184 = arith.constant 0 : index
    %c0_185 = arith.constant 0 : index
    %189 = vector.load %arg6[%c1_183, %c0_184, %c0_185] : memref<4x16x128xf32, #tpu.memory_space<vmem>>, vector<1x16x128xf32>
    %190 = vector.shape_cast %189 : vector<1x16x128xf32> to vector<16x128xf32>
    %cst_186 = arith.constant dense<0.000000e+00> : vector<50x128xf32>
    %191 = tpu.matmul %188, %190, %cst_186 {dimension_numbers = #tpu.dot_dimension_numbers<[1], [0], [0], [1], [0, 0, 1, 1], [], []>} : vector<50x16xf32>, vector<16x128xf32>, vector<50x128xf32> -> vector<50x128xf32>
    %192 = arith.addf %186, %191 : vector<50x128xf32>
    %c2_187 = arith.constant 2 : index
    %c0_188 = arith.constant 0 : index
    %c0_189 = arith.constant 0 : index
    %193 = vector.load %arg12[%c2_187, %c0_188, %c0_189] : memref<4x58x16xf32, #tpu.memory_space<vmem>>, vector<1x50x16xf32>
    %194 = vector.shape_cast %193 : vector<1x50x16xf32> to vector<50x16xf32>
    %c2_190 = arith.constant 2 : index
    %c0_191 = arith.constant 0 : index
    %c0_192 = arith.constant 0 : index
    %195 = vector.load %arg6[%c2_190, %c0_191, %c0_192] : memref<4x16x128xf32, #tpu.memory_space<vmem>>, vector<1x16x128xf32>
    %196 = vector.shape_cast %195 : vector<1x16x128xf32> to vector<16x128xf32>
    %cst_193 = arith.constant dense<0.000000e+00> : vector<50x128xf32>
    %197 = tpu.matmul %194, %196, %cst_193 {dimension_numbers = #tpu.dot_dimension_numbers<[1], [0], [0], [1], [0, 0, 1, 1], [], []>} : vector<50x16xf32>, vector<16x128xf32>, vector<50x128xf32> -> vector<50x128xf32>
    %198 = arith.addf %192, %197 : vector<50x128xf32>
    %c3_194 = arith.constant 3 : index
    %c0_195 = arith.constant 0 : index
    %c0_196 = arith.constant 0 : index
    %199 = vector.load %arg12[%c3_194, %c0_195, %c0_196] : memref<4x58x16xf32, #tpu.memory_space<vmem>>, vector<1x50x16xf32>
    %200 = vector.shape_cast %199 : vector<1x50x16xf32> to vector<50x16xf32>
    %c3_197 = arith.constant 3 : index
    %c0_198 = arith.constant 0 : index
    %c0_199 = arith.constant 0 : index
    %201 = vector.load %arg6[%c3_197, %c0_198, %c0_199] : memref<4x16x128xf32, #tpu.memory_space<vmem>>, vector<1x16x128xf32>
    %202 = vector.shape_cast %201 : vector<1x16x128xf32> to vector<16x128xf32>
    %cst_200 = arith.constant dense<0.000000e+00> : vector<50x128xf32>
    %203 = tpu.matmul %200, %202, %cst_200 {dimension_numbers = #tpu.dot_dimension_numbers<[1], [0], [0], [1], [0, 0, 1, 1], [], []>} : vector<50x16xf32>, vector<16x128xf32>, vector<50x128xf32> -> vector<50x128xf32>
    %204 = arith.addf %198, %203 : vector<50x128xf32>
    %c0_201 = arith.constant 0 : index
    %c0_202 = arith.constant 0 : index
    %205 = vector.load %arg7[%c0_201, %c0_202] : memref<1x128xf32, #tpu.memory_space<vmem>>, vector<1x128xf32>
    %206 = vector.broadcast %205 : vector<1x128xf32> to vector<50x128xf32>
    %207 = arith.addf %204, %206 : vector<50x128xf32>
    %208 = arith.negf %207 : vector<50x128xf32>
    %209 = math.exp %208 : vector<50x128xf32>
    %cst_203 = arith.constant 1.000000e+00 : f32
    %210 = vector.broadcast %cst_203 : f32 to vector<50x128xf32>
    %211 = arith.addf %210, %209 : vector<50x128xf32>
    %212 = arith.divf %210, %211 : vector<50x128xf32>
    %c0_204 = arith.constant 0 : index
    %c0_205 = arith.constant 0 : index
    %c0_206 = arith.constant 0 : index
    %213 = vector.load %arg9[%c0_204, %c0_205, %c0_206] : memref<4x50x128xf32, #tpu.memory_space<vmem>>, vector<1x50x128xf32>
    %214 = vector.shape_cast %213 : vector<1x50x128xf32> to vector<50x128xf32>
    %215 = vector.shape_cast %212 : vector<50x128xf32> to vector<1x50x128xf32>
    tpu.vector_store %arg9[%c0_204, %c0_205, %c0_206], %215 {strides = array<i32>} : memref<4x50x128xf32, #tpu.memory_space<vmem>>, vector<1x50x128xf32>,
    %cst_207 = arith.constant 0.000000e+00 : f32
    %216 = vector.broadcast %cst_207 : f32 to vector<50x128xf32>
    %c1_208 = arith.constant 1 : index
    %c0_209 = arith.constant 0 : index
    %c0_210 = arith.constant 0 : index
    %217 = vector.load %arg12[%c1_208, %c0_209, %c0_210] : memref<4x58x16xf32, #tpu.memory_space<vmem>>, vector<1x50x16xf32>
    %218 = vector.shape_cast %217 : vector<1x50x16xf32> to vector<50x16xf32>
    %c0_211 = arith.constant 0 : index
    %c0_212 = arith.constant 0 : index
    %c0_213 = arith.constant 0 : index
    %219 = vector.load %arg6[%c0_211, %c0_212, %c0_213] : memref<4x16x128xf32, #tpu.memory_space<vmem>>, vector<1x16x128xf32>
    %220 = vector.shape_cast %219 : vector<1x16x128xf32> to vector<16x128xf32>
    %cst_214 = arith.constant dense<0.000000e+00> : vector<50x128xf32>
    %221 = tpu.matmul %218, %220, %cst_214 {dimension_numbers = #tpu.dot_dimension_numbers<[1], [0], [0], [1], [0, 0, 1, 1], [], []>} : vector<50x16xf32>, vector<16x128xf32>, vector<50x128xf32> -> vector<50x128xf32>
    %222 = arith.addf %216, %221 : vector<50x128xf32>
    %c0_215 = arith.constant 0 : index
    %c1_216 = arith.constant 1 : index
    %c0_217 = arith.constant 0 : index
    %223 = vector.load %arg12[%c0_215, %c1_216, %c0_217] : memref<4x58x16xf32, #tpu.memory_space<vmem>>, vector<1x50x16xf32>
    %224 = vector.shape_cast %223 : vector<1x50x16xf32> to vector<50x16xf32>
    %c1_218 = arith.constant 1 : index
    %c0_219 = arith.constant 0 : index
    %c0_220 = arith.constant 0 : index
    %225 = vector.load %arg6[%c1_218, %c0_219, %c0_220] : memref<4x16x128xf32, #tpu.memory_space<vmem>>, vector<1x16x128xf32>
    %226 = vector.shape_cast %225 : vector<1x16x128xf32> to vector<16x128xf32>
    %cst_221 = arith.constant dense<0.000000e+00> : vector<50x128xf32>
    %227 = tpu.matmul %224, %226, %cst_221 {dimension_numbers = #tpu.dot_dimension_numbers<[1], [0], [0], [1], [0, 0, 1, 1], [], []>} : vector<50x16xf32>, vector<16x128xf32>, vector<50x128xf32> -> vector<50x128xf32>
    %228 = arith.addf %222, %227 : vector<50x128xf32>
    %c3_222 = arith.constant 3 : index
    %c0_223 = arith.constant 0 : index
    %c0_224 = arith.constant 0 : index
    %229 = vector.load %arg12[%c3_222, %c0_223, %c0_224] : memref<4x58x16xf32, #tpu.memory_space<vmem>>, vector<1x50x16xf32>
    %230 = vector.shape_cast %229 : vector<1x50x16xf32> to vector<50x16xf32>
    %c2_225 = arith.constant 2 : index
    %c0_226 = arith.constant 0 : index
    %c0_227 = arith.constant 0 : index
    %231 = vector.load %arg6[%c2_225, %c0_226, %c0_227] : memref<4x16x128xf32, #tpu.memory_space<vmem>>, vector<1x16x128xf32>
    %232 = vector.shape_cast %231 : vector<1x16x128xf32> to vector<16x128xf32>
    %cst_228 = arith.constant dense<0.000000e+00> : vector<50x128xf32>
    %233 = tpu.matmul %230, %232, %cst_228 {dimension_numbers = #tpu.dot_dimension_numbers<[1], [0], [0], [1], [0, 0, 1, 1], [], []>} : vector<50x16xf32>, vector<16x128xf32>, vector<50x128xf32> -> vector<50x128xf32>
    %234 = arith.addf %228, %233 : vector<50x128xf32>
    %c2_229 = arith.constant 2 : index
    %c1_230 = arith.constant 1 : index
    %c0_231 = arith.constant 0 : index
    %235 = vector.load %arg12[%c2_229, %c1_230, %c0_231] : memref<4x58x16xf32, #tpu.memory_space<vmem>>, vector<1x50x16xf32>
    %236 = vector.shape_cast %235 : vector<1x50x16xf32> to vector<50x16xf32>
    %c3_232 = arith.constant 3 : index
    %c0_233 = arith.constant 0 : index
    %c0_234 = arith.constant 0 : index
    %237 = vector.load %arg6[%c3_232, %c0_233, %c0_234] : memref<4x16x128xf32, #tpu.memory_space<vmem>>, vector<1x16x128xf32>
    %238 = vector.shape_cast %237 : vector<1x16x128xf32> to vector<16x128xf32>
    %cst_235 = arith.constant dense<0.000000e+00> : vector<50x128xf32>
    %239 = tpu.matmul %236, %238, %cst_235 {dimension_numbers = #tpu.dot_dimension_numbers<[1], [0], [0], [1], [0, 0, 1, 1], [], []>} : vector<50x16xf32>, vector<16x128xf32>, vector<50x128xf32> -> vector<50x128xf32>
    %240 = arith.addf %234, %239 : vector<50x128xf32>
    %c0_236 = arith.constant 0 : index
    %c0_237 = arith.constant 0 : index
    %241 = vector.load %arg7[%c0_236, %c0_237] : memref<1x128xf32, #tpu.memory_space<vmem>>, vector<1x128xf32>
    %242 = vector.broadcast %241 : vector<1x128xf32> to vector<50x128xf32>
    %243 = arith.addf %240, %242 : vector<50x128xf32>
    %244 = arith.negf %243 : vector<50x128xf32>
    %245 = math.exp %244 : vector<50x128xf32>
    %cst_238 = arith.constant 1.000000e+00 : f32
    %246 = vector.broadcast %cst_238 : f32 to vector<50x128xf32>
    %247 = arith.addf %246, %245 : vector<50x128xf32>
    %248 = arith.divf %246, %247 : vector<50x128xf32>
    %c1_239 = arith.constant 1 : index
    %c0_240 = arith.constant 0 : index
    %c0_241 = arith.constant 0 : index
    %249 = vector.load %arg9[%c1_239, %c0_240, %c0_241] : memref<4x50x128xf32, #tpu.memory_space<vmem>>, vector<1x50x128xf32>
    %250 = vector.shape_cast %249 : vector<1x50x128xf32> to vector<50x128xf32>
    %251 = vector.shape_cast %248 : vector<50x128xf32> to vector<1x50x128xf32>
    tpu.vector_store %arg9[%c1_239, %c0_240, %c0_241], %251 {strides = array<i32>} : memref<4x50x128xf32, #tpu.memory_space<vmem>>, vector<1x50x128xf32>,
    %cst_242 = arith.constant 0.000000e+00 : f32
    %252 = vector.broadcast %cst_242 : f32 to vector<50x128xf32>
    %c2_243 = arith.constant 2 : index
    %c0_244 = arith.constant 0 : index
    %c0_245 = arith.constant 0 : index
    %253 = vector.load %arg12[%c2_243, %c0_244, %c0_245] : memref<4x58x16xf32, #tpu.memory_space<vmem>>, vector<1x50x16xf32>
    %254 = vector.shape_cast %253 : vector<1x50x16xf32> to vector<50x16xf32>
    %c0_246 = arith.constant 0 : index
    %c0_247 = arith.constant 0 : index
    %c0_248 = arith.constant 0 : index
    %255 = vector.load %arg6[%c0_246, %c0_247, %c0_248] : memref<4x16x128xf32, #tpu.memory_space<vmem>>, vector<1x16x128xf32>
    %256 = vector.shape_cast %255 : vector<1x16x128xf32> to vector<16x128xf32>
    %cst_249 = arith.constant dense<0.000000e+00> : vector<50x128xf32>
    %257 = tpu.matmul %254, %256, %cst_249 {dimension_numbers = #tpu.dot_dimension_numbers<[1], [0], [0], [1], [0, 0, 1, 1], [], []>} : vector<50x16xf32>, vector<16x128xf32>, vector<50x128xf32> -> vector<50x128xf32>
    %258 = arith.addf %252, %257 : vector<50x128xf32>
    %c3_250 = arith.constant 3 : index
    %c0_251 = arith.constant 0 : index
    %c0_252 = arith.constant 0 : index
    %259 = vector.load %arg12[%c3_250, %c0_251, %c0_252] : memref<4x58x16xf32, #tpu.memory_space<vmem>>, vector<1x50x16xf32>
    %260 = vector.shape_cast %259 : vector<1x50x16xf32> to vector<50x16xf32>
    %c1_253 = arith.constant 1 : index
    %c0_254 = arith.constant 0 : index
    %c0_255 = arith.constant 0 : index
    %261 = vector.load %arg6[%c1_253, %c0_254, %c0_255] : memref<4x16x128xf32, #tpu.memory_space<vmem>>, vector<1x16x128xf32>
    %262 = vector.shape_cast %261 : vector<1x16x128xf32> to vector<16x128xf32>
    %cst_256 = arith.constant dense<0.000000e+00> : vector<50x128xf32>
    %263 = tpu.matmul %260, %262, %cst_256 {dimension_numbers = #tpu.dot_dimension_numbers<[1], [0], [0], [1], [0, 0, 1, 1], [], []>} : vector<50x16xf32>, vector<16x128xf32>, vector<50x128xf32> -> vector<50x128xf32>
    %264 = arith.addf %258, %263 : vector<50x128xf32>
    %c0_257 = arith.constant 0 : index
    %c5_258 = arith.constant 5 : index
    %c0_259 = arith.constant 0 : index
    %265 = vector.load %arg12[%c0_257, %c5_258, %c0_259] : memref<4x58x16xf32, #tpu.memory_space<vmem>>, vector<1x50x16xf32>
    %266 = vector.shape_cast %265 : vector<1x50x16xf32> to vector<50x16xf32>
    %c2_260 = arith.constant 2 : index
    %c0_261 = arith.constant 0 : index
    %c0_262 = arith.constant 0 : index
    %267 = vector.load %arg6[%c2_260, %c0_261, %c0_262] : memref<4x16x128xf32, #tpu.memory_space<vmem>>, vector<1x16x128xf32>
    %268 = vector.shape_cast %267 : vector<1x16x128xf32> to vector<16x128xf32>
    %cst_263 = arith.constant dense<0.000000e+00> : vector<50x128xf32>
    %269 = tpu.matmul %266, %268, %cst_263 {dimension_numbers = #tpu.dot_dimension_numbers<[1], [0], [0], [1], [0, 0, 1, 1], [], []>} : vector<50x16xf32>, vector<16x128xf32>, vector<50x128xf32> -> vector<50x128xf32>
    %270 = arith.addf %264, %269 : vector<50x128xf32>
    %c1_264 = arith.constant 1 : index
    %c5_265 = arith.constant 5 : index
    %c0_266 = arith.constant 0 : index
    %271 = vector.load %arg12[%c1_264, %c5_265, %c0_266] : memref<4x58x16xf32, #tpu.memory_space<vmem>>, vector<1x50x16xf32>
    %272 = vector.shape_cast %271 : vector<1x50x16xf32> to vector<50x16xf32>
    %c3_267 = arith.constant 3 : index
    %c0_268 = arith.constant 0 : index
    %c0_269 = arith.constant 0 : index
    %273 = vector.load %arg6[%c3_267, %c0_268, %c0_269] : memref<4x16x128xf32, #tpu.memory_space<vmem>>, vector<1x16x128xf32>
    %274 = vector.shape_cast %273 : vector<1x16x128xf32> to vector<16x128xf32>
    %cst_270 = arith.constant dense<0.000000e+00> : vector<50x128xf32>
    %275 = tpu.matmul %272, %274, %cst_270 {dimension_numbers = #tpu.dot_dimension_numbers<[1], [0], [0], [1], [0, 0, 1, 1], [], []>} : vector<50x16xf32>, vector<16x128xf32>, vector<50x128xf32> -> vector<50x128xf32>
    %276 = arith.addf %270, %275 : vector<50x128xf32>
    %c0_271 = arith.constant 0 : index
    %c0_272 = arith.constant 0 : index
    %277 = vector.load %arg7[%c0_271, %c0_272] : memref<1x128xf32, #tpu.memory_space<vmem>>, vector<1x128xf32>
    %278 = vector.broadcast %277 : vector<1x128xf32> to vector<50x128xf32>
    %279 = arith.addf %276, %278 : vector<50x128xf32>
    %280 = arith.negf %279 : vector<50x128xf32>
    %281 = math.exp %280 : vector<50x128xf32>
    %cst_273 = arith.constant 1.000000e+00 : f32
    %282 = vector.broadcast %cst_273 : f32 to vector<50x128xf32>
    %283 = arith.addf %282, %281 : vector<50x128xf32>
    %284 = arith.divf %282, %283 : vector<50x128xf32>
    %c2_274 = arith.constant 2 : index
    %c0_275 = arith.constant 0 : index
    %c0_276 = arith.constant 0 : index
    %285 = vector.load %arg9[%c2_274, %c0_275, %c0_276] : memref<4x50x128xf32, #tpu.memory_space<vmem>>, vector<1x50x128xf32>
    %286 = vector.shape_cast %285 : vector<1x50x128xf32> to vector<50x128xf32>
    %287 = vector.shape_cast %284 : vector<50x128xf32> to vector<1x50x128xf32>
    tpu.vector_store %arg9[%c2_274, %c0_275, %c0_276], %287 {strides = array<i32>} : memref<4x50x128xf32, #tpu.memory_space<vmem>>, vector<1x50x128xf32>,
    %cst_277 = arith.constant 0.000000e+00 : f32
    %288 = vector.broadcast %cst_277 : f32 to vector<50x128xf32>
    %c3_278 = arith.constant 3 : index
    %c0_279 = arith.constant 0 : index
    %c0_280 = arith.constant 0 : index
    %289 = vector.load %arg12[%c3_278, %c0_279, %c0_280] : memref<4x58x16xf32, #tpu.memory_space<vmem>>, vector<1x50x16xf32>
    %290 = vector.shape_cast %289 : vector<1x50x16xf32> to vector<50x16xf32>
    %c0_281 = arith.constant 0 : index
    %c0_282 = arith.constant 0 : index
    %c0_283 = arith.constant 0 : index
    %291 = vector.load %arg6[%c0_281, %c0_282, %c0_283] : memref<4x16x128xf32, #tpu.memory_space<vmem>>, vector<1x16x128xf32>
    %292 = vector.shape_cast %291 : vector<1x16x128xf32> to vector<16x128xf32>
    %cst_284 = arith.constant dense<0.000000e+00> : vector<50x128xf32>
    %293 = tpu.matmul %290, %292, %cst_284 {dimension_numbers = #tpu.dot_dimension_numbers<[1], [0], [0], [1], [0, 0, 1, 1], [], []>} : vector<50x16xf32>, vector<16x128xf32>, vector<50x128xf32> -> vector<50x128xf32>
    %294 = arith.addf %288, %293 : vector<50x128xf32>
    %c2_285 = arith.constant 2 : index
    %c1_286 = arith.constant 1 : index
    %c0_287 = arith.constant 0 : index
    %295 = vector.load %arg12[%c2_285, %c1_286, %c0_287] : memref<4x58x16xf32, #tpu.memory_space<vmem>>, vector<1x50x16xf32>
    %296 = vector.shape_cast %295 : vector<1x50x16xf32> to vector<50x16xf32>
    %c1_288 = arith.constant 1 : index
    %c0_289 = arith.constant 0 : index
    %c0_290 = arith.constant 0 : index
    %297 = vector.load %arg6[%c1_288, %c0_289, %c0_290] : memref<4x16x128xf32, #tpu.memory_space<vmem>>, vector<1x16x128xf32>
    %298 = vector.shape_cast %297 : vector<1x16x128xf32> to vector<16x128xf32>
    %cst_291 = arith.constant dense<0.000000e+00> : vector<50x128xf32>
    %299 = tpu.matmul %296, %298, %cst_291 {dimension_numbers = #tpu.dot_dimension_numbers<[1], [0], [0], [1], [0, 0, 1, 1], [], []>} : vector<50x16xf32>, vector<16x128xf32>, vector<50x128xf32> -> vector<50x128xf32>
    %300 = arith.addf %294, %299 : vector<50x128xf32>
    %c1_292 = arith.constant 1 : index
    %c5_293 = arith.constant 5 : index
    %c0_294 = arith.constant 0 : index
    %301 = vector.load %arg12[%c1_292, %c5_293, %c0_294] : memref<4x58x16xf32, #tpu.memory_space<vmem>>, vector<1x50x16xf32>
    %302 = vector.shape_cast %301 : vector<1x50x16xf32> to vector<50x16xf32>
    %c2_295 = arith.constant 2 : index
    %c0_296 = arith.constant 0 : index
    %c0_297 = arith.constant 0 : index
    %303 = vector.load %arg6[%c2_295, %c0_296, %c0_297] : memref<4x16x128xf32, #tpu.memory_space<vmem>>, vector<1x16x128xf32>
    %304 = vector.shape_cast %303 : vector<1x16x128xf32> to vector<16x128xf32>
    %cst_298 = arith.constant dense<0.000000e+00> : vector<50x128xf32>
    %305 = tpu.matmul %302, %304, %cst_298 {dimension_numbers = #tpu.dot_dimension_numbers<[1], [0], [0], [1], [0, 0, 1, 1], [], []>} : vector<50x16xf32>, vector<16x128xf32>, vector<50x128xf32> -> vector<50x128xf32>
    %306 = arith.addf %300, %305 : vector<50x128xf32>
    %c0_299 = arith.constant 0 : index
    %c6_300 = arith.constant 6 : index
    %c0_301 = arith.constant 0 : index
    %307 = vector.load %arg12[%c0_299, %c6_300, %c0_301] : memref<4x58x16xf32, #tpu.memory_space<vmem>>, vector<1x50x16xf32>
    %308 = vector.shape_cast %307 : vector<1x50x16xf32> to vector<50x16xf32>
    %c3_302 = arith.constant 3 : index
    %c0_303 = arith.constant 0 : index
    %c0_304 = arith.constant 0 : index
    %309 = vector.load %arg6[%c3_302, %c0_303, %c0_304] : memref<4x16x128xf32, #tpu.memory_space<vmem>>, vector<1x16x128xf32>
    %310 = vector.shape_cast %309 : vector<1x16x128xf32> to vector<16x128xf32>
    %cst_305 = arith.constant dense<0.000000e+00> : vector<50x128xf32>
    %311 = tpu.matmul %308, %310, %cst_305 {dimension_numbers = #tpu.dot_dimension_numbers<[1], [0], [0], [1], [0, 0, 1, 1], [], []>} : vector<50x16xf32>, vector<16x128xf32>, vector<50x128xf32> -> vector<50x128xf32>
    %312 = arith.addf %306, %311 : vector<50x128xf32>
    %c0_306 = arith.constant 0 : index
    %c0_307 = arith.constant 0 : index
    %313 = vector.load %arg7[%c0_306, %c0_307] : memref<1x128xf32, #tpu.memory_space<vmem>>, vector<1x128xf32>
    %314 = vector.broadcast %313 : vector<1x128xf32> to vector<50x128xf32>
    %315 = arith.addf %312, %314 : vector<50x128xf32>
    %316 = arith.negf %315 : vector<50x128xf32>
    %317 = math.exp %316 : vector<50x128xf32>
    %cst_308 = arith.constant 1.000000e+00 : f32
    %318 = vector.broadcast %cst_308 : f32 to vector<50x128xf32>
    %319 = arith.addf %318, %317 : vector<50x128xf32>
    %320 = arith.divf %318, %319 : vector<50x128xf32>
    %c3_309 = arith.constant 3 : index
    %c0_310 = arith.constant 0 : index
    %c0_311 = arith.constant 0 : index
    %321 = vector.load %arg9[%c3_309, %c0_310, %c0_311] : memref<4x50x128xf32, #tpu.memory_space<vmem>>, vector<1x50x128xf32>
    %322 = vector.shape_cast %321 : vector<1x50x128xf32> to vector<50x128xf32>
    %323 = vector.shape_cast %320 : vector<50x128xf32> to vector<1x50x128xf32>
    tpu.vector_store %arg9[%c3_309, %c0_310, %c0_311], %323 {strides = array<i32>} : memref<4x50x128xf32, #tpu.memory_space<vmem>>, vector<1x50x128xf32>,
    return
  }
}

</mosaic_0001>

<bundles_post_ra>
// kernel: autoencoder_forward.1
= control target key start
LH: loop header
LB: loop body
LE: loop exit
PB: predicated region body
PF: predicated region fallthrough
CT: control target
= control target key end

     0   :  { %vm221_vm0 = vcmask 1044480   ;;  %vm145_vm1 = vcmask 302080   ;;  %vm39_vm2 = vcmask 130048   ;;  %v4166_v17 = vmov 0.0   ;;  %s5685_s1 = inlined_call_operand.vmem [shape: f32[37,16], index: 1, kind: input, shape index: {}]   ;;  %s5686_s0 = inlined_call_operand.vmem [shape: f32[200,37], index: 0, kind: input, shape index: {}]   ;;  %s5687_s2 = inlined_call_operand.vmem [shape: f32[9,16,32], index: 2, kind: input, shape index: {}]   ;;  %s5688_s8 = inlined_call_operand.vmem [shape: f32[50,1], index: 8, kind: input, shape index: {}]   ;;  %s5689_s4 = inlined_call_operand.vmem [shape: f32[9,32,16], index: 4, kind: input, shape index: {}]   ;;  %s5690_s3 = inlined_call_operand.vmem [shape: f32[1,32], index: 3, kind: input, shape index: {}]   ;;  %s5691_s5 = inlined_call_operand.vmem [shape: f32[1,16], index: 5, kind: input, shape index: {}]   ;;  %s5692_s6 = inlined_call_operand.vmem [shape: f32[4,16,128], index: 6, kind: input, shape index: {}]   ;;  %s5693_s7 = inlined_call_operand.vmem [shape: f32[1,128], index: 7, kind: input, shape index: {}]   ;;  %s5694_s9 = inlined_call_operand.vmem [shape: f32[4,50,128], index: 9, kind: output, shape index: {}]  }
   0x1   :  { %v144_v0 = vld [vmem:[%s5685_s1 + $0x20] sm:$0x1f]  ;;  %v143_v1 = vld [vmem:[%s5685_s1 + $0x18] sm:$0xff]  ;;  %v142_v2 = vld [vmem:[%s5685_s1 + $0x10] sm:$0xff]  ;;  %40 = vst.msk [vmem:[#allocation2] sm:$0xff] %vm39_vm2, %v4166_v17  ;;  %vm47_vm3 = vcmask 123904  }
   0x2   :  { %3648 = vmatpush.msk.msra.mxu0 %vm221_vm0, %v144_v0  ;;  %4033 = vmatpush.msk.msra.mxu3 %vm221_vm0, %v144_v0  ;;  %v141_v3 = vld [vmem:[%s5685_s1 + $0x8] sm:$0xff]  ;;  %v140_v4 = vld [vmem:[%s5685_s1] sm:$0xff]  ;;  %v117_v7 = vld [vmem:[%s5686_s0 + $0x10] sm:$0xff]  ;;  %41 = vst.msk [vmem:[#allocation2 + $0x8] sm:$0xff] %vm39_vm2, %v4166_v17  ;;  %vm350_vm4 = vcmask 130050   ;;  %vm357_vm5 = vcmask 125952  }
   0x3   :  { %v115_v5 = vld [vmem:[%s5686_s0] sm:$0xff]  ;;  %v116_v6 = vld [vmem:[%s5686_s0 + $0x8] sm:$0xff]  ;;  %v118_v8 = vld [vmem:[%s5686_s0 + $0x18] sm:$0xff]  ;;  %42 = vst.msk [vmem:[#allocation2 + $0x10] sm:$0xff] %vm39_vm2, %v4166_v17  ;;  %vm360_vm6 = vcmask 130052   ;;  %vm367_vm7 = vcmask 128000  }
   0x4   :  { %237 = vmatpush.msra.mxu0 %v143_v1  ;;  %4034 = vmatpush.msra.mxu3 %v143_v1  ;;  %v119_v9 = vld [vmem:[%s5686_s0 + $0x20] sm:$0xff]  ;;  %v120_v10 = vld [vmem:[%s5686_s0 + $0x28] sm:$0xff]  ;;  %v121_v11 = vld [vmem:[%s5686_s0 + $0x30] sm:$0xff]  ;;  %43 = vst.msk [vmem:[#allocation2 + $0x18] sm:$0xff] %vm39_vm2, %v4166_v17  ;;  %vm370_vm8 = vcmask 130054   ;;  %vm73_vm9 = vcmask 261120  }
   0x5   :  { %v122_v12 = vld [vmem:[%s5686_s0 + $0x38] sm:$0xff]  ;;  %v123_v13 = vld [vmem:[%s5686_s0 + $0x40] sm:$0xff]  ;;  %v124_v14 = vld [vmem:[%s5686_s0 + $0x48] sm:$0xff]  ;;  %44 = vst.msk [vmem:[#allocation2 + $0x20] sm:$0xff] %vm39_vm2, %v4166_v17  ;;  %vm81_vm10 = vcmask 254976  }
   0x6   :  { %238 = vmatpush.msra.mxu0 %v142_v2  ;;  %4035 = vmatpush.msra.mxu3 %v142_v2  ;;  %v125_v15 = vld [vmem:[%s5686_s0 + $0x50] sm:$0xff]  ;;  %v126_v16 = vld [vmem:[%s5686_s0 + $0x58] sm:$0xff]  ;;  %v127_v18 = vld [vmem:[%s5686_s0 + $0x60] sm:$0xff]  ;;  %45 = vst.msk [vmem:[#allocation2 + $0x28] sm:$0xff] %vm39_vm2, %v4166_v17 }
   0x7   :  { %46 = vst.msk [vmem:[#allocation2 + $0x30] sm:$0xff] %vm39_vm2, %v4166_v17  ;;  %v128_v19 = vld [vmem:[%s5686_s0 + $0x68] sm:$0xff]  ;;  %v129_v20 = vld [vmem:[%s5686_s0 + $0x70] sm:$0xff]  ;;  %v130_v21 = vld [vmem:[%s5686_s0 + $0x78] sm:$0xff] }
   0x8   :  { %239 = vmatpush.msra.mxu0 %v141_v3  ;;  %4036 = vmatpush.msra.mxu3 %v141_v3  ;;  %49 = vst.msk [vmem:[#allocation2 + $0x40] sm:$0xff] %vm39_vm2, %v4166_v17  ;;  %v131_v23 = vld [vmem:[%s5686_s0 + $0x80] sm:$0xff]  ;;  %v132_v26 = vld [vmem:[%s5686_s0 + $0x88] sm:$0xff]  ;;  %v133_v28 = vld [vmem:[%s5686_s0 + $0x90] sm:$0xff] }
   0x9   :  { %50 = vst.msk [vmem:[#allocation2 + $0x48] sm:$0xff] %vm39_vm2, %v4166_v17  ;;  %v134_v32 = vld [vmem:[%s5686_s0 + $0x98] sm:$0xff]  ;;  %v139_v34 = vld [vmem:[%s5686_s0 + $0xc0] sm:$0xff]  ;;  %v136_v39 = vld [vmem:[%s5686_s0 + $0xa8] sm:$0xff] }
   0xa   :  { %240 = vmatpush.msra.mxu0 %v140_v4  ;;  %4037 = vmatpush.msra.mxu3 %v140_v4  ;;  %51 = vst.msk [vmem:[#allocation2 + $0x50] sm:$0xff] %vm39_vm2, %v4166_v17  ;;  %v135_v36 = vld [vmem:[%s5686_s0 + $0xa0] sm:$0xff]  ;;  %v137_v42 = vld [vmem:[%s5686_s0 + $0xb0] sm:$0xff]  ;;  %v138_v45 = vld [vmem:[%s5686_s0 + $0xb8] sm:$0xff] }
   0xb   :  { %3649 = vmatmul.msk.f32.vlgmr.msra.gmra.mxu0 %vm145_vm1, %v115_v5  ;;  %52 = vst.msk [vmem:[#allocation2 + $0x58] sm:$0xff] %vm39_vm2, %v4166_v17  ;;  %3673 = vmatmul.msk.f32.vlgmr.msra.gmra.mxu3 %vm145_vm1, %v139_v34  ;;  %v3675_v53 = vld [vmem:[%s5687_s2 + $0x18] sm:$0xff]  ;;  %v3674_v54 = vld [vmem:[%s5687_s2 + $0x10] sm:$0xff]  ;;  %v386_v63 = vld [vmem:[%s5687_s2 + $0x8] sm:$0xff] }
   0xc   :  { %53 = vst.msk [vmem:[#allocation2 + $0x60] sm:$0xff] %vm39_vm2, %v4166_v17  ;;  %432 = vmatpush.msra.mxu1 %v3675_v53  ;;  %4038 = vmatpush.msra.mxu2 %v3675_v53  ;;  %v3700_v61 = vld [vmem:[%s5687_s2 + $0x38] sm:$0xff]  ;;  %v3699_v62 = vld [vmem:[%s5687_s2 + $0x30] sm:$0xff] }
   0xd   :  { %54 = vst.msk [vmem:[#allocation2 + $0x68] sm:$0xff] %vm39_vm2, %v4166_v17 }
   0xe   :  { %55 = vst.msk [vmem:[#allocation2 + $0x70] sm:$0xff] %vm39_vm2, %v4166_v17  ;;  %433 = vmatpush.msra.mxu1 %v3674_v54  ;;  %4039 = vmatpush.msra.mxu2 %v3674_v54 }
   0xf   :  { %57 = vst.msk [vmem:[#allocation2 + $0x80] sm:$0xff] %vm39_vm2, %v4166_v17 }
  0x10   :  { %58 = vst.msk [vmem:[#allocation2 + $0x88] sm:$0xff] %vm39_vm2, %v4166_v17  ;;  %636 = vmatpush.msrb.mxu1 %v3700_v61  ;;  %491 = vmatpush.msrb.mxu2 %v386_v63 }
  0x11   :  { %59 = vst.msk [vmem:[#allocation2 + $0x90] sm:$0xff] %vm39_vm2, %v4166_v17 }
  0x12   :  { %60 = vst.msk [vmem:[#allocation2 + $0x98] sm:$0xff] %vm39_vm2, %v4166_v17  ;;  %637 = vmatpush.msrb.mxu1 %v3699_v62 }
  0x13   :  { %3650 = vmatmul.msk.f32.gmra.mxu0 %vm145_vm1, %v116_v6  ;;  %61 = vst.msk [vmem:[#allocation2 + $0xa0] sm:$0xff] %vm39_vm2, %v4166_v17  ;;  %v385_v6 = vld [vmem:[%s5687_s2] sm:$0xff] }
  0x14   :  { %62 = vst.msk [vmem:[#allocation2 + $0xa8] sm:$0xff] %vm39_vm2, %v4166_v17  ;;  %492 = vmatpush.msrb.mxu2 %v385_v6 }
  0x15   :  { %63 = vst.msk [vmem:[#allocation2 + $0xb0] sm:$0xff] %vm39_vm2, %v4166_v17 }
  0x16   :  { %65 = vst.msk [vmem:[#allocation2 + $0xc0] sm:$0xff] %vm39_vm2, %v4166_v17 }
  0x17   :  { %66 = vst.msk [vmem:[#allocation2 + $0xc8] sm:$0xff] %vm39_vm2, %v4166_v17 }
  0x18   :  { %67 = vst.msk [vmem:[#allocation2 + $0xd0] sm:$0xff] %vm39_vm2, %v4166_v17 }
  0x19   :  { %68 = vst.msk [vmem:[#allocation2 + $0xd8] sm:$0xff] %vm39_vm2, %v4166_v17 }
  0x1a   :  { %69 = vst.msk [vmem:[#allocation2 + $0xe0] sm:$0xff] %vm39_vm2, %v4166_v17 }
  0x1b   :  { %3651 = vmatmul.msk.f32.gmra.mxu0 %vm145_vm1, %v117_v7  ;;  %70 = vst.msk [vmem:[#allocation2 + $0xe8] sm:$0xff] %vm39_vm2, %v4166_v17 }
  0x1c   :  { %71 = vst.msk [vmem:[#allocation2 + $0xf0] sm:$0xff] %vm39_vm2, %v4166_v17 }
  0x1d   :  { %83 = vst.msk [vmem:[#allocation4] sm:$0xff] %vm39_vm2, %v4166_v17 }
  0x1e   :  { %84 = vst.msk [vmem:[#allocation4 + $0x8] sm:$0xff] %vm39_vm2, %v4166_v17 }
  0x1f   :  { %85 = vst.msk [vmem:[#allocation4 + $0x10] sm:$0xff] %vm39_vm2, %v4166_v17 }
  0x20   :  { %86 = vst.msk [vmem:[#allocation4 + $0x18] sm:$0xff] %vm39_vm2, %v4166_v17 }
  0x21   :  { %87 = vst.msk [vmem:[#allocation4 + $0x20] sm:$0xff] %vm39_vm2, %v4166_v17 }
  0x22   :  { %88 = vst.msk [vmem:[#allocation4 + $0x28] sm:$0xff] %vm39_vm2, %v4166_v17 }
  0x23   :  { %3652 = vmatmul.msk.f32.gmra.mxu0 %vm145_vm1, %v118_v8  ;;  %89 = vst.msk [vmem:[#allocation4 + $0x30] sm:$0xff] %vm39_vm2, %v4166_v17 }
  0x24   :  { %91 = vst.msk [vmem:[#allocation4 + $0x40] sm:$0xff] %vm39_vm2, %v4166_v17 }
  0x25   :  { %92 = vst.msk [vmem:[#allocation4 + $0x48] sm:$0xff] %vm39_vm2, %v4166_v17 }
  0x26   :  { %93 = vst.msk [vmem:[#allocation4 + $0x50] sm:$0xff] %vm39_vm2, %v4166_v17 }
  0x27   :  { %94 = vst.msk [vmem:[#allocation4 + $0x58] sm:$0xff] %vm39_vm2, %v4166_v17 }
  0x28   :  { %95 = vst.msk [vmem:[#allocation4 + $0x60] sm:$0xff] %vm39_vm2, %v4166_v17 }
  0x29   :  { %96 = vst.msk [vmem:[#allocation4 + $0x68] sm:$0xff] %vm39_vm2, %v4166_v17 }
  0x2a   :  { %97 = vst.msk [vmem:[#allocation4 + $0x70] sm:$0xff] %vm39_vm2, %v4166_v17 }
  0x2b   :  { %3653 = vmatmul.msk.f32.gmra.mxu0 %vm145_vm1, %v119_v9  ;;  %99 = vst.msk [vmem:[#allocation4 + $0x80] sm:$0xff] %vm39_vm2, %v4166_v17 }
  0x2c   :  { %100 = vst.msk [vmem:[#allocation4 + $0x88] sm:$0xff] %vm39_vm2, %v4166_v17 }
  0x2d   :  { %101 = vst.msk [vmem:[#allocation4 + $0x90] sm:$0xff] %vm39_vm2, %v4166_v17 }
  0x2e   :  { %102 = vst.msk [vmem:[#allocation4 + $0x98] sm:$0xff] %vm39_vm2, %v4166_v17 }
  0x2f   :  { %103 = vst.msk [vmem:[#allocation4 + $0xa0] sm:$0xff] %vm39_vm2, %v4166_v17 }
  0x30   :  { %104 = vst.msk [vmem:[#allocation4 + $0xa8] sm:$0xff] %vm39_vm2, %v4166_v17 }
  0x31   :  { %105 = vst.msk [vmem:[#allocation4 + $0xb0] sm:$0xff] %vm39_vm2, %v4166_v17 }
  0x32   :  { %107 = vst.msk [vmem:[#allocation4 + $0xc0] sm:$0xff] %vm39_vm2, %v4166_v17 }
  0x33   :  { %3654 = vmatmul.msk.f32.gmra.mxu0 %vm145_vm1, %v120_v10  ;;  %108 = vst.msk [vmem:[#allocation4 + $0xc8] sm:$0xff] %vm39_vm2, %v4166_v17  ;;  %v3691_v10 = vld [vmem:[%s5687_s2 + $0x28] sm:$0xff] }
  0x34   :  { %109 = vst.msk [vmem:[#allocation4 + $0xd0] sm:$0xff] %vm39_vm2, %v4166_v17  ;;  %560 = vmatpush.msrb.mxu3 %v3691_v10 }
  0x35   :  { %110 = vst.msk [vmem:[#allocation4 + $0xd8] sm:$0xff] %vm39_vm2, %v4166_v17 }
  0x36   :  { %111 = vst.msk [vmem:[#allocation4 + $0xe0] sm:$0xff] %vm39_vm2, %v4166_v17 }
  0x37   :  { %112 = vst.msk [vmem:[#allocation4 + $0xe8] sm:$0xff] %vm39_vm2, %v4166_v17 }
  0x38   :  { %113 = vst.msk [vmem:[#allocation4 + $0xf0] sm:$0xff] %vm39_vm2, %v4166_v17 }
  0x39   :  { %74 = vst.msk [vmem:[#allocation3] sm:$0xff] %vm73_vm9, %v4166_v17 }
  0x3a   :  { %75 = vst.msk [vmem:[#allocation3 + $0x8] sm:$0xff] %vm73_vm9, %v4166_v17 }
  0x3b   :  { %3655 = vmatmul.msk.f32.gmra.mxu0 %vm145_vm1, %v121_v11  ;;  %v3690_v11 = vld [vmem:[%s5687_s2 + $0x20] sm:$0xff]  ;;  %76 = vst.msk [vmem:[#allocation3 + $0x10] sm:$0xff] %vm73_vm9, %v4166_v17 }
  0x3c   :  { %561 = vmatpush.msrb.mxu3 %v3690_v11  ;;  %77 = vst.msk [vmem:[#allocation3 + $0x18] sm:$0xff] %vm73_vm9, %v4166_v17 }
  0x3d   :  { %78 = vst.msk [vmem:[#allocation3 + $0x20] sm:$0xff] %vm73_vm9, %v4166_v17 }
  0x3e   :  { %79 = vst.msk [vmem:[#allocation3 + $0x28] sm:$0xff] %vm73_vm9, %v4166_v17 }
  0x3f   :  { %80 = vst.msk [vmem:[#allocation3 + $0x30] sm:$0xff] %vm73_vm9, %v4166_v17 }
  0x43   :  { %3656 = vmatmul.msk.f32.gmra.mxu0 %vm145_vm1, %v122_v12 }
  0x4b   :  { %3657 = vmatmul.msk.f32.gmra.mxu0 %vm145_vm1, %v123_v13 }
  0x53   :  { %3658 = vmatmul.msk.f32.gmra.mxu0 %vm145_vm1, %v124_v14 }
  0x5b   :  { %3659 = vmatmul.msk.f32.gmra.mxu0 %vm145_vm1, %v125_v15 }
  0x63   :  { %3660 = vmatmul.msk.f32.gmra.mxu0 %vm145_vm1, %v126_v16  ;;  %v3709_v16 = vld [vmem:[%s5687_s2 + $0x48] sm:$0xff] }
  0x6b   :  { %3661 = vmatmul.msk.f32.gmra.mxu0 %vm145_vm1, %v127_v18  ;;  %v3718_v18 = vld [vmem:[%s5687_s2 + $0x58] sm:$0xff] }
  0x6c   :  { %788 = vmatpush.msra.mxu3 %v3718_v18 }
  0x73   :  { %3662 = vmatmul.msk.f32.gmra.mxu0 %vm145_vm1, %v128_v19 }
  0x7b   :  { %3663 = vmatmul.msk.f32.gmra.mxu0 %vm145_vm1, %v129_v20 }
  0x83   :  { %3664 = vmatmul.msk.f32.gmra.mxu0 %vm145_vm1, %v130_v21 }
  0x88   :  { %v242_v22 = vpop.f32.mrf.mxu0 }
  0x89   :  { %v317_v24 = vmax.f32 %v242_v22, 0.0 }
  0x8b   :  { %342 = vst.msk [vmem:[#allocation2] sm:$0xff] %vm39_vm2, %v317_v24  ;;  %3665 = vmatmul.msk.f32.gmra.mxu0 %vm145_vm1, %v131_v23 }
  0x90   :  { %v245_v25 = vpop.f32.mrf.mxu0 }
  0x91   :  { %v318_v29 = vmax.f32 %v245_v25, 0.0 }
  0x93   :  { %3666 = vmatmul.msk.f32.gmra.mxu0 %vm145_vm1, %v132_v26  ;;  %343 = vst.msk [vmem:[#allocation2 + $0x8] sm:$0xff] %vm39_vm2, %v318_v29  ;;  %v314_v29 = vpop.f32.mrf.mxu3 }
  0x98   :  { %v248_v27 = vpop.f32.mrf.mxu0 }
  0x99   :  { %v319_v30 = vmax.f32 %v248_v27, 0.0  ;;  %v3727_v27 = vld [vmem:[%s5687_s2 + $0x68] sm:$0xff] }
  0x9b   :  { %3667 = vmatmul.msk.f32.gmra.mxu0 %vm145_vm1, %v133_v28  ;;  %344 = vst.msk [vmem:[#allocation2 + $0x10] sm:$0xff] %vm39_vm2, %v319_v30  ;;  %v3726_v28 = vld [vmem:[%s5687_s2 + $0x60] sm:$0xff] }
  0xa0   :  { %v251_v31 = vpop.f32.mrf.mxu0 }
  0xa1   :  { %v320_v33 = vmax.f32 %v251_v31, 0.0  ;;  %v341_v31 = vmax.f32 %v314_v29, 0.0 }
  0xa3   :  { %345 = vst.msk [vmem:[#allocation2 + $0x18] sm:$0xff] %vm39_vm2, %v320_v33  ;;  %3668 = vmatmul.msk.f32.gmra.mxu0 %vm145_vm1, %v134_v32 }
  0xa4   :  { %377 = vst.msk [vmem:[#allocation2 + $0xea] sm:$0xff] %vm39_vm2, %v341_v31 }
  0xa8   :  { %v254_v35 = vpop.f32.mrf.mxu0 }
  0xa9   :  { %v321_v37 = vmax.f32 %v254_v35, 0.0 }
  0xaa   :  { %v669_v11 = vld [vmem:[#allocation2 + $0x16] sm:$0xff] }
  0xab   :  { %346 = vst.msk [vmem:[#allocation2 + $0x20] sm:$0xff] %vm39_vm2, %v321_v37  ;;  %3669 = vmatmul.msk.f32.gmra.mxu0 %vm145_vm1, %v135_v36  ;;  %v3708_v36 = vld [vmem:[%s5687_s2 + $0x40] sm:$0xff]  ;;  %v3717_v37 = vld [vmem:[%s5687_s2 + $0x50] sm:$0xff] }
  0xac   :  { %789 = vmatpush.msra.mxu3 %v3717_v37  ;;  %v521_v61 = vld [vmem:[#allocation2 + $0xf1] sm:$0x3] }
  0xad   :  { %v824_v10 = vld [vmem:[#allocation2 + $0xed] sm:$0xff] }
  0xb0   :  { %v257_v38 = vpop.f32.mrf.mxu0 }
  0xb1   :  { %v322_v40 = vmax.f32 %v257_v38, 0.0 }
  0xb3   :  { %347 = vst.msk [vmem:[#allocation2 + $0x28] sm:$0xff] %vm39_vm2, %v322_v40  ;;  %3670 = vmatmul.msk.f32.gmra.mxu0 %vm145_vm1, %v136_v39 }
  0xb8   :  { %v260_v41 = vpop.f32.mrf.mxu0 }
  0xb9   :  { %v323_v43 = vmax.f32 %v260_v41, 0.0 }
  0xbb   :  { %348 = vst.msk [vmem:[#allocation2 + $0x30] sm:$0x3] %vm47_vm3, %v323_v43  ;;  %3671 = vmatmul.msk.f32.gmra.mxu0 %vm145_vm1, %v137_v42 }
  0xbc   :  { %351 = vst.msk [vmem:[#allocation2 + $0x3e] sm:$0xfc] %vm350_vm4, %v323_v43 }
  0xc0   :  { %v263_v44 = vpop.f32.mrf.mxu0 }
  0xc1   :  { %v324_v46 = vmax.f32 %v263_v44, 0.0 }
  0xc3   :  { %352 = vst.msk [vmem:[#allocation2 + $0x46] sm:$0xff] %vm39_vm2, %v324_v46  ;;  %3672 = vmatmul.msk.f32.gmra.mxu0 %vm145_vm1, %v138_v45 }
  0xc8   :  { %v266_v47 = vpop.f32.mrf.mxu0 }
  0xc9   :  { %v325_v48 = vmax.f32 %v266_v47, 0.0 }
  0xca   :  { %v591_v15 = vld [vmem:[#allocation2 + $0x45] sm:$0xff] }
  0xcb   :  { %353 = vst.msk [vmem:[#allocation2 + $0x4e] sm:$0xff] %vm39_vm2, %v325_v48 }
  0xd0   :  { %v269_v49 = vpop.f32.mrf.mxu0 }
  0xd1   :  { %v326_v50 = vmax.f32 %v269_v49, 0.0 }
  0xd2   :  { %v592_v22 = vld [vmem:[#allocation2 + $0x4d] sm:$0xff] }
  0xd3   :  { %354 = vst.msk [vmem:[#allocation2 + $0x56] sm:$0xff] %vm39_vm2, %v326_v50  ;;  %v597_v50 = vld [vmem:[#allocation2 + $0x75] sm:$0x3] }
  0xd4   :  { %v744_v6 = vld [vmem:[#allocation2 + $0x4e] sm:$0xff] }
  0xd8   :  { %v272_v51 = vpop.f32.mrf.mxu0 }
  0xd9   :  { %v327_v52 = vmax.f32 %v272_v51, 0.0 }
  0xda   :  { %v593_v26 = vld [vmem:[#allocation2 + $0x55] sm:$0xff] }
  0xdb   :  { %355 = vst.msk [vmem:[#allocation2 + $0x5e] sm:$0xff] %vm39_vm2, %v327_v52 }
  0xe0   :  { %v275_v55 = vpop.f32.mrf.mxu0 }
  0xe1   :  { %v328_v56 = vmax.f32 %v275_v55, 0.0 }
  0xe2   :  { %v594_v35 = vld [vmem:[#allocation2 + $0x5d] sm:$0xff] }
  0xe3   :  { %356 = vst.msk [vmem:[#allocation2 + $0x66] sm:$0xff] %vm39_vm2, %v328_v56  ;;  %v3736_v56 = vld [vmem:[%s5687_s2 + $0x78] sm:$0xff] }
  0xe8   :  { %v278_v57 = vpop.f32.mrf.mxu0 }
  0xe9   :  { %v329_v58 = vmax.f32 %v278_v57, 0.0  ;;  %v3745_v57 = vld [vmem:[%s5687_s2 + $0x88] sm:$0xff] }
  0xea   :  { %v595_v42 = vld [vmem:[#allocation2 + $0x65] sm:$0xff] }
  0xeb   :  { %358 = vst.msk [vmem:[#allocation2 + $0x6e] sm:$0xf] %vm357_vm5, %v329_v58 }
  0xec   :  { %361 = vst.msk [vmem:[#allocation2 + $0x7c] sm:$0xf0] %vm360_vm6, %v329_v58 }
  0xf0   :  { %v281_v59 = vpop.f32.mrf.mxu0 }
  0xf1   :  { %v330_v60 = vmax.f32 %v281_v59, 0.0 }
  0xf2   :  { %v596_v47 = vld [vmem:[#allocation2 + $0x6d] sm:$0xff] }
  0xf3   :  { %362 = vst.msk [vmem:[#allocation2 + $0x84] sm:$0xff] %vm39_vm2, %v330_v60  ;;  %v748_v18 = vld [vmem:[#allocation2 + $0x6e] sm:$0xff] }
  0xf8   :  { %v284_v0 = vpop.f32.mrf.mxu0 }
  0xf9   :  { %v331_v1 = vmax.f32 %v284_v0, 0.0  ;;  %v384_v0 = vld [vmem:[#allocation2 + $0xf0] sm:$0x3] }
  0xfa   :  { %v387_v2 = vld [vmem:[#allocation2 + $0x81] sm:$0xff] }
  0xfb   :  { %363 = vst.msk [vmem:[#allocation2 + $0x8c] sm:$0xff] %vm39_vm2, %v331_v1  ;;  %3676 = vmatmul.msk.f32.vlgmr.msra.gmra.mxu1 %vm39_vm2, %v387_v2  ;;  %v743_v1 = vld [vmem:[#allocation2 + $0x46] sm:$0xff] }
  0xfc   :  { %864 = vmatpush.msra.mxu1 %v3727_v27 }
  0xfe   :  { %865 = vmatpush.msra.mxu1 %v3726_v28  ;;  %v38_v28 = vld [vmem:[%s5688_s8 + $0x30] sm:$0x3] }
 0x100   :  { %v287_v3 = vpop.f32.mrf.mxu0 }
 0x101   :  { %v332_v4 = vmax.f32 %v287_v3, 0.0  ;;  %v3735_v3 = vld [vmem:[%s5687_s2 + $0x70] sm:$0xff] }
 0x102   :  { %v388_v5 = vld [vmem:[#allocation2 + $0x89] sm:$0xff] }
 0x103   :  { %364 = vst.msk [vmem:[#allocation2 + $0x94] sm:$0xff] %vm39_vm2, %v332_v4  ;;  %3677 = vmatmul.msk.f32.gmra.mxu1 %vm39_vm2, %v388_v5  ;;  %v3744_v4 = vld [vmem:[%s5687_s2 + $0x80] sm:$0xff] }
 0x104   :  { %v667_v5 = vld [vmem:[#allocation2 + $0x6] sm:$0xff] }
 0x108   :  { %v290_v7 = vpop.f32.mrf.mxu0 }
 0x109   :  { %v333_v8 = vmax.f32 %v290_v7, 0.0 }
 0x10a   :  { %v389_v9 = vld [vmem:[#allocation2 + $0x91] sm:$0xff] }
 0x10b   :  { %365 = vst.msk [vmem:[#allocation2 + $0x9c] sm:$0xff] %vm39_vm2, %v333_v8  ;;  %3678 = vmatmul.msk.f32.gmra.mxu1 %vm39_vm2, %v389_v9  ;;  %v668_v8 = vld [vmem:[#allocation2 + $0xe] sm:$0xff]  ;;  %v745_v9 = vld [vmem:[#allocation2 + $0x56] sm:$0xff] }
 0x110   :  { %v293_v12 = vpop.f32.mrf.mxu0 }
 0x111   :  { %v334_v13 = vmax.f32 %v293_v12, 0.0  ;;  %v746_v12 = vld [vmem:[#allocation2 + $0x5e] sm:$0xff] }
 0x112   :  { %v390_v14 = vld [vmem:[#allocation2 + $0x99] sm:$0xff] }
 0x113   :  { %366 = vst.msk [vmem:[#allocation2 + $0xa4] sm:$0xff] %vm39_vm2, %v334_v13  ;;  %3679 = vmatmul.msk.f32.vlgmr.msra.gmra.mxu2 %vm39_vm2, %v390_v14  ;;  %3701 = vmatmul.msk.f32.vlgmr.msrb.gmra.mxu1 %vm39_vm2, %v591_v15  ;;  %v670_v13 = vld [vmem:[#allocation2 + $0x1e] sm:$0xff]  ;;  %v747_v14 = vld [vmem:[#allocation2 + $0x66] sm:$0xff]  ;;  %v825_v15 = vld [vmem:[#allocation2 + $0xf5] sm:$0x3] }
 0x114   :  { %712 = vmatpush.msra.mxu2 %v3709_v16  ;;  %v671_v16 = vld [vmem:[#allocation2 + $0x26] sm:$0xff] }
 0x116   :  { %713 = vmatpush.msra.mxu2 %v3708_v36  ;;  %v35_v36 = vld [vmem:[%s5688_s8 + $0x18] sm:$0xff] }
 0x118   :  { %v296_v19 = vpop.f32.mrf.mxu0 }
 0x119   :  { %v335_v20 = vmax.f32 %v296_v19, 0.0  ;;  %v4167_v19 = vmov 0  }
 0x11a   :  { %v391_v21 = vld [vmem:[#allocation2 + $0xa1] sm:$0xff]  ;;  %4042 = vset.pattern.permute.xlu0 %v4167_v19  ;;  %4043 = vset.pattern.permute.xlu1 %v4167_v19 }
 0x11b   :  { %368 = vst.msk [vmem:[#allocation2 + $0xac] sm:$0x3f] %vm367_vm7, %v335_v20  ;;  %3680 = vmatmul.msk.f32.gmra.mxu2 %vm39_vm2, %v391_v21  ;;  %3702 = vmatmul.msk.f32.gmra.mxu1 %vm39_vm2, %v592_v22  ;;  %v3793_v21 = vld [vmem:[%s5689_s4 + $0xf8] sm:$0xff]  ;;  %v749_v22 = vld [vmem:[#allocation2 + $0x76] sm:$0x3] }
 0x11c   :  { %371 = vst.msk [vmem:[#allocation2 + $0xba] sm:$0xc0] %vm370_vm8, %v335_v20  ;;  %v32_v20 = vld [vmem:[%s5688_s8] sm:$0xff]  ;;  %4044 = vset.pattern.permute.xlu2 %v4167_v19  ;;  %1442 = vmatpush.msrb.mxu0 %v3793_v21 }
 0x11d   :  { %1067 = vperm.xlu0 %4042, %v32_v20  }
 0x120   :  { %v299_v23 = vpop.f32.mrf.mxu0 }
 0x121   :  { %v336_v24 = vmax.f32 %v299_v23, 0.0  ;;  %v672_v23 = vld [vmem:[#allocation2 + $0x2e] sm:$0xff] }
 0x122   :  { %v392_v25 = vld [vmem:[#allocation2 + $0xa9] sm:$0xff]  ;;  %v393_v33 = vld [vmem:[#allocation2 + $0xb1] sm:$0x3] }
 0x123   :  { %372 = vst.msk [vmem:[#allocation2 + $0xc2] sm:$0xff] %vm39_vm2, %v336_v24  ;;  %3681 = vmatmul.msk.f32.gmra.mxu2 %vm39_vm2, %v392_v25  ;;  %3703 = vmatmul.msk.f32.gmra.mxu1 %vm39_vm2, %v593_v26  ;;  %v33_v24 = vld [vmem:[%s5688_s8 + $0x8] sm:$0xff]  ;;  %v673_v26 = vld [vmem:[#allocation2 + $0x36] sm:$0x3] }
 0x125   :  { %1072 = vperm.xlu0 %4042, %v33_v24  }
 0x128   :  { %v302_v30 = vpop.f32.mrf.mxu0 }
 0x129   :  { %v337_v32 = vmax.f32 %v302_v30, 0.0  ;;  %v895_v30 = vld [vmem:[#allocation2 + $0x86] sm:$0xff] }
 0x12a   :  { %v515_v34 = vld [vmem:[#allocation2 + $0xc1] sm:$0xff] }
 0x12b   :  { %373 = vst.msk [vmem:[#allocation2 + $0xca] sm:$0xff] %vm39_vm2, %v337_v32  ;;  %3682 = vmatmul.msk.f32.gmra.mxu2 %vm39_vm2, %v393_v33  ;;  %3692 = vmatmul.msk.f32.vlgmr.msrb.gmra.mxu3 %vm39_vm2, %v515_v34  ;;  %v378_v40 = vld [vmem:[#allocation2 + $0xc0] sm:$0xff]  ;;  %v34_v32 = vld [vmem:[%s5688_s8 + $0x10] sm:$0xff] }
 0x12c   :  { %3704 = vmatmul.msk.f32.gmra.mxu1 %vm39_vm2, %v594_v35  ;;  %1016 = vmatpush.msrb.mxu3 %v3745_v57  ;;  %v896_v34 = vld [vmem:[#allocation2 + $0x8e] sm:$0xff] }
 0x12d   :  { %1097 = vperm.xlu0 %4042, %v38_v28   ;;  %1077 = vperm.xlu1 %4043, %v34_v32   ;;  %v900_v57 = vld [vmem:[#allocation2 + $0xae] sm:$0xff] }
 0x12e   :  { %1017 = vmatpush.msrb.mxu3 %v3744_v4  ;;  %v3756_v4 = vld [vmem:[%s5689_s4 + $0x98] sm:$0xff] }
 0x12f   :  { %1163 = vmatpush.msrb.mxu1 %v3756_v4 }
 0x130   :  { %v305_v38 = vpop.f32.mrf.mxu0 }
 0x131   :  { %v338_v39 = vmax.f32 %v305_v38, 0.0 }
 0x132   :  { %v516_v41 = vld [vmem:[#allocation2 + $0xc9] sm:$0xff] }
 0x133   :  { %374 = vst.msk [vmem:[#allocation2 + $0xd2] sm:$0xff] %vm39_vm2, %v338_v39  ;;  %3683 = vmatmul.msk.f32.vlgmr.msrb.gmra.mxu2 %vm39_vm2, %v378_v40  ;;  %3693 = vmatmul.msk.f32.gmra.mxu3 %vm39_vm2, %v516_v41  ;;  %v379_v45 = vld [vmem:[#allocation2 + $0xc8] sm:$0xff]  ;;  %v897_v39 = vld [vmem:[#allocation2 + $0x96] sm:$0xff] }
 0x134   :  { %3705 = vmatmul.msk.f32.gmra.mxu1 %vm39_vm2, %v595_v42  ;;  %v819_v55 = vld [vmem:[#allocation2 + $0xc5] sm:$0xff]  ;;  %940 = vmatpush.msrb.mxu2 %v3736_v56 }
 0x135   :  { %v971_v27 = vld [vmem:[#allocation2 + $0xc6] sm:$0xff]  ;;  %1082 = vperm.xlu1 %4043, %v35_v36   ;;  %v3766_v36 = vld [vmem:[%s5689_s4 + $0x70] sm:$0xff] }
 0x136   :  { %941 = vmatpush.msrb.mxu2 %v3735_v3  ;;  %v36_v56 = vld [vmem:[%s5688_s8 + $0x20] sm:$0xff] }
 0x137   :  { %1087 = vperm.xlu2 %4044, %v36_v56  }
 0x138   :  { %v308_v43 = vpop.f32.mrf.mxu0 }
 0x139   :  { %v339_v44 = vmax.f32 %v308_v43, 0.0 }
 0x13a   :  { %v517_v46 = vld [vmem:[#allocation2 + $0xd1] sm:$0xff] }
 0x13b   :  { %375 = vst.msk [vmem:[#allocation2 + $0xda] sm:$0xff] %vm39_vm2, %v339_v44  ;;  %3684 = vmatmul.msk.f32.gmra.mxu2 %vm39_vm2, %v379_v45  ;;  %3694 = vmatmul.msk.f32.gmra.mxu3 %vm39_vm2, %v517_v46  ;;  %v380_v51 = vld [vmem:[#allocation2 + $0xd0] sm:$0xff]  ;;  %v898_v44 = vld [vmem:[#allocation2 + $0x9e] sm:$0xff] }
 0x13c   :  { %3706 = vmatmul.msk.f32.gmra.mxu1 %vm39_vm2, %v596_v47  ;;  %v820_v60 = vld [vmem:[#allocation2 + $0xcd] sm:$0xff] }
 0x13d   :  { %v972_v31 = vld [vmem:[#allocation2 + $0xce] sm:$0xff] }
 0x140   :  { %v311_v48 = vpop.f32.mrf.mxu0 }
 0x141   :  { %v340_v49 = vmax.f32 %v311_v48, 0.0 }
 0x142   :  { %v518_v52 = vld [vmem:[#allocation2 + $0xd9] sm:$0xff] }
 0x143   :  { %376 = vst.msk [vmem:[#allocation2 + $0xe2] sm:$0xff] %vm39_vm2, %v340_v49  ;;  %3685 = vmatmul.msk.f32.gmra.mxu2 %vm39_vm2, %v380_v51  ;;  %3695 = vmatmul.msk.f32.gmra.mxu3 %vm39_vm2, %v518_v52  ;;  %v381_v53 = vld [vmem:[#allocation2 + $0xd8] sm:$0xff]  ;;  %v3792_v49 = vld [vmem:[%s5689_s4 + $0xf0] sm:$0xff] }
 0x144   :  { %3707 = vmatmul.msk.f32.gmra.mxu1 %vm39_vm2, %v597_v50  ;;  %v821_v63 = vld [vmem:[#allocation2 + $0xd5] sm:$0xff]  ;;  %v899_v50 = vld [vmem:[#allocation2 + $0xa6] sm:$0xff]  ;;  %1443 = vmatpush.msrb.mxu0 %v3792_v49 }
 0x145   :  { %v973_v35 = vld [vmem:[#allocation2 + $0xd6] sm:$0xff]  ;;  %v976_v51 = vld [vmem:[#allocation2 + $0xee] sm:$0xff] }
 0x14a   :  { %v519_v54 = vld [vmem:[#allocation2 + $0xe1] sm:$0xff]  ;;  %v520_v58 = vld [vmem:[#allocation2 + $0xe9] sm:$0xff] }
 0x14b   :  { %3686 = vmatmul.msk.f32.gmra.mxu2 %vm39_vm2, %v381_v53  ;;  %3696 = vmatmul.msk.f32.gmra.mxu3 %vm39_vm2, %v519_v54  ;;  %v382_v59 = vld [vmem:[#allocation2 + $0xe0] sm:$0xff]  ;;  %v383_v62 = vld [vmem:[#allocation2 + $0xe8] sm:$0xff] }
 0x14c   :  { %3728 = vmatmul.msk.f32.vlgmr.msra.gmra.mxu1 %vm39_vm2, %v819_v55  ;;  %v822_v2 = vld [vmem:[#allocation2 + $0xdd] sm:$0xff]  ;;  %v823_v7 = vld [vmem:[#allocation2 + $0xe5] sm:$0xff]  ;;  %v977_v55 = vld [vmem:[#allocation2 + $0xf6] sm:$0x3] }
 0x14d   :  { %v974_v40 = vld [vmem:[#allocation2 + $0xde] sm:$0xff]  ;;  %v975_v45 = vld [vmem:[#allocation2 + $0xe6] sm:$0xff] }
 0x153   :  { %3687 = vmatmul.msk.f32.gmra.mxu2 %vm39_vm2, %v382_v59  ;;  %3697 = vmatmul.msk.f32.gmra.mxu3 %vm39_vm2, %v520_v58 }
 0x154   :  { %3729 = vmatmul.msk.f32.gmra.mxu1 %vm39_vm2, %v820_v60  ;;  %v901_v60 = vld [vmem:[#allocation2 + $0xb6] sm:$0x3] }
 0x15b   :  { %3688 = vmatmul.msk.f32.gmra.mxu2 %vm39_vm2, %v383_v62  ;;  %3698 = vmatmul.msk.f32.gmra.mxu3 %vm39_vm2, %v521_v61  ;;  %v37_v62 = vld [vmem:[%s5688_s8 + $0x28] sm:$0xff] }
 0x15c   :  { %3730 = vmatmul.msk.f32.gmra.mxu1 %vm39_vm2, %v821_v63  ;;  %1092 = vperm.xlu2 %4044, %v37_v62  }
 0x163   :  { %3689 = vmatmul.msk.f32.gmra.mxu2 %vm39_vm2, %v384_v0  ;;  %3719 = vmatmul.msk.f32.vlgmr.msra.gmra.mxu3 %vm39_vm2, %v743_v1 }
 0x164   :  { %3731 = vmatmul.msk.f32.gmra.mxu1 %vm39_vm2, %v822_v2 }
 0x16b   :  { %3710 = vmatmul.msk.f32.vlgmr.msra.gmra.mxu2 %vm39_vm2, %v667_v5  ;;  %3720 = vmatmul.msk.f32.gmra.mxu3 %vm39_vm2, %v744_v6 }
 0x16c   :  { %3732 = vmatmul.msk.f32.gmra.mxu1 %vm39_vm2, %v823_v7 }
 0x173   :  { %3711 = vmatmul.msk.f32.gmra.mxu2 %vm39_vm2, %v668_v8  ;;  %3721 = vmatmul.msk.f32.gmra.mxu3 %vm39_vm2, %v745_v9 }
 0x174   :  { %3733 = vmatmul.msk.f32.gmra.mxu1 %vm39_vm2, %v824_v10 }
 0x178   :  { %v4604_v41 = vpop.f32.mrf.mxu1 }
 0x17b   :  { %3712 = vmatmul.msk.f32.gmra.mxu2 %vm39_vm2, %v669_v11  ;;  %3722 = vmatmul.msk.f32.gmra.mxu3 %vm39_vm2, %v746_v12  ;;  %v3755_v11 = vld [vmem:[%s5689_s4 + $0x90] sm:$0xff]  ;;  %v3791_v12 = vld [vmem:[%s5689_s4 + $0xe8] sm:$0xff] }
 0x17c   :  { %3734 = vmatmul.msk.f32.gmra.mxu1 %vm39_vm2, %v825_v15  ;;  %1444 = vmatpush.msrb.mxu0 %v3791_v12 }
 0x17d   :  { %1164 = vmatpush.msrb.mxu1 %v3755_v11 }
 0x180   :  { %v4614_v46 = vpop.f32.mrf.mxu1 }
 0x183   :  { %3713 = vmatmul.msk.f32.gmra.mxu2 %vm39_vm2, %v670_v13  ;;  %3723 = vmatmul.msk.f32.gmra.mxu3 %vm39_vm2, %v747_v14 }
 0x188   :  { %v4629_v54 = vpop.f32.mrf.mxu1 }
 0x18b   :  { %3714 = vmatmul.msk.f32.gmra.mxu2 %vm39_vm2, %v671_v16  ;;  %3724 = vmatmul.msk.f32.gmra.mxu3 %vm39_vm2, %v748_v18  ;;  %v3754_v16 = vld [vmem:[%s5689_s4 + $0x88] sm:$0xff] }
 0x18c   :  { %1165 = vmatpush.msrb.mxu1 %v3754_v16 }
 0x190   :  { %v639_v61 = vpop.f32.mrf.mxu1 }
 0x193   :  { %3715 = vmatmul.msk.f32.gmra.mxu2 %vm39_vm2, %v672_v23  ;;  %3725 = vmatmul.msk.f32.gmra.mxu3 %vm39_vm2, %v749_v22 }
 0x196   :  { %v4579_v25 = vpop.f32.mrf.mxu2 }
 0x198   :  { %v4648_v1 = vpop.f32.mrf.mxu1 }
 0x19b   :  { %3716 = vmatmul.msk.f32.gmra.mxu2 %vm39_vm2, %v673_v26  ;;  %3746 = vmatmul.msk.f32.vlgmr.msrb.gmra.mxu3 %vm39_vm2, %v971_v27  ;;  %v3753_v27 = vld [vmem:[%s5689_s4 + $0x80] sm:$0xff] }
 0x19c   :  { %1166 = vmatpush.msrb.mxu1 %v3753_v27 }
 0x19e   :  { %v4586_v29 = vpop.f32.mrf.mxu2 }
 0x1a0   :  { %v4657_v5 = vpop.f32.mrf.mxu1 }
 0x1a3   :  { %3737 = vmatmul.msk.f32.vlgmr.msrb.gmra.mxu2 %vm39_vm2, %v895_v30  ;;  %3747 = vmatmul.msk.f32.gmra.mxu3 %vm39_vm2, %v972_v31 }
 0x1a6   :  { %v4593_v33 = vpop.f32.mrf.mxu2 }
 0x1a9   :  { %v4663_v10 = vpop.f32.mrf.mxu1 }
 0x1ab   :  { %3738 = vmatmul.msk.f32.gmra.mxu2 %vm39_vm2, %v896_v34  ;;  %3748 = vmatmul.msk.f32.gmra.mxu3 %vm39_vm2, %v973_v35  ;;  %v3771_v34 = vld [vmem:[%s5689_s4 + $0xb8] sm:$0xff] }
 0x1ac   :  { %v3767_v35 = vld [vmem:[%s5689_s4 + $0x78] sm:$0xff]  ;;  %1267 = vmatpush.msra.mxu2 %v3771_v34 }
 0x1ad   :  { %1326 = vmatpush.msra.mxu3 %v3767_v35 }
 0x1ae   :  { %v4600_v37 = vpop.f32.mrf.mxu2  ;;  %v4602_v38 = vpop.f32.mrf.mxu3 }
 0x1af   :  { %1327 = vmatpush.msra.mxu3 %v3766_v36 }
 0x1b1   :  { %v4673_v15 = vpop.f32.mrf.mxu1 }
 0x1b3   :  { %3739 = vmatmul.msk.f32.gmra.mxu2 %vm39_vm2, %v897_v39  ;;  %3749 = vmatmul.msk.f32.gmra.mxu3 %vm39_vm2, %v974_v40 }
 0x1b6   :  { %v4608_v42 = vpop.f32.mrf.mxu2  ;;  %v4610_v43 = vpop.f32.mrf.mxu3 }
 0x1b7   :  { %v495_v28 = vadd.f32 %v4608_v42, %v4604_v41 }
 0x1b9   :  { %v4682_v20 = vpop.f32.mrf.mxu1  ;;  %v584_v17 = vadd.f32 %v4602_v38, %v495_v28 }
 0x1bb   :  { %3740 = vmatmul.msk.f32.gmra.mxu2 %vm39_vm2, %v898_v44  ;;  %3750 = vmatmul.msk.f32.gmra.mxu3 %vm39_vm2, %v975_v45  ;;  %v660_v40 = vadd.f32 %v639_v61, %v584_v17  ;;  %v3765_v45 = vld [vmem:[%s5689_s4 + $0x68] sm:$0xff] }
 0x1bc   :  { %1328 = vmatpush.msra.mxu3 %v3765_v45 }
 0x1be   :  { %v4616_v47 = vpop.f32.mrf.mxu2  ;;  %v4618_v48 = vpop.f32.mrf.mxu3 }
 0x1bf   :  { %v498_v39 = vadd.f32 %v4616_v47, %v4614_v46  ;;  %v3789_v46 = vld [vmem:[%s5689_s4 + $0x38] sm:$0xff]  ;;  %v3770_v47 = vld [vmem:[%s5689_s4 + $0xb0] sm:$0xff] }
 0x1c0   :  { %1501 = vmatpush.msra.mxu1 %v3789_v46  ;;  %1268 = vmatpush.msra.mxu2 %v3770_v47 }
 0x1c1   :  { %v4702_v23 = vpop.f32.mrf.mxu1  ;;  %v585_v44 = vadd.f32 %v4610_v43, %v498_v39 }
 0x1c3   :  { %3741 = vmatmul.msk.f32.gmra.mxu2 %vm39_vm2, %v899_v50  ;;  %3751 = vmatmul.msk.f32.gmra.mxu3 %vm39_vm2, %v976_v51  ;;  %v3764_v51 = vld [vmem:[%s5689_s4 + $0x60] sm:$0xff] }
 0x1c4   :  { %1329 = vmatpush.msra.mxu3 %v3764_v51 }
 0x1c6   :  { %v4625_v52 = vpop.f32.mrf.mxu2  ;;  %v4627_v53 = vpop.f32.mrf.mxu3 }
 0x1c7   :  { %v501_v43 = vadd.f32 %v4625_v52, %v4629_v54 }
 0x1c9   :  { %v867_v32 = vpop.f32.mrf.mxu1  ;;  %v586_v62 = vadd.f32 %v4618_v48, %v501_v43  ;;  %v3768_v48 = vld [vmem:[%s5689_s4 + $0xa0] sm:$0xff] }
 0x1cb   :  { %3742 = vmatmul.msk.f32.gmra.mxu2 %vm39_vm2, %v900_v57  ;;  %3752 = vmatmul.msk.f32.gmra.mxu3 %vm39_vm2, %v977_v55  ;;  %v661_v55 = vadd.f32 %v4648_v1, %v585_v44  ;;  %v3790_v1 = vld [vmem:[%s5689_s4 + $0xe0] sm:$0xff] }
 0x1cc   :  { %1445 = vmatpush.msrb.mxu0 %v3790_v1  ;;  %v1570_v1 = vld [vmem:[%s5689_s4 + $0x18] sm:$0xff] }
 0x1cd   :  { %1675 = vmatpush.msrb.mxu3 %v1570_v1 }
 0x1ce   :  { %v4636_v58 = vpop.f32.mrf.mxu2  ;;  %v4638_v59 = vpop.f32.mrf.mxu3 }
 0x1cf   :  { %v504_v11 = vadd.f32 %v4636_v58, %v4579_v25 }
 0x1d1   :  { %v870_v49 = vpop.f32.mrf.mxu1  ;;  %v587_v34 = vadd.f32 %v4627_v53, %v504_v11 }
 0x1d3   :  { %3743 = vmatmul.msk.f32.gmra.mxu2 %vm39_vm2, %v901_v60 }
 0x1d6   :  { %v4644_v63 = vpop.f32.mrf.mxu2  ;;  %v4646_v0 = vpop.f32.mrf.mxu3 }
 0x1d9   :  { %v873_v12 = vpop.f32.mrf.mxu1 }
 0x1de   :  { %v4650_v2 = vpop.f32.mrf.mxu2  ;;  %v4652_v3 = vpop.f32.mrf.mxu3 }
 0x1e6   :  { %v4659_v6 = vpop.f32.mrf.mxu2  ;;  %v791_v7 = vpop.f32.mrf.mxu3 }
 0x1ee   :  { %v715_v8 = vpop.f32.mrf.mxu2  ;;  %v4661_v9 = vpop.f32.mrf.mxu3 }
 0x1ef   :  { %v736_v38 = vadd.f32 %v715_v8, %v660_v40  ;;  %v3769_v8 = vld [vmem:[%s5689_s4 + $0xa8] sm:$0xff]  ;;  %v663_v40 = vadd.f32 %v4663_v10, %v587_v34 }
 0x1f0   :  { %1269 = vmatpush.msra.mxu2 %v3769_v8 }
 0x1f1   :  { %v812_v50 = vadd.f32 %v791_v7, %v736_v38  ;;  %v4751_v7 = vld [vmem:[%s5690_s3] ss:$0 sm:$0xff]  ;;  %v876_v38 = vpop.f32.mrf.mxu1 }
 0x1f2   :  { %1270 = vmatpush.msra.mxu2 %v3768_v48  ;;  %v513_v48 = vadd.f32 %v4659_v6, %v4600_v37 }
 0x1f3   :  { %v888_v57 = vadd.f32 %v867_v32, %v812_v50 }
 0x1f4   :  { %v590_v34 = vadd.f32 %v4652_v3, %v513_v48 }
 0x1f6   :  { %v718_v13 = vpop.f32.mrf.mxu2  ;;  %v4671_v14 = vpop.f32.mrf.mxu3 }
 0x1f7   :  { %v737_v56 = vadd.f32 %v718_v13, %v661_v55  ;;  %v662_v13 = vadd.f32 %v4657_v5, %v586_v62  ;;  %v3788_v5 = vld [vmem:[%s5689_s4 + $0x30] sm:$0xff]  ;;  %v4801_v55 = vpop.permute.xlu1 %1077 }
 0x1f8   :  { %1502 = vmatpush.msra.mxu1 %v3788_v5  ;;  %v666_v5 = vadd.f32 %v4702_v23, %v590_v34 }
 0x1f9   :  { %v813_v52 = vadd.f32 %v4661_v9, %v737_v56  ;;  %v4767_v9 = vpop.permute.xlu0 %1067 }
 0x1fb   :  { %v889_v17 = vadd.f32 %v870_v49, %v813_v52  ;;  %v879_v52 = vpop.f32.mrf.mxu1 }
 0x1fe   :  { %v4678_v18 = vpop.f32.mrf.mxu2  ;;  %v4680_v19 = vpop.f32.mrf.mxu3 }
 0x1ff   :  { %v738_v27 = vadd.f32 %v4678_v18, %v662_v13  ;;  %v507_v18 = vadd.f32 %v4644_v63, %v4586_v29 }
 0x201   :  { %v814_v25 = vadd.f32 %v4671_v14, %v738_v27  ;;  %v4782_v45 = vpop.permute.xlu0 %1072  ;;  %v588_v50 = vadd.f32 %v4638_v59, %v507_v18  ;;  %v3787_v59 = vld [vmem:[%s5689_s4 + $0x28] sm:$0xff]  ;;  %v4866_v18 = vpop.permute.xlu2 %1087 }
 0x202   :  { %1503 = vmatpush.msra.mxu1 %v3787_v59 }
 0x203   :  { %v890_v14 = vadd.f32 %v873_v12, %v814_v25  ;;  %v882_v3 = vpop.f32.mrf.mxu1  ;;  %v1568_v25 = vld [vmem:[%s5689_s4 + $0x8] sm:$0xff] }
 0x206   :  { %v4688_v21 = vpop.f32.mrf.mxu2  ;;  %v4690_v22 = vpop.f32.mrf.mxu3 }
 0x20b   :  { %v885_v59 = vpop.f32.mrf.mxu1 }
 0x20e   :  { %v4704_v24 = vpop.f32.mrf.mxu2  ;;  %v4706_v26 = vpop.f32.mrf.mxu3 }
 0x216   :  { %v4713_v30 = vpop.f32.mrf.mxu2  ;;  %v4715_v31 = vpop.f32.mrf.mxu3 }
 0x21e   :  { %v4729_v41 = vpop.f32.mrf.mxu2  ;;  %v1019_v42 = vpop.f32.mrf.mxu3 }
 0x226   :  { %v943_v60 = vpop.f32.mrf.mxu2  ;;  %v1022_v61 = vpop.f32.mrf.mxu3 }
 0x227   :  { %v964_v4 = vadd.f32 %v943_v60, %v888_v57 }
 0x229   :  { %v1040_v54 = vadd.f32 %v1019_v42, %v964_v4  ;;  %v739_v42 = vadd.f32 %v4688_v21, %v663_v40  ;;  %v510_v21 = vadd.f32 %v4650_v2, %v4593_v33 }
 0x22b   :  { %v1051_v16 = vadd.f32 %v4751_v7, %v1040_v54  ;;  %v815_v29 = vadd.f32 %v4680_v19, %v739_v42  ;;  %v664_v19 = vadd.f32 %v4673_v15, %v588_v50  ;;  %v589_v62 = vadd.f32 %v4646_v0, %v510_v21  ;;  %v3786_v0 = vld [vmem:[%s5689_s4 + $0x20] sm:$0xff]  ;;  %v3828_v21 = vld [vmem:[%s5689_s4 + $0xd0] sm:$0xff] }
 0x22c   :  { %1504 = vmatpush.msra.mxu1 %v3786_v0 }
 0x22d   :  { %v1058_v28 = vmax.f32 %v1051_v16, 0.0  ;;  %v740_v56 = vadd.f32 %v4704_v24, %v664_v19  ;;  %v891_v60 = vadd.f32 %v876_v38, %v815_v29  ;;  %v665_v11 = vadd.f32 %v4682_v20, %v589_v62 }
 0x22e   :  { %v946_v32 = vpop.f32.mrf.mxu2  ;;  %v1025_v39 = vpop.f32.mrf.mxu3  ;;  %v742_v38 = vadd.f32 %v4729_v41, %v666_v5  ;;  %v5005_v5 = vld [vmem:[%s5691_s5] ss:$0 sm:$0xff] }
 0x22f   :  { %v1100_v35 = vmul.f32 %v4767_v9, %v1058_v28  ;;  %v965_v36 = vadd.f32 %v946_v32, %v889_v17  ;;  %v816_v15 = vadd.f32 %v4690_v22, %v740_v56  ;;  %v3811_v22 = vld [vmem:[%s5689_s4 + $0x58] sm:$0xff]  ;;  %v741_v16 = vadd.f32 %v4713_v30, %v665_v11  ;;  %v4836_v17 = vpop.permute.xlu1 %1082  ;;  %v3827_v56 = vld [vmem:[%s5689_s4 + $0xc8] sm:$0xff]  ;;  %v3839_v11 = vld [vmem:[%s5689_s4 + $0x110] sm:$0xff] }
 0x230   :  { %1616 = vmatpush.msrb.mxu2 %v3811_v22 }
 0x231   :  { %1107 = vst.msk [vmem:[#allocation3] sm:$0xff] %vm73_vm9, %v1100_v35  ;;  %v1041_v58 = vadd.f32 %v1022_v61, %v965_v36  ;;  %v892_v28 = vadd.f32 %v879_v52, %v816_v15 }
 0x233   :  { %v1052_v53 = vadd.f32 %v4751_v7, %v1041_v58  ;;  %v3829_v58 = vld [vmem:[%s5689_s4 + $0xd8] sm:$0xff] }
 0x234   :  { %1746 = vmatpush.msra.mxu0 %v3829_v58 }
 0x235   :  { %v1059_v44 = vmax.f32 %v1052_v53, 0.0  ;;  %v1567_v53 = vld [vmem:[%s5689_s4] sm:$0xff] }
 0x236   :  { %v949_v49 = vpop.f32.mrf.mxu2  ;;  %v1028_v10 = vpop.f32.mrf.mxu3  ;;  %1747 = vmatpush.msra.mxu0 %v3828_v21 }
 0x237   :  { %v1101_v51 = vmul.f32 %v4782_v45, %v1059_v44  ;;  %v966_v46 = vadd.f32 %v949_v49, %v890_v14 }
 0x238   :  { %v4786_v47 = vld [vmem:[#allocation3] sm:$0xff]  ;;  %1748 = vmatpush.msra.mxu0 %v3827_v56 }
 0x239   :  { %1108 = vst.msk [vmem:[#allocation3 + $0x8] sm:$0xff] %vm73_vm9, %v1101_v51  ;;  %v1042_v63 = vadd.f32 %v1025_v39, %v966_v46  ;;  %3757 = vmatmul.msk.f32.vlgmr.msrb.gmra.mxu1 %vm73_vm9, %v4786_v47  ;;  %3779 = vmatmul.msk.f32.vlgmr.msra.gmra.mxu3 %vm73_vm9, %v4786_v47  ;;  %v817_v39 = vadd.f32 %v4706_v26, %v741_v16  ;;  %v1569_v26 = vld [vmem:[%s5689_s4 + $0x10] sm:$0xff]  ;;  %v4924_v16 = vpop.permute.xlu0 %1097 }
 0x23a   :  { %1676 = vmatpush.msrb.mxu3 %v1569_v26 }
 0x23b   :  { %v1053_v43 = vadd.f32 %v4751_v7, %v1042_v63  ;;  %v893_v44 = vadd.f32 %v882_v3, %v817_v39  ;;  %v818_v63 = vadd.f32 %v4715_v31, %v742_v38  ;;  %v3840_v31 = vld [vmem:[%s5689_s4 + $0x118] sm:$0xff]  ;;  %v1403_v3 = vld [vmem:[#allocation3 + $0x35] sm:$0x3] }
 0x23c   :  { %1677 = vmatpush.msrb.mxu3 %v1568_v25  ;;  %1824 = vmatpush.msrb.mxu1 %v3840_v31  ;;  %v3837_v25 = vld [vmem:[%s5689_s4 + $0x100] sm:$0xff] }
 0x23d   :  { %v1060_v57 = vmax.f32 %v1053_v43, 0.0  ;;  %v3809_v43 = vld [vmem:[%s5689_s4 + $0x48] sm:$0xff] }
 0x23e   :  { %v952_v61 = vpop.f32.mrf.mxu2  ;;  %v1031_v13 = vpop.f32.mrf.mxu3  ;;  %1678 = vmatpush.msrb.mxu3 %v1567_v53  ;;  %1825 = vmatpush.msrb.mxu1 %v3839_v11  ;;  %v5010_v53 = vld [vmem:[%s5692_s6 + $0x18] sm:$0xff] }
 0x23f   :  { %v1102_v4 = vmul.f32 %v4801_v55, %v1060_v57  ;;  %v967_v8 = vadd.f32 %v952_v61, %v891_v60  ;;  %v3808_v57 = vld [vmem:[%s5689_s4 + $0x40] sm:$0xff]  ;;  %v894_v60 = vadd.f32 %v885_v59, %v818_v63  ;;  %v4909_v61 = vpop.permute.xlu2 %1092 }
 0x240   :  { %v4806_v54 = vld [vmem:[#allocation3 + $0x8] sm:$0xff] }
 0x241   :  { %v4808_v33 = vld [vmem:[#allocation3 + $0x1] sm:$0xff]  ;;  %1109 = vst.msk [vmem:[#allocation3 + $0x10] sm:$0xff] %vm73_vm9, %v1102_v4  ;;  %v1043_v24 = vadd.f32 %v1028_v10, %v967_v8  ;;  %3758 = vmatmul.msk.f32.gmra.mxu1 %vm73_vm9, %v4806_v54  ;;  %3780 = vmatmul.msk.f32.gmra.mxu3 %vm73_vm9, %v4806_v54  ;;  %v3810_v10 = vld [vmem:[%s5689_s4 + $0x50] sm:$0xff] }
 0x242   :  { %v4810_v2 = vld [vmem:[#allocation3 + $0x5] sm:$0xff]  ;;  %3772 = vmatmul.msk.f32.vlgmr.msra.gmra.mxu2 %vm73_vm9, %v4808_v33 }
 0x243   :  { %3794 = vmatmul.msk.f32.vlgmr.msrb.gmra.mxu0 %vm73_vm9, %v4810_v2  ;;  %v1054_v12 = vadd.f32 %v4751_v7, %v1043_v24  ;;  %1617 = vmatpush.msrb.mxu2 %v3810_v10  ;;  %v3826_v4 = vld [vmem:[%s5689_s4 + $0xc0] sm:$0xff] }
 0x244   :  { %1749 = vmatpush.msra.mxu0 %v3826_v4 }
 0x245   :  { %v1061_v27 = vmax.f32 %v1054_v12, 0.0  ;;  %1618 = vmatpush.msrb.mxu2 %v3809_v43 }
 0x246   :  { %v955_v32 = vpop.f32.mrf.mxu2  ;;  %v1034_v14 = vpop.f32.mrf.mxu3 }
 0x247   :  { %v1103_v35 = vmul.f32 %v4836_v17, %v1061_v27  ;;  %v968_v37 = vadd.f32 %v955_v32, %v892_v28  ;;  %1619 = vmatpush.msrb.mxu2 %v3808_v57 }
 0x248   :  { %v4840_v6 = vld [vmem:[#allocation3 + $0x10] sm:$0xff] }
 0x249   :  { %v4842_v20 = vld [vmem:[#allocation3 + $0x9] sm:$0xff]  ;;  %1110 = vst.msk [vmem:[#allocation3 + $0x18] sm:$0xff] %vm73_vm9, %v1103_v35  ;;  %v1044_v30 = vadd.f32 %v1031_v13, %v968_v37  ;;  %3759 = vmatmul.msk.f32.gmra.mxu1 %vm73_vm9, %v4840_v6  ;;  %3781 = vmatmul.msk.f32.gmra.mxu3 %vm73_vm9, %v4840_v6 }
 0x24a   :  { %v4844_v36 = vld [vmem:[#allocation3 + $0xd] sm:$0xff]  ;;  %3773 = vmatmul.msk.f32.gmra.mxu2 %vm73_vm9, %v4842_v20 }
 0x24b   :  { %3795 = vmatmul.msk.f32.gmra.mxu0 %vm73_vm9, %v4844_v36  ;;  %v1055_v40 = vadd.f32 %v4751_v7, %v1044_v30  ;;  %v3838_v30 = vld [vmem:[%s5689_s4 + $0x108] sm:$0xff]  ;;  %1944 = vmatpush.msra.mxu2 %v5010_v53 }
 0x24c   :  { %1826 = vmatpush.msrb.mxu1 %v3838_v30  ;;  %v1780_v58 = vld [vmem:[#allocation3 + $0xe] sm:$0xff] }
 0x24d   :  { %v1062_v42 = vmax.f32 %v1055_v40, 0.0 }
 0x24e   :  { %v958_v49 = vpop.f32.mrf.mxu2  ;;  %v1037_v52 = vpop.f32.mrf.mxu3  ;;  %1827 = vmatpush.msrb.mxu1 %v3837_v25 }
 0x24f   :  { %v1104_v50 = vmul.f32 %v4866_v18, %v1062_v42  ;;  %v969_v23 = vadd.f32 %v958_v49, %v893_v44 }
 0x250   :  { %v4874_v51 = vld [vmem:[#allocation3 + $0x18] sm:$0xff] }
 0x251   :  { %v4876_v46 = vld [vmem:[#allocation3 + $0x11] sm:$0xff]  ;;  %1111 = vst.msk [vmem:[#allocation3 + $0x20] sm:$0xff] %vm73_vm9, %v1104_v50  ;;  %v1045_v41 = vadd.f32 %v1034_v14, %v969_v23  ;;  %3760 = vmatmul.msk.f32.gmra.mxu1 %vm73_vm9, %v4874_v51  ;;  %3782 = vmatmul.msk.f32.gmra.mxu3 %vm73_vm9, %v4874_v51 }
 0x252   :  { %v4878_v29 = vld [vmem:[#allocation3 + $0x15] sm:$0xff]  ;;  %3774 = vmatmul.msk.f32.gmra.mxu2 %vm73_vm9, %v4876_v46 }
 0x253   :  { %3796 = vmatmul.msk.f32.gmra.mxu0 %vm73_vm9, %v4878_v29  ;;  %v1056_v19 = vadd.f32 %v4751_v7, %v1045_v41  ;;  %v1781_v42 = vld [vmem:[#allocation3 + $0x16] sm:$0xff]  ;;  %v5031_v41 = vld [vmem:[%s5691_s5] ss:$0 sm:$0xff] }
 0x254   :  { %v5020_v50 = vld [vmem:[%s5692_s6 + $0x10] sm:$0xff] }
 0x255   :  { %v1063_v62 = vmax.f32 %v1056_v19, 0.0  ;;  %1945 = vmatpush.msra.mxu2 %v5020_v50 }
 0x256   :  { %v961_v8 = vpop.f32.mrf.mxu2 }
 0x257   :  { %v1105_v15 = vmul.f32 %v4909_v61, %v1063_v62  ;;  %v970_v24 = vadd.f32 %v961_v8, %v894_v60 }
 0x258   :  { %v1118_v0 = vld [vmem:[#allocation3 + $0x20] sm:$0xff] }
 0x259   :  { %v1225_v22 = vld [vmem:[#allocation3 + $0x19] sm:$0xff]  ;;  %1112 = vst.msk [vmem:[#allocation3 + $0x28] sm:$0xff] %vm73_vm9, %v1105_v15  ;;  %v1046_v48 = vadd.f32 %v1037_v52, %v970_v24  ;;  %3761 = vmatmul.msk.f32.gmra.mxu1 %vm73_vm9, %v1118_v0  ;;  %3783 = vmatmul.msk.f32.gmra.mxu3 %vm73_vm9, %v1118_v0 }
 0x25a   :  { %v1400_v1 = vld [vmem:[#allocation3 + $0x1d] sm:$0xff]  ;;  %3775 = vmatmul.msk.f32.gmra.mxu2 %vm73_vm9, %v1225_v22 }
 0x25b   :  { %3797 = vmatmul.msk.f32.gmra.mxu0 %vm73_vm9, %v1400_v1  ;;  %v1057_v12 = vadd.f32 %v4751_v7, %v1046_v48 }
 0x25d   :  { %v1064_v13 = vmax.f32 %v1057_v12, 0.0 }
 0x25f   :  { %v1106_v27 = vmul.f32 %v4924_v16, %v1064_v13 }
 0x260   :  { %v1119_v28 = vld [vmem:[#allocation3 + $0x28] sm:$0xff] }
 0x261   :  { %v1226_v32 = vld [vmem:[#allocation3 + $0x21] sm:$0xff]  ;;  %1113 = vst.msk [vmem:[#allocation3 + $0x30] sm:$0x3] %vm81_vm10, %v1106_v27  ;;  %3762 = vmatmul.msk.f32.gmra.mxu1 %vm73_vm9, %v1119_v28  ;;  %3784 = vmatmul.msk.f32.gmra.mxu3 %vm73_vm9, %v1119_v28 }
 0x262   :  { %v1401_v34 = vld [vmem:[#allocation3 + $0x25] sm:$0xff]  ;;  %3776 = vmatmul.msk.f32.gmra.mxu2 %vm73_vm9, %v1226_v32 }
 0x263   :  { %3798 = vmatmul.msk.f32.gmra.mxu0 %vm73_vm9, %v1401_v34  ;;  %v1783_v57 = vld [vmem:[#allocation3 + $0x26] sm:$0xff] }
 0x268   :  { %v1120_v7 = vld [vmem:[#allocation3 + $0x30] sm:$0x3] }
 0x269   :  { %v1227_v35 = vld [vmem:[#allocation3 + $0x29] sm:$0xff]  ;;  %3763 = vmatmul.msk.f32.gmra.mxu1 %vm73_vm9, %v1120_v7  ;;  %v1228_v26 = vld [vmem:[#allocation3 + $0x31] sm:$0x3] }
 0x26a   :  { %v1216_v37 = vld [vmem:[#allocation3 + $0x30] sm:$0x3]  ;;  %3777 = vmatmul.msk.f32.gmra.mxu2 %vm73_vm9, %v1227_v35 }
 0x26b   :  { %v1402_v39 = vld [vmem:[#allocation3 + $0x2d] sm:$0xff]  ;;  %3785 = vmatmul.msk.f32.gmra.mxu3 %vm73_vm9, %v1216_v37 }
 0x26c   :  { %3799 = vmatmul.msk.f32.gmra.mxu0 %vm73_vm9, %v1402_v39  ;;  %v1784_v11 = vld [vmem:[#allocation3 + $0x2e] sm:$0xff] }
 0x271   :  { %3801 = vmatmul.msk.f32.vlgmr.msra.gmra.mxu1 %vm73_vm9, %v4786_v47 }
 0x272   :  { %3778 = vmatmul.msk.f32.gmra.mxu2 %vm73_vm9, %v1228_v26 }
 0x273   :  { %3819 = vmatmul.msk.f32.vlgmr.msrb.gmra.mxu3 %vm73_vm9, %v4786_v47  ;;  %v1391_v47 = vld [vmem:[#allocation3 + $0x30] sm:$0x3] }
 0x274   :  { %3800 = vmatmul.msk.f32.gmra.mxu0 %vm73_vm9, %v1403_v3  ;;  %v1785_v3 = vld [vmem:[#allocation3 + $0x36] sm:$0x3] }
 0x279   :  { %3802 = vmatmul.msk.f32.gmra.mxu1 %vm73_vm9, %v4806_v54 }
 0x27a   :  { %3812 = vmatmul.msk.f32.vlgmr.msrb.gmra.mxu2 %vm73_vm9, %v4808_v33  ;;  %v4987_v33 = vld [vmem:[%s5692_s6 + $0x8] sm:$0xff] }
 0x27b   :  { %3820 = vmatmul.msk.f32.gmra.mxu3 %vm73_vm9, %v4806_v54  ;;  %v1566_v54 = vld [vmem:[#allocation3 + $0x30] sm:$0x3]  ;;  %2383 = vmatpush.msrb.mxu2 %v5010_v53 }
 0x27c   :  { %3830 = vmatmul.msk.f32.vlgmr.msra.gmra.mxu0 %vm73_vm9, %v4810_v2  ;;  %2003 = vmatpush.msra.mxu3 %v4987_v33  ;;  %v1707_v2 = vld [vmem:[#allocation3 + $0x35] sm:$0x3] }
 0x27d   :  { %2384 = vmatpush.msrb.mxu2 %v5020_v50 }
 0x281   :  { %3803 = vmatmul.msk.f32.gmra.mxu1 %vm73_vm9, %v4840_v6 }
 0x282   :  { %3813 = vmatmul.msk.f32.gmra.mxu2 %vm73_vm9, %v4842_v20  ;;  %v1779_v20 = vld [vmem:[#allocation3 + $0x6] sm:$0xff] }
 0x283   :  { %3821 = vmatmul.msk.f32.gmra.mxu3 %vm73_vm9, %v4840_v6  ;;  %v1577_v6 = vld [vmem:[#allocation3 + $0x31] sm:$0x3] }
 0x284   :  { %3831 = vmatmul.msk.f32.gmra.mxu0 %vm73_vm9, %v4844_v36  ;;  %v4996_v36 = vld [vmem:[%s5692_s6] sm:$0xff] }
 0x285   :  { %2004 = vmatpush.msra.mxu3 %v4996_v36 }
 0x287   :  { %2442 = vmatpush.msrb.mxu3 %v4987_v33 }
 0x289   :  { %3804 = vmatmul.msk.f32.gmra.mxu1 %vm73_vm9, %v4874_v51  ;;  %2443 = vmatpush.msrb.mxu3 %v4996_v36 }
 0x28a   :  { %3814 = vmatmul.msk.f32.gmra.mxu2 %vm73_vm9, %v4876_v46  ;;  %v1782_v46 = vld [vmem:[#allocation3 + $0x1e] sm:$0xff] }
 0x28b   :  { %3822 = vmatmul.msk.f32.gmra.mxu3 %vm73_vm9, %v4874_v51 }
 0x28c   :  { %3832 = vmatmul.msk.f32.gmra.mxu0 %vm73_vm9, %v4878_v29 }
 0x291   :  { %3805 = vmatmul.msk.f32.gmra.mxu1 %vm73_vm9, %v1118_v0 }
 0x292   :  { %3815 = vmatmul.msk.f32.gmra.mxu2 %vm73_vm9, %v1225_v22 }
 0x293   :  { %3823 = vmatmul.msk.f32.gmra.mxu3 %vm73_vm9, %v1118_v0 }
 0x294   :  { %3833 = vmatmul.msk.f32.gmra.mxu0 %vm73_vm9, %v1400_v1 }
 0x299   :  { %3806 = vmatmul.msk.f32.gmra.mxu1 %vm73_vm9, %v1119_v28 }
 0x29a   :  { %3816 = vmatmul.msk.f32.gmra.mxu2 %vm73_vm9, %v1226_v32 }
 0x29b   :  { %3824 = vmatmul.msk.f32.gmra.mxu3 %vm73_vm9, %v1119_v28 }
 0x29c   :  { %3834 = vmatmul.msk.f32.gmra.mxu0 %vm73_vm9, %v1401_v34 }
 0x2a1   :  { %3807 = vmatmul.msk.f32.gmra.mxu1 %vm73_vm9, %v1391_v47 }
 0x2a2   :  { %3817 = vmatmul.msk.f32.gmra.mxu2 %vm73_vm9, %v1227_v35 }
 0x2a3   :  { %3825 = vmatmul.msk.f32.gmra.mxu3 %vm73_vm9, %v1566_v54 }
 0x2a4   :  { %3835 = vmatmul.msk.f32.gmra.mxu0 %vm73_vm9, %v1402_v39 }
 0x2a9   :  { %3841 = vmatmul.msk.f32.vlgmr.msrb.gmra.mxu1 %vm73_vm9, %v1779_v20 }
 0x2aa   :  { %3818 = vmatmul.msk.f32.gmra.mxu2 %vm73_vm9, %v1577_v6 }
 0x2ac   :  { %3836 = vmatmul.msk.f32.gmra.mxu0 %vm73_vm9, %v1707_v2 }
 0x2b1   :  { %3842 = vmatmul.msk.f32.gmra.mxu1 %vm73_vm9, %v1780_v58 }
 0x2b6   :  { %v1168_v40 = vpop.f32.mrf.mxu1 }
 0x2b7   :  { %v1169_v38 = vadd.f32 %v5005_v5, %v1168_v40 }
 0x2b9   :  { %v1189_v44 = vmax.f32 %v1169_v38, 0.0  ;;  %3843 = vmatmul.msk.f32.gmra.mxu1 %vm73_vm9, %v1781_v42 }
 0x2bb   :  { %v1196_v14 = vmul.f32 %v1189_v44, %v4767_v9 }
 0x2bc   :  { %v1331_v49 = vpop.f32.mrf.mxu3 }
 0x2bd   :  { %1203 = vst.msk [vmem:[#allocation4] sm:$0xff] %vm39_vm2, %v1196_v14 }
 0x2be   :  { %v1171_v23 = vpop.f32.mrf.mxu1 }
 0x2bf   :  { %v1172_v51 = vadd.f32 %v5005_v5, %v1171_v23  ;;  %v5080_v23 = vld [vmem:[%s5692_s6 + $0x28] sm:$0xff] }
 0x2c0   :  { %v5048_v27 = vpop.f32.mrf.mxu0  ;;  %2072 = vmatpush.msrb.mxu0 %v5080_v23 }
 0x2c1   :  { %v1190_v29 = vmax.f32 %v1172_v51, 0.0  ;;  %3844 = vmatmul.msk.f32.gmra.mxu1 %vm73_vm9, %v1782_v46 }
 0x2c3   :  { %v1197_v63 = vmul.f32 %v1190_v29, %v4782_v45 }
 0x2c4   :  { %v1890_v31 = vld [vmem:[#allocation4] sm:$0xff]  ;;  %v1334_v21 = vpop.f32.mrf.mxu3 }
 0x2c5   :  { %v1272_v59 = vpop.f32.mrf.mxu2  ;;  %1204 = vst.msk [vmem:[#allocation4 + $0x8] sm:$0xff] %vm39_vm2, %v1197_v63  ;;  %3857 = vmatmul.msk.f32.vlgmr.msra.gmra.mxu3 %vm39_vm2, %v1890_v31 }
 0x2c6   :  { %v1332_v10 = vadd.f32 %v1331_v49, %v1272_v59  ;;  %v1174_v19 = vpop.f32.mrf.mxu1  ;;  %2880 = vmatpush.msra.mxu3 %v4987_v33 }
 0x2c7   :  { %v1175_v56 = vadd.f32 %v5005_v5, %v1174_v19 }
 0x2c8   :  { %v1356_v43 = vadd.f32 %v5031_v41, %v1332_v10  ;;  %2881 = vmatpush.msra.mxu3 %v4996_v36  ;;  %v5066_v20 = vpop.f32.mrf.mxu0 }
 0x2c9   :  { %v1191_v62 = vmax.f32 %v1175_v56, 0.0  ;;  %3845 = vmatmul.msk.f32.gmra.mxu1 %vm73_vm9, %v1783_v57 }
 0x2ca   :  { %v1363_v60 = vmax.f32 %v1356_v43, 0.0 }
 0x2cb   :  { %v1198_v8 = vmul.f32 %v1191_v62, %v4801_v55  ;;  %v5097_v62 = vld [vmem:[%s5692_s6 + $0x20] sm:$0xff] }
 0x2cc   :  { %v1370_v4 = vmul.f32 %v1363_v60, %v4767_v9  ;;  %v1891_v15 = vld [vmem:[#allocation4 + $0x8] sm:$0xff]  ;;  %v1337_v0 = vpop.f32.mrf.mxu3  ;;  %2073 = vmatpush.msrb.mxu0 %v5097_v62 }
 0x2cd   :  { %v1275_v52 = vpop.f32.mrf.mxu2  ;;  %3858 = vmatmul.msk.f32.gmra.mxu3 %vm39_vm2, %v1891_v15  ;;  %1205 = vst.msk [vmem:[#allocation4 + $0x10] sm:$0xff] %vm39_vm2, %v1198_v8 }
 0x2ce   :  { %1378 = vst.msk [vmem:[#allocation4 + $0x40] sm:$0xff] %vm39_vm2, %v1370_v4  ;;  %v1335_v24 = vadd.f32 %v1334_v21, %v1275_v52  ;;  %v1177_v22 = vpop.f32.mrf.mxu1  ;;  %v5102_v4 = vld [vmem:[%s5692_s6 + $0x38] sm:$0xff]  ;;  %2510 = vmatpush.msra.mxu0 %v5080_v23 }
 0x2cf   :  { %v1178_v48 = vadd.f32 %v5005_v5, %v1177_v22  ;;  %2148 = vmatpush.msra.mxu1 %v5102_v4 }
 0x2d0   :  { %v1357_v1 = vadd.f32 %v5031_v41, %v1335_v24  ;;  %v1453_v43 = vpop.f32.mrf.mxu0  ;;  %2511 = vmatpush.msra.mxu0 %v5097_v62 }
 0x2d1   :  { %v1192_v13 = vmax.f32 %v1178_v48, 0.0  ;;  %3846 = vmatmul.msk.f32.gmra.mxu1 %vm73_vm9, %v1784_v11  ;;  %v5118_v11 = vld [vmem:[%s5691_s5] ss:$0 sm:$0xff] }
 0x2d2   :  { %v1364_v12 = vmax.f32 %v1357_v1, 0.0 }
 0x2d3   :  { %v1199_v32 = vmul.f32 %v1192_v13, %v4836_v17 }
 0x2d4   :  { %v1371_v28 = vmul.f32 %v1364_v12, %v4782_v45  ;;  %v1892_v37 = vld [vmem:[#allocation4 + $0x10] sm:$0xff]  ;;  %v1340_v39 = vpop.f32.mrf.mxu3 }
 0x2d5   :  { %v1278_v34 = vpop.f32.mrf.mxu2  ;;  %v5052_v7 = vld [vmem:[#allocation4 + $0x40] sm:$0xff]  ;;  %1206 = vst.msk [vmem:[#allocation4 + $0x18] sm:$0xff] %vm39_vm2, %v1199_v32  ;;  %3859 = vmatmul.msk.f32.gmra.mxu3 %vm39_vm2, %v1892_v37 }
 0x2d6   :  { %1379 = vst.msk [vmem:[#allocation4 + $0x48] sm:$0xff] %vm39_vm2, %v1371_v28  ;;  %v1338_v35 = vadd.f32 %v1337_v0, %v1278_v34  ;;  %3850 = vmatmul.msk.f32.vlgmr.msra.gmra.mxu2 %vm39_vm2, %v5052_v7  ;;  %v1180_v30 = vpop.f32.mrf.mxu1 }
 0x2d7   :  { %2821 = vmatpush.msra.mxu2 %v5010_v53  ;;  %v1181_v25 = vadd.f32 %v5005_v5, %v1180_v30 }
 0x2d8   :  { %v1358_v26 = vadd.f32 %v5031_v41, %v1338_v35  ;;  %v1456_v32 = vpop.f32.mrf.mxu0 }
 0x2d9   :  { %2822 = vmatpush.msra.mxu2 %v5020_v50  ;;  %v1193_v54 = vmax.f32 %v1181_v25, 0.0  ;;  %3847 = vmatmul.msk.f32.gmra.mxu1 %vm73_vm9, %v1785_v3 }
 0x2da   :  { %v1365_v47 = vmax.f32 %v1358_v26, 0.0 }
 0x2db   :  { %v1200_v6 = vmul.f32 %v1193_v54, %v4866_v18 }
 0x2dc   :  { %v1372_v2 = vmul.f32 %v1365_v47, %v4801_v55  ;;  %v1893_v42 = vld [vmem:[#allocation4 + $0x18] sm:$0xff]  ;;  %v1343_v51 = vpop.f32.mrf.mxu3 }
 0x2dd   :  { %v1281_v58 = vpop.f32.mrf.mxu2  ;;  %v5068_v40 = vld [vmem:[#allocation4 + $0x48] sm:$0xff]  ;;  %1207 = vst.msk [vmem:[#allocation4 + $0x20] sm:$0xff] %vm39_vm2, %v1200_v6  ;;  %3860 = vmatmul.msk.f32.gmra.mxu3 %vm39_vm2, %v1893_v42 }
 0x2de   :  { %1380 = vst.msk [vmem:[#allocation4 + $0x50] sm:$0xff] %vm39_vm2, %v1372_v2  ;;  %v1341_v38 = vadd.f32 %v1340_v39, %v1281_v58  ;;  %3851 = vmatmul.msk.f32.gmra.mxu2 %vm39_vm2, %v5068_v40  ;;  %v1183_v44 = vpop.f32.mrf.mxu1 }
 0x2df   :  { %v1184_v49 = vadd.f32 %v5005_v5, %v1183_v44 }
 0x2e0   :  { %v1359_v14 = vadd.f32 %v5031_v41, %v1341_v38  ;;  %v1459_v42 = vpop.f32.mrf.mxu0 }
 0x2e1   :  { %v1194_v29 = vmax.f32 %v1184_v49, 0.0 }
 0x2e2   :  { %v1366_v46 = vmax.f32 %v1359_v14, 0.0 }
 0x2e3   :  { %v1201_v59 = vmul.f32 %v1194_v29, %v4909_v61  ;;  %v5154_v29 = vld [vmem:[%s5692_s6 + $0x30] sm:$0xff] }
 0x2e4   :  { %v1373_v63 = vmul.f32 %v1366_v46, %v4836_v17  ;;  %v1894_v19 = vld [vmem:[#allocation4 + $0x20] sm:$0xff]  ;;  %v1346_v15 = vpop.f32.mrf.mxu3  ;;  %2149 = vmatpush.msra.mxu1 %v5154_v29 }
 0x2e5   :  { %v1284_v31 = vpop.f32.mrf.mxu2  ;;  %v5085_v10 = vld [vmem:[#allocation4 + $0x50] sm:$0xff]  ;;  %1208 = vst.msk [vmem:[#allocation4 + $0x28] sm:$0xff] %vm39_vm2, %v1201_v59  ;;  %3861 = vmatmul.msk.f32.gmra.mxu3 %vm39_vm2, %v1894_v19 }
 0x2e6   :  { %1381 = vst.msk [vmem:[#allocation4 + $0x58] sm:$0xff] %vm39_vm2, %v1373_v63  ;;  %v1344_v21 = vadd.f32 %v1343_v51, %v1284_v31  ;;  %3852 = vmatmul.msk.f32.gmra.mxu2 %vm39_vm2, %v5085_v10  ;;  %v1186_v56 = vpop.f32.mrf.mxu1  ;;  %2585 = vmatpush.msrb.mxu1 %v5102_v4 }
 0x2e7   :  { %v1187_v60 = vadd.f32 %v5005_v5, %v1186_v56 }
 0x2e8   :  { %v1360_v57 = vadd.f32 %v5031_v41, %v1344_v21  ;;  %2586 = vmatpush.msrb.mxu1 %v5154_v29 }
 0x2e9   :  { %v1195_v52 = vmax.f32 %v1187_v60, 0.0  ;;  %v1462_v59 = vpop.f32.mrf.mxu0 }
 0x2ea   :  { %v1367_v8 = vmax.f32 %v1360_v57, 0.0  ;;  %v2339_v57 = vld [vmem:[#allocation4 + $0x1] sm:$0xff] }
 0x2eb   :  { %v1202_v24 = vmul.f32 %v1195_v52, %v4924_v16 }
 0x2ec   :  { %v1374_v5 = vmul.f32 %v1367_v8, %v4866_v18  ;;  %v1895_v48 = vld [vmem:[#allocation4 + $0x28] sm:$0xff] }
 0x2ed   :  { %v1287_v0 = vpop.f32.mrf.mxu2  ;;  %v5110_v22 = vld [vmem:[#allocation4 + $0x58] sm:$0xff]  ;;  %1209 = vst.msk [vmem:[#allocation4 + $0x30] sm:$0x3] %vm47_vm3, %v1202_v24  ;;  %3862 = vmatmul.msk.f32.gmra.mxu3 %vm39_vm2, %v1895_v48  ;;  %v2340_v48 = vld [vmem:[#allocation4 + $0x9] sm:$0xff] }
 0x2ee   :  { %1382 = vst.msk [vmem:[#allocation4 + $0x60] sm:$0xff] %vm39_vm2, %v1374_v5  ;;  %v1347_v1 = vadd.f32 %v1346_v15, %v1287_v0  ;;  %3853 = vmatmul.msk.f32.gmra.mxu2 %vm39_vm2, %v5110_v22  ;;  %v1506_v12 = vpop.f32.mrf.mxu1  ;;  %v1349_v30 = vpop.f32.mrf.mxu3 }
 0x2ef   :  { %v1507_v28 = vadd.f32 %v1506_v12, %v5048_v27 }
 0x2f0   :  { %v1361_v13 = vadd.f32 %v5031_v41, %v1347_v1 }
 0x2f1   :  { %v1531_v35 = vadd.f32 %v5118_v11, %v1507_v28  ;;  %v1465_v8 = vpop.f32.mrf.mxu0 }
 0x2f2   :  { %v1368_v34 = vmax.f32 %v1361_v13, 0.0 }
 0x2f3   :  { %v1538_v39 = vmax.f32 %v1531_v35, 0.0  ;;  %v2341_v35 = vld [vmem:[#allocation4 + $0x11] sm:$0xff] }
 0x2f4   :  { %v1375_v37 = vmul.f32 %v1368_v34, %v4909_v61  ;;  %v1896_v27 = vld [vmem:[#allocation4 + $0x30] sm:$0x3] }
 0x2f5   :  { %v1290_v3 = vpop.f32.mrf.mxu2  ;;  %v5126_v26 = vld [vmem:[#allocation4 + $0x60] sm:$0xff]  ;;  %v1545_v25 = vmul.f32 %v1538_v39, %v4767_v9  ;;  %3863 = vmatmul.msk.f32.gmra.mxu3 %vm39_vm2, %v1896_v27 }
 0x2f6   :  { %1383 = vst.msk [vmem:[#allocation4 + $0x68] sm:$0xff] %vm39_vm2, %v1375_v37  ;;  %v1350_v47 = vadd.f32 %v1349_v30, %v1290_v3  ;;  %3854 = vmatmul.msk.f32.gmra.mxu2 %vm39_vm2, %v5126_v26  ;;  %v1509_v54 = vpop.f32.mrf.mxu1  ;;  %v1680_v1 = vpop.f32.mrf.mxu3 }
 0x2f7   :  { %1553 = vst.msk [vmem:[#allocation4 + $0x80] sm:$0xff] %vm39_vm2, %v1545_v25  ;;  %v1510_v6 = vadd.f32 %v1509_v54, %v5066_v20 }
 0x2f8   :  { %v1362_v2 = vadd.f32 %v5031_v41, %v1350_v47 }
 0x2f9   :  { %v1532_v38 = vadd.f32 %v5118_v11, %v1510_v6 }
 0x2fa   :  { %v1369_v58 = vmax.f32 %v1362_v2, 0.0  ;;  %v2342_v2 = vld [vmem:[#allocation4 + $0x19] sm:$0xff] }
 0x2fb   :  { %v1539_v14 = vmax.f32 %v1532_v38, 0.0 }
 0x2fc   :  { %v1376_v44 = vmul.f32 %v1369_v58, %v4924_v16  ;;  %v5211_v58 = vld [vmem:[%s5691_s5] ss:$0 sm:$0xff] }
 0x2fd   :  { %v5138_v49 = vld [vmem:[#allocation4 + $0x68] sm:$0xff]  ;;  %v1546_v51 = vmul.f32 %v1539_v14, %v4782_v45  ;;  %3898 = vmatmul.msk.f32.vlgmr.msrb.gmra.mxu3 %vm39_vm2, %v5052_v7  ;;  %v1621_v24 = vpop.f32.mrf.mxu2 }
 0x2fe   :  { %1384 = vst.msk [vmem:[#allocation4 + $0x70] sm:$0x3] %vm47_vm3, %v1376_v44  ;;  %3855 = vmatmul.msk.f32.gmra.mxu2 %vm39_vm2, %v5138_v49  ;;  %v1512_v41 = vpop.f32.mrf.mxu1  ;;  %v5146_v20 = vld [vmem:[#allocation4 + $0x80] sm:$0xff]  ;;  %3318 = vmatpush.msrb.mxu3 %v4987_v33  ;;  %v1681_v25 = vadd.f32 %v1680_v1, %v1621_v24 }
 0x2ff   :  { %1554 = vst.msk [vmem:[#allocation4 + $0x88] sm:$0xff] %vm39_vm2, %v1546_v51  ;;  %v1513_v46 = vadd.f32 %v1512_v41, %v1453_v43  ;;  %3866 = vmatmul.msk.f32.vlgmr.msrb.gmra.mxu0 %vm39_vm2, %v5146_v20 }
 0x300   :  { %2948 = vmatpush.msrb.mxu0 %v5080_v23  ;;  %3319 = vmatpush.msrb.mxu3 %v4996_v36 }
 0x301   :  { %v1533_v7 = vadd.f32 %v5118_v11, %v1513_v46 }
 0x302   :  { %2949 = vmatpush.msrb.mxu0 %v5097_v62 }
 0x303   :  { %v1540_v63 = vmax.f32 %v1533_v7, 0.0 }
 0x305   :  { %v1905_v31 = vld [vmem:[#allocation4 + $0x70] sm:$0x3]  ;;  %v1547_v21 = vmul.f32 %v1540_v63, %v4801_v55  ;;  %3899 = vmatmul.msk.f32.gmra.mxu3 %vm39_vm2, %v5068_v40  ;;  %v1624_v34 = vpop.f32.mrf.mxu2  ;;  %v2343_v63 = vld [vmem:[#allocation4 + $0x21] sm:$0xff] }
 0x306   :  { %3856 = vmatmul.msk.f32.gmra.mxu2 %vm39_vm2, %v1905_v31  ;;  %v1515_v33 = vpop.f32.mrf.mxu1  ;;  %v5168_v19 = vld [vmem:[#allocation4 + $0x88] sm:$0xff] }
 0x307   :  { %1555 = vst.msk [vmem:[#allocation4 + $0x90] sm:$0xff] %vm39_vm2, %v1547_v21  ;;  %v1516_v36 = vadd.f32 %v1515_v33, %v1456_v32  ;;  %3867 = vmatmul.msk.f32.gmra.mxu0 %vm39_vm2, %v5168_v19 }
 0x309   :  { %v1534_v43 = vadd.f32 %v5118_v11, %v1516_v36 }
 0x30b   :  { %v1541_v56 = vmax.f32 %v1534_v43, 0.0 }
 0x30d   :  { %v1548_v60 = vmul.f32 %v1541_v56, %v4836_v17  ;;  %3900 = vmatmul.msk.f32.gmra.mxu3 %vm39_vm2, %v5085_v10  ;;  %v1627_v38 = vpop.f32.mrf.mxu2 }
 0x30e   :  { %3891 = vmatmul.msk.f32.vlgmr.msrb.gmra.mxu2 %vm39_vm2, %v2339_v57  ;;  %v1518_v40 = vpop.f32.mrf.mxu1  ;;  %v5178_v52 = vld [vmem:[#allocation4 + $0x90] sm:$0xff] }
 0x30f   :  { %3259 = vmatpush.msrb.mxu2 %v5010_v53  ;;  %1556 = vst.msk [vmem:[#allocation4 + $0x98] sm:$0xff] %vm39_vm2, %v1548_v60  ;;  %v1519_v15 = vadd.f32 %v1518_v40, %v1459_v42  ;;  %3868 = vmatmul.msk.f32.gmra.mxu0 %vm39_vm2, %v5178_v52 }
 0x311   :  { %3260 = vmatpush.msrb.mxu2 %v5020_v50  ;;  %v1535_v5 = vadd.f32 %v5118_v11, %v1519_v15  ;;  %v1751_v50 = vpop.f32.mrf.mxu0 }
 0x313   :  { %v1542_v0 = vmax.f32 %v1535_v5, 0.0 }
 0x315   :  { %v1549_v10 = vmul.f32 %v1542_v0, %v4866_v18  ;;  %3901 = vmatmul.msk.f32.gmra.mxu3 %vm39_vm2, %v5110_v22  ;;  %v1683_v22 = vpop.f32.mrf.mxu3  ;;  %v1630_v43 = vpop.f32.mrf.mxu2 }
 0x316   :  { %3892 = vmatmul.msk.f32.gmra.mxu2 %vm39_vm2, %v2340_v48  ;;  %v1521_v53 = vpop.f32.mrf.mxu1  ;;  %v5190_v12 = vld [vmem:[#allocation4 + $0x98] sm:$0xff]  ;;  %v1684_v51 = vadd.f32 %v1683_v22, %v1624_v34 }
 0x317   :  { %1557 = vst.msk [vmem:[#allocation4 + $0xa0] sm:$0xff] %vm39_vm2, %v1549_v10  ;;  %v1522_v13 = vadd.f32 %v1521_v53, %v1462_v59  ;;  %3869 = vmatmul.msk.f32.gmra.mxu0 %vm39_vm2, %v5190_v12 }
 0x319   :  { %v1536_v28 = vadd.f32 %v5118_v11, %v1522_v13  ;;  %v1754_v27 = vpop.f32.mrf.mxu0  ;;  %v2345_v13 = vld [vmem:[#allocation4 + $0x31] sm:$0x3] }
 0x31a   :  { %v1773_v31 = vadd.f32 %v1754_v27, %v1684_v51 }
 0x31b   :  { %v1543_v32 = vmax.f32 %v1536_v28, 0.0 }
 0x31d   :  { %v1550_v37 = vmul.f32 %v1543_v32, %v4909_v61  ;;  %3902 = vmatmul.msk.f32.gmra.mxu3 %vm39_vm2, %v5126_v26  ;;  %v1772_v26 = vadd.f32 %v1751_v50, %v1681_v25  ;;  %v1686_v14 = vpop.f32.mrf.mxu3 }
 0x31e   :  { %3893 = vmatmul.msk.f32.gmra.mxu2 %vm39_vm2, %v2341_v35  ;;  %v1524_v39 = vpop.f32.mrf.mxu1  ;;  %v5200_v30 = vld [vmem:[#allocation4 + $0xa0] sm:$0xff]  ;;  %v1687_v56 = vadd.f32 %v1686_v14, %v1627_v38 }
 0x31f   :  { %1558 = vst.msk [vmem:[#allocation4 + $0xa8] sm:$0xff] %vm39_vm2, %v1550_v37  ;;  %v1525_v3 = vadd.f32 %v1524_v39, %v1465_v8  ;;  %3870 = vmatmul.msk.f32.gmra.mxu0 %vm39_vm2, %v5200_v30 }
 0x321   :  { %v1537_v47 = vadd.f32 %v5118_v11, %v1525_v3  ;;  %v1757_v7 = vpop.f32.mrf.mxu0 }
 0x322   :  { %v1774_v15 = vadd.f32 %v1757_v7, %v1687_v56 }
 0x323   :  { %v1544_v54 = vmax.f32 %v1537_v47, 0.0 }
 0x325   :  { %v1551_v6 = vmul.f32 %v1544_v54, %v4924_v16  ;;  %3903 = vmatmul.msk.f32.gmra.mxu3 %vm39_vm2, %v5138_v49  ;;  %v2336_v49 = vld [vmem:[#allocation4 + $0x70] sm:$0x3]  ;;  %v1689_v60 = vpop.f32.mrf.mxu3 }
 0x326   :  { %3894 = vmatmul.msk.f32.gmra.mxu2 %vm39_vm2, %v2342_v2  ;;  %v1829_v42 = vpop.f32.mrf.mxu1  ;;  %v5215_v44 = vld [vmem:[#allocation4 + $0xa8] sm:$0xff] }
 0x327   :  { %1559 = vst.msk [vmem:[#allocation4 + $0xb0] sm:$0x3] %vm47_vm3, %v1551_v6  ;;  %v1850_v11 = vadd.f32 %v1829_v42, %v1772_v26  ;;  %3871 = vmatmul.msk.f32.gmra.mxu0 %vm39_vm2, %v5215_v44 }
 0x329   :  { %v1861_v41 = vadd.f32 %v5211_v58, %v1850_v11  ;;  %v1760_v5 = vpop.f32.mrf.mxu0 }
 0x32b   :  { %v1868_v46 = vmax.f32 %v1861_v41, 0.0 }
 0x32d   :  { %v1875_v59 = vmul.f32 %v1868_v46, %v4767_v9  ;;  %3904 = vmatmul.msk.f32.gmra.mxu3 %vm39_vm2, %v2336_v49  ;;  %v2344_v9 = vld [vmem:[#allocation4 + $0x29] sm:$0xff]  ;;  %v1692_v53 = vpop.f32.mrf.mxu3 }
 0x32e   :  { %3895 = vmatmul.msk.f32.gmra.mxu2 %vm39_vm2, %v2343_v63  ;;  %v1832_v21 = vpop.f32.mrf.mxu1  ;;  %v2033_v33 = vld [vmem:[#allocation4 + $0xb0] sm:$0x3] }
 0x32f   :  { %1883 = vst.msk [vmem:[#allocation4 + $0xc0] sm:$0xff] %vm39_vm2, %v1875_v59  ;;  %v1851_v36 = vadd.f32 %v1832_v21, %v1773_v31  ;;  %3872 = vmatmul.msk.f32.gmra.mxu0 %vm39_vm2, %v2033_v33 }
 0x331   :  { %v1862_v57 = vadd.f32 %v5211_v58, %v1851_v36  ;;  %v2774_v36 = vld [vmem:[#allocation4 + $0xb0] sm:$0x3] }
 0x333   :  { %v1869_v8 = vmax.f32 %v1862_v57, 0.0  ;;  %v2542_v57 = vld [vmem:[#allocation4 + $0x89] sm:$0xff] }
 0x335   :  { %v1876_v40 = vmul.f32 %v1869_v8, %v4782_v45  ;;  %3946 = vmatmul.msk.f32.vlgmr.msra.gmra.mxu3 %vm39_vm2, %v5146_v20  ;;  %v1690_v45 = vadd.f32 %v1689_v60, %v1630_v43  ;;  %v1633_v20 = vpop.f32.mrf.mxu2  ;;  %v1695_v3 = vpop.f32.mrf.mxu3  ;;  %v2904_v43 = vld [vmem:[#allocation4 + $0x5] sm:$0xff]  ;;  %v2905_v60 = vld [vmem:[#allocation4 + $0xd] sm:$0xff] }
 0x336   :  { %3896 = vmatmul.msk.f32.gmra.mxu2 %vm39_vm2, %v2344_v9  ;;  %v1835_v24 = vpop.f32.mrf.mxu1  ;;  %v5231_v0 = vld [vmem:[#allocation4 + $0xc0] sm:$0xff] }
 0x337   :  { %1884 = vst.msk [vmem:[#allocation4 + $0xc8] sm:$0xff] %vm39_vm2, %v1876_v40  ;;  %v1852_v1 = vadd.f32 %v1835_v24, %v1774_v15  ;;  %3875 = vmatmul.msk.f32.vlgmr.msra.gmra.mxu1 %vm39_vm2, %v5231_v0  ;;  %3907 = vmatmul.msk.f32.vlgmr.msra.gmra.mxu0 %vm39_vm2, %v5231_v0  ;;  %v1775_v28 = vadd.f32 %v1760_v5, %v1690_v45 }
 0x338   :  { %3023 = vmatpush.msra.mxu1 %v5102_v4  ;;  %3386 = vmatpush.msra.mxu0 %v5080_v23 }
 0x339   :  { %v1863_v48 = vadd.f32 %v5211_v58, %v1852_v1  ;;  %v2907_v1 = vld [vmem:[#allocation4 + $0x1d] sm:$0xff] }
 0x33a   :  { %3024 = vmatpush.msra.mxu1 %v5154_v29  ;;  %3387 = vmatpush.msra.mxu0 %v5097_v62  ;;  %v1763_v62 = vpop.f32.mrf.mxu0 }
 0x33b   :  { %v1870_v10 = vmax.f32 %v1863_v48, 0.0 }
 0x33d   :  { %v1877_v50 = vmul.f32 %v1870_v10, %v4801_v55  ;;  %3947 = vmatmul.msk.f32.gmra.mxu3 %vm39_vm2, %v5168_v19  ;;  %v1693_v55 = vadd.f32 %v1692_v53, %v1633_v20  ;;  %v1636_v22 = vpop.f32.mrf.mxu2  ;;  %v2545_v10 = vld [vmem:[#allocation4 + $0xa1] sm:$0xff] }
 0x33e   :  { %3897 = vmatmul.msk.f32.gmra.mxu2 %vm39_vm2, %v2345_v13  ;;  %v1838_v23 = vpop.f32.mrf.mxu1  ;;  %v5247_v32 = vld [vmem:[#allocation4 + $0xc8] sm:$0xff] }
 0x33f   :  { %1885 = vst.msk [vmem:[#allocation4 + $0xd0] sm:$0xff] %vm39_vm2, %v1877_v50  ;;  %v1853_v34 = vadd.f32 %v1838_v23, %v1775_v28  ;;  %3876 = vmatmul.msk.f32.gmra.mxu1 %vm39_vm2, %v5247_v32  ;;  %3908 = vmatmul.msk.f32.gmra.mxu0 %vm39_vm2, %v5247_v32  ;;  %v1776_v39 = vadd.f32 %v1763_v62, %v1693_v55  ;;  %v2908_v53 = vld [vmem:[#allocation4 + $0x25] sm:$0xff]  ;;  %v2909_v28 = vld [vmem:[#allocation4 + $0x2d] sm:$0xff] }
 0x340   :  { %v2546_v50 = vld [vmem:[#allocation4 + $0xa9] sm:$0xff]  ;;  %v2547_v55 = vld [vmem:[#allocation4 + $0xb1] sm:$0x3] }
 0x341   :  { %v1864_v35 = vadd.f32 %v5211_v58, %v1853_v34  ;;  %v2910_v34 = vld [vmem:[#allocation4 + $0x35] sm:$0x3] }
 0x342   :  { %v1766_v2 = vpop.f32.mrf.mxu0 }
 0x343   :  { %v1871_v37 = vmax.f32 %v1864_v35, 0.0 }
 0x345   :  { %v1878_v19 = vmul.f32 %v1871_v37, %v4836_v17  ;;  %3948 = vmatmul.msk.f32.gmra.mxu3 %vm39_vm2, %v5178_v52  ;;  %v1696_v17 = vadd.f32 %v1695_v3, %v1636_v22  ;;  %v1639_v38 = vpop.f32.mrf.mxu2 }
 0x346   :  { %3939 = vmatmul.msk.f32.vlgmr.msra.gmra.mxu2 %vm39_vm2, %v5231_v0  ;;  %v1841_v25 = vpop.f32.mrf.mxu1  ;;  %v5260_v47 = vld [vmem:[#allocation4 + $0xd0] sm:$0xff] }
 0x347   :  { %1886 = vst.msk [vmem:[#allocation4 + $0xd8] sm:$0xff] %vm39_vm2, %v1878_v19  ;;  %v1854_v27 = vadd.f32 %v1841_v25, %v1776_v39  ;;  %3877 = vmatmul.msk.f32.gmra.mxu1 %vm39_vm2, %v5260_v47  ;;  %3909 = vmatmul.msk.f32.gmra.mxu0 %vm39_vm2, %v5260_v47  ;;  %v1777_v52 = vadd.f32 %v1766_v2, %v1696_v17  ;;  %v2979_v19 = vld [vmem:[#allocation4 + $0x45] sm:$0xff] }
 0x349   :  { %v1865_v54 = vadd.f32 %v5211_v58, %v1854_v27  ;;  %v2980_v27 = vld [vmem:[#allocation4 + $0x4d] sm:$0xff] }
 0x34a   :  { %v1769_v46 = vpop.f32.mrf.mxu0 }
 0x34b   :  { %v1872_v6 = vmax.f32 %v1865_v54, 0.0 }
 0x34d   :  { %v1879_v26 = vmul.f32 %v1872_v6, %v4866_v18  ;;  %3949 = vmatmul.msk.f32.gmra.mxu3 %vm39_vm2, %v5190_v12  ;;  %v1698_v18 = vpop.f32.mrf.mxu3  ;;  %v5371_v6 = vld [vmem:[%s5693_s7] ss:$0 sm:$0xff] }
 0x34e   :  { %3940 = vmatmul.msk.f32.gmra.mxu2 %vm39_vm2, %v5247_v32  ;;  %v1844_v42 = vpop.f32.mrf.mxu1  ;;  %v5273_v11 = vld [vmem:[#allocation4 + $0xd8] sm:$0xff]  ;;  %v1699_v51 = vadd.f32 %v1698_v18, %v1639_v38 }
 0x34f   :  { %1887 = vst.msk [vmem:[#allocation4 + $0xe0] sm:$0xff] %vm39_vm2, %v1879_v26  ;;  %v1855_v14 = vadd.f32 %v1844_v42, %v1777_v52  ;;  %3878 = vmatmul.msk.f32.gmra.mxu1 %vm39_vm2, %v5273_v11  ;;  %3910 = vmatmul.msk.f32.gmra.mxu0 %vm39_vm2, %v5273_v11 }
 0x350   :  { %v1778_v63 = vadd.f32 %v1769_v46, %v1699_v51 }
 0x351   :  { %v1866_v41 = vadd.f32 %v5211_v58, %v1855_v14 }
 0x353   :  { %v1873_v7 = vmax.f32 %v1866_v41, 0.0 }
 0x355   :  { %v1880_v12 = vmul.f32 %v1873_v7, %v4909_v61  ;;  %3950 = vmatmul.msk.f32.gmra.mxu3 %vm39_vm2, %v5200_v30  ;;  %v2006_v9 = vpop.f32.mrf.mxu3 }
 0x356   :  { %3941 = vmatmul.msk.f32.gmra.mxu2 %vm39_vm2, %v5260_v47  ;;  %v1847_v59 = vpop.f32.mrf.mxu1  ;;  %v2107_v49 = vld [vmem:[#allocation4 + $0xe0] sm:$0xff] }
 0x357   :  { %1888 = vst.msk [vmem:[#allocation4 + $0xe8] sm:$0xff] %vm39_vm2, %v1880_v12  ;;  %v1856_v31 = vadd.f32 %v1847_v59, %v1778_v63  ;;  %3879 = vmatmul.msk.f32.gmra.mxu1 %vm39_vm2, %v2107_v49  ;;  %3911 = vmatmul.msk.f32.gmra.mxu0 %vm39_vm2, %v2107_v49  ;;  %v2982_v12 = vld [vmem:[#allocation4 + $0x5d] sm:$0xff] }
 0x359   :  { %v1867_v21 = vadd.f32 %v5211_v58, %v1856_v31  ;;  %v1947_v8 = vpop.f32.mrf.mxu2 }
 0x35a   :  { %v2007_v17 = vadd.f32 %v2006_v9, %v1947_v8 }
 0x35b   :  { %v1874_v33 = vmax.f32 %v1867_v21, 0.0 }
 0x35d   :  { %v1881_v61 = vmul.f32 %v1874_v33, %v4924_v16  ;;  %3951 = vmatmul.msk.f32.gmra.mxu3 %vm39_vm2, %v5215_v44  ;;  %v2541_v44 = vld [vmem:[#allocation4 + $0x81] sm:$0xff]  ;;  %v2009_v5 = vpop.f32.mrf.mxu3 }
 0x35e   :  { %3942 = vmatmul.msk.f32.gmra.mxu2 %vm39_vm2, %v5273_v11  ;;  %v2108_v30 = vld [vmem:[#allocation4 + $0xe8] sm:$0xff] }
 0x35f   :  { %1889 = vst.msk [vmem:[#allocation4 + $0xf0] sm:$0x3] %vm47_vm3, %v1881_v61  ;;  %3880 = vmatmul.msk.f32.gmra.mxu1 %vm39_vm2, %v2108_v30  ;;  %3912 = vmatmul.msk.f32.gmra.mxu0 %vm39_vm2, %v2108_v30 }
 0x361   :  { %v1950_v15 = vpop.f32.mrf.mxu2 }
 0x362   :  { %v2010_v18 = vadd.f32 %v2009_v5, %v1950_v15 }
 0x365   :  { %3952 = vmatmul.msk.f32.gmra.mxu3 %vm39_vm2, %v2774_v36  ;;  %v5326_v48 = vpop.f32.mrf.mxu3 }
 0x366   :  { %3943 = vmatmul.msk.f32.gmra.mxu2 %vm39_vm2, %v2107_v49  ;;  %v2109_v58 = vld [vmem:[#allocation4 + $0xf0] sm:$0x3] }
 0x367   :  { %v2472_v16 = vld [vmem:[#allocation4 + $0xf0] sm:$0x3]  ;;  %3881 = vmatmul.msk.f32.gmra.mxu1 %vm39_vm2, %v2109_v58 }
 0x368   :  { %3913 = vmatmul.msk.f32.gmra.mxu0 %vm39_vm2, %v2472_v16  ;;  %v2783_v56 = vld [vmem:[#allocation4 + $0xf0] sm:$0x3] }
 0x369   :  { %v5324_v45 = vpop.f32.mrf.mxu2  ;;  %v3212_v62 = vld [vmem:[#allocation4 + $0xf0] sm:$0x3] }
 0x36a   :  { %v2013_v33 = vadd.f32 %v5326_v48, %v5324_v45  ;;  %v2984_v48 = vld [vmem:[#allocation4 + $0x6d] sm:$0xff] }
 0x36d   :  { %3994 = vmatmul.msk.f32.vlgmr.msrb.gmra.mxu3 %vm39_vm2, %v5231_v0  ;;  %v2544_v0 = vld [vmem:[#allocation4 + $0x99] sm:$0xff]  ;;  %v5338_v23 = vpop.f32.mrf.mxu3 }
 0x36e   :  { %3944 = vmatmul.msk.f32.gmra.mxu2 %vm39_vm2, %v2108_v30 }
 0x36f   :  { %3916 = vmatmul.msk.f32.vlgmr.msrb.gmra.mxu1 %vm39_vm2, %v2541_v44 }
 0x370   :  { %3955 = vmatmul.msk.f32.vlgmr.msrb.gmra.mxu0 %vm39_vm2, %v2904_v43  ;;  %3461 = vmatpush.msrb.mxu1 %v5102_v4  ;;  %v2543_v4 = vld [vmem:[#allocation4 + $0x91] sm:$0xff] }
 0x371   :  { %v5334_v13 = vpop.f32.mrf.mxu2 }
 0x372   :  { %3462 = vmatpush.msrb.mxu1 %v5154_v29  ;;  %v2906_v29 = vld [vmem:[#allocation4 + $0x15] sm:$0xff] }
 0x375   :  { %3995 = vmatmul.msk.f32.gmra.mxu3 %vm39_vm2, %v5247_v32  ;;  %v5350_v37 = vpop.f32.mrf.mxu3 }
 0x376   :  { %3945 = vmatmul.msk.f32.gmra.mxu2 %vm39_vm2, %v2783_v56 }
 0x377   :  { %3917 = vmatmul.msk.f32.gmra.mxu1 %vm39_vm2, %v2542_v57 }
 0x378   :  { %3956 = vmatmul.msk.f32.gmra.mxu0 %vm39_vm2, %v2905_v60  ;;  %v2016_v60 = vadd.f32 %v5338_v23, %v5334_v13 }
 0x379   :  { %v5346_v35 = vpop.f32.mrf.mxu2 }
 0x37a   :  { %v2019_v13 = vadd.f32 %v5350_v37, %v5346_v35 }
 0x37c   :  { %v2075_v40 = vpop.f32.mrf.mxu0 }
 0x37d   :  { %3996 = vmatmul.msk.f32.gmra.mxu3 %vm39_vm2, %v5260_v47  ;;  %v5359_v3 = vpop.f32.mrf.mxu3  ;;  %v3221_v47 = vld [vmem:[#allocation4 + $0xb1] sm:$0x3]  ;;  %v2096_v54 = vadd.f32 %v2075_v40, %v2007_v17 }
 0x37e   :  { %3987 = vmatmul.msk.f32.vlgmr.msrb.gmra.mxu2 %vm39_vm2, %v2541_v44  ;;  %v2983_v44 = vld [vmem:[#allocation4 + $0x65] sm:$0xff] }
 0x37f   :  { %3918 = vmatmul.msk.f32.gmra.mxu1 %vm39_vm2, %v2543_v4 }
 0x380   :  { %3957 = vmatmul.msk.f32.gmra.mxu0 %vm39_vm2, %v2906_v29 }
 0x381   :  { %v5357_v39 = vpop.f32.mrf.mxu2 }
 0x384   :  { %v2078_v24 = vpop.f32.mrf.mxu0 }
 0x385   :  { %3997 = vmatmul.msk.f32.gmra.mxu3 %vm39_vm2, %v5273_v11  ;;  %v5373_v52 = vpop.f32.mrf.mxu3  ;;  %v2981_v11 = vld [vmem:[#allocation4 + $0x55] sm:$0xff]  ;;  %v2097_v41 = vadd.f32 %v2078_v24, %v2010_v18 }
 0x386   :  { %3988 = vmatmul.msk.f32.gmra.mxu2 %vm39_vm2, %v2542_v57 }
 0x387   :  { %3919 = vmatmul.msk.f32.gmra.mxu1 %vm39_vm2, %v2544_v0 }
 0x388   :  { %3958 = vmatmul.msk.f32.gmra.mxu0 %vm39_vm2, %v2907_v1 }
 0x389   :  { %v5366_v2 = vpop.f32.mrf.mxu2 }
 0x38c   :  { %v5328_v20 = vpop.f32.mrf.mxu0 }
 0x38d   :  { %3998 = vmatmul.msk.f32.gmra.mxu3 %vm39_vm2, %v2107_v49  ;;  %v5382_v59 = vpop.f32.mrf.mxu3  ;;  %v2098_v36 = vadd.f32 %v5328_v20, %v2013_v33 }
 0x38e   :  { %3989 = vmatmul.msk.f32.gmra.mxu2 %vm39_vm2, %v2543_v4 }
 0x38f   :  { %3920 = vmatmul.msk.f32.gmra.mxu1 %vm39_vm2, %v2545_v10 }
 0x390   :  { %3959 = vmatmul.msk.f32.gmra.mxu0 %vm39_vm2, %v2908_v53 }
 0x391   :  { %v5380_v7 = vpop.f32.mrf.mxu2 }
 0x394   :  { %v5340_v32 = vpop.f32.mrf.mxu0 }
 0x395   :  { %3999 = vmatmul.msk.f32.gmra.mxu3 %vm39_vm2, %v2108_v30  ;;  %v5399_v8 = vpop.f32.mrf.mxu3  ;;  %v2099_v15 = vadd.f32 %v5340_v32, %v2016_v60 }
 0x396   :  { %3990 = vmatmul.msk.f32.gmra.mxu2 %vm39_vm2, %v2544_v0 }
 0x397   :  { %3921 = vmatmul.msk.f32.gmra.mxu1 %vm39_vm2, %v2546_v50 }
 0x398   :  { %3960 = vmatmul.msk.f32.gmra.mxu0 %vm39_vm2, %v2909_v28 }
 0x399   :  { %v5392_v43 = vpop.f32.mrf.mxu2 }
 0x39c   :  { %v5352_v22 = vpop.f32.mrf.mxu0 }
 0x39d   :  { %4000 = vmatmul.msk.f32.gmra.mxu3 %vm39_vm2, %v3212_v62  ;;  %v2100_v62 = vadd.f32 %v5352_v22, %v2019_v13 }
 0x39e   :  { %3991 = vmatmul.msk.f32.gmra.mxu2 %vm39_vm2, %v2545_v10 }
 0x39f   :  { %3922 = vmatmul.msk.f32.gmra.mxu1 %vm39_vm2, %v2547_v55 }
 0x3a0   :  { %3961 = vmatmul.msk.f32.gmra.mxu0 %vm39_vm2, %v2910_v34 }
 0x3a1   :  { %v5409_v28 = vpop.f32.mrf.mxu2 }
 0x3a4   :  { %v5361_v25 = vpop.f32.mrf.mxu0 }
 0x3a6   :  { %3992 = vmatmul.msk.f32.gmra.mxu2 %vm39_vm2, %v2546_v50 }
 0x3a7   :  { %3964 = vmatmul.msk.f32.vlgmr.msra.gmra.mxu1 %vm39_vm2, %v2979_v19 }
 0x3a8   :  { %4003 = vmatmul.msk.f32.vlgmr.msra.gmra.mxu0 %vm39_vm2, %v2979_v19 }
 0x3ac   :  { %v5375_v38 = vpop.f32.mrf.mxu0 }
 0x3ae   :  { %3993 = vmatmul.msk.f32.gmra.mxu2 %vm39_vm2, %v3221_v47  ;;  %v5414_v47 = vpop.f32.mrf.mxu3 }
 0x3af   :  { %3965 = vmatmul.msk.f32.gmra.mxu1 %vm39_vm2, %v2980_v27 }
 0x3b0   :  { %4004 = vmatmul.msk.f32.gmra.mxu0 %vm39_vm2, %v2980_v27 }
 0x3b4   :  { %v2151_v26 = vpop.f32.mrf.mxu1  ;;  %v5384_v49 = vpop.f32.mrf.mxu0 }
 0x3b5   :  { %v2172_v42 = vadd.f32 %v2151_v26, %v2096_v54  ;;  %v2985_v26 = vld [vmem:[#allocation4 + $0x75] sm:$0x3] }
 0x3b7   :  { %v2183_v14 = vadd.f32 %v5371_v6, %v2172_v42  ;;  %3966 = vmatmul.msk.f32.gmra.mxu1 %vm39_vm2, %v2981_v11  ;;  %v3348_v42 = vld [vmem:[#allocation4 + $0x75] sm:$0x3] }
 0x3b8   :  { %4005 = vmatmul.msk.f32.gmra.mxu0 %vm39_vm2, %v2981_v11 }
 0x3b9   :  { %v3882_v51 = vmul.f32 -1.442695, %v2183_v14 }
 0x3bb   :  { %4054 = vpow2.f32 %v3882_v51 }
 0x3bc   :  { %v2154_v46 = vpop.f32.mrf.mxu1  ;;  %v5401_v9 = vpop.f32.mrf.mxu0 }
 0x3bd   :  { %v2173_v63 = vadd.f32 %v2154_v46, %v2097_v41  ;;  %v2022_v46 = vadd.f32 %v5359_v3, %v5357_v39  ;;  %v5434_v3 = vpop.f32.mrf.mxu3 }
 0x3bf   :  { %v2184_v31 = vadd.f32 %v5371_v6, %v2173_v63  ;;  %3967 = vmatmul.msk.f32.gmra.mxu1 %vm39_vm2, %v2982_v12  ;;  %v2101_v33 = vadd.f32 %v5361_v25, %v2022_v46 }
 0x3c0   :  { %4006 = vmatmul.msk.f32.gmra.mxu0 %vm39_vm2, %v2982_v12 }
 0x3c1   :  { %v4055_v21 = vpop.eup %4054  ;;  %v3883_v61 = vmul.f32 -1.442695, %v2184_v31 }
 0x3c2   :  { %v2211_v30 = vadd.f32 1.0, %v4055_v21 }
 0x3c3   :  { %4056 = vpow2.f32 %v3883_v61 }
 0x3c4   :  { %4058 = vrcp.f32 %v2211_v30  ;;  %v2157_v58 = vpop.f32.mrf.mxu1  ;;  %v2229_v45 = vand.u32 2147483648, %v2211_v30  ;;  %v2227_v10 = vand.u32 2147483647, %v2211_v30  ;;  %vm2223_vm12 = vweird.f32 %v2211_v30  ;;  %v5416_v54 = vpop.f32.mrf.mxu0 }
 0x3c5   :  { %v2174_v16 = vadd.f32 %v2157_v58, %v2098_v36  ;;  %v5430_v36 = vpop.f32.mrf.mxu2 }
 0x3c6   :  { %v2230_v55 = vor.u32 1.1754944e-38, %v2229_v45  ;;  %vm2228_vm14 = vcmp.eq.f32.partialorder %v2227_v10, 8.507059e+37 }
 0x3c7   :  { %v2185_v56 = vadd.f32 %v5371_v6, %v2174_v16  ;;  %3968 = vmatmul.msk.f32.gmra.mxu1 %vm39_vm2, %v2983_v44 }
 0x3c8   :  { %4007 = vmatmul.msk.f32.gmra.mxu0 %vm39_vm2, %v2983_v44 }
 0x3c9   :  { %v4057_v57 = vpop.eup %4056  ;;  %v3884_v40 = vmul.f32 -1.442695, %v2185_v56 }
 0x3ca   :  { %v4059_v4 = vpop.eup %4058  ;;  %v2212_v29 = vadd.f32 1.0, %v4057_v57 }
 0x3cb   :  { %v2219_v5 = vmul.f32 %v4059_v4, %v2211_v30  ;;  %4060 = vpow2.f32 %v3884_v40  ;;  %vm2224_vm11 = vweird.f32 %v4059_v4  ;;  %v3417_v40 = vld [vmem:[#allocation4 + $0x6] sm:$0xff] }
 0x3cc   :  { %4062 = vrcp.f32 %v2212_v29  ;;  %v2160_v24 = vpop.f32.mrf.mxu1  ;;  %vm2225_vm13 = vmor %vm2223_vm12, %vm2224_vm11  ;;  %v2244_v14 = vand.u32 2147483648, %v2212_v29  ;;  %v2242_v51 = vand.u32 2147483647, %v2212_v29  ;;  %vm2238_vm0 = vweird.f32 %v2212_v29  ;;  %v5439_v56 = vpop.f32.mrf.mxu0 }
 0x3cd   :  { %v2220_v0 = vsub.f32 1.0, %v2219_v5  ;;  %v2175_v1 = vadd.f32 %v2160_v24, %v2099_v15  ;;  %v2025_v5 = vadd.f32 %v5373_v52, %v5366_v2  ;;  %v5453_v52 = vpop.f32.mrf.mxu2 }
 0x3ce   :  { %v2245_v61 = vor.u32 1.1754944e-38, %v2244_v14  ;;  %vm2243_vm3 = vcmp.eq.f32.partialorder %v2242_v51, 8.507059e+37 }
 0x3cf   :  { %v2221_v20 = vmul.f32 %v4059_v4, %v2220_v0  ;;  %v2186_v53 = vadd.f32 %v5371_v6, %v2175_v1  ;;  %3969 = vmatmul.msk.f32.gmra.mxu1 %vm39_vm2, %v2984_v48 }
 0x3d0   :  { %4008 = vmatmul.msk.f32.gmra.mxu0 %vm39_vm2, %v2984_v48  ;;  %v2102_v48 = vadd.f32 %v5375_v38, %v2025_v5 }
 0x3d1   :  { %v4061_v50 = vpop.eup %4060  ;;  %v2222_v23 = vadd.f32 %v4059_v4, %v2221_v20  ;;  %v3885_v32 = vmul.f32 -1.442695, %v2186_v53 }
 0x3d2   :  { %v4063_v34 = vpop.eup %4062  ;;  %v5412_v19 = vadd.f32 1.0, %v4061_v50 }
 0x3d3   :  { %v2226_v27 = vsel %vm2225_vm13, %v4059_v4, %v2222_v23  ;;  %v2234_v17 = vmul.f32 %v4063_v34, %v2212_v29  ;;  %4064 = vpow2.f32 %v3885_v32  ;;  %vm2239_vm15 = vweird.f32 %v4063_v34 }
 0x3d4   :  { %v2231_v35 = vsel %vm2228_vm14, %v2230_v55, %v2226_v27  ;;  %4066 = vrcp.f32 %v5412_v19  ;;  %v2163_v37 = vpop.f32.mrf.mxu1  ;;  %vm2240_vm1 = vmor %vm2238_vm0, %vm2239_vm15  ;;  %v2259_v60 = vand.u32 2147483648, %v5412_v19  ;;  %v2257_v29 = vand.u32 2147483647, %v5412_v19  ;;  %v5462_v27 = vpop.f32.mrf.mxu0 }
 0x3d5   :  { %2323 = vst [vmem:[%s5694_s9] sm:$0xff] %v2231_v35  ;;  %v2235_v22 = vsub.f32 1.0, %v2234_v17  ;;  %v2176_v11 = vadd.f32 %v2163_v37, %v2100_v62  ;;  %vm2253_vm5 = vweird.f32 %v5412_v19  ;;  %v5459_v62 = vpop.f32.mrf.mxu3  ;;  %v2446_v35 = vadd.f32 %v5382_v59, %v5380_v7  ;;  %v5476_v7 = vld [vmem:[%s5693_s7] ss:$0 sm:$0xff] }
 0x3d6   :  { %v2260_v20 = vor.u32 1.1754944e-38, %v2259_v60  ;;  %vm2258_vm7 = vcmp.eq.f32.partialorder %v2257_v29, 8.507059e+37 }
 0x3d7   :  { %v2236_v18 = vmul.f32 %v4063_v34, %v2235_v22  ;;  %v2187_v41 = vadd.f32 %v5371_v6, %v2176_v11  ;;  %3970 = vmatmul.msk.f32.gmra.mxu1 %vm39_vm2, %v2985_v26  ;;  %v2534_v11 = vadd.f32 %v5384_v49, %v2446_v35 }
 0x3d8   :  { %4009 = vmatmul.msk.f32.gmra.mxu0 %vm39_vm2, %v3348_v42 }
 0x3d9   :  { %v4065_v63 = vpop.eup %4064  ;;  %v2237_v12 = vadd.f32 %v4063_v34, %v2236_v18  ;;  %v3886_v31 = vmul.f32 -1.442695, %v2187_v41 }
 0x3da   :  { %v4067_v21 = vpop.eup %4066  ;;  %v5428_v30 = vadd.f32 1.0, %v4065_v63 }
 0x3db   :  { %v2241_v58 = vsel %vm2240_vm1, %v4063_v34, %v2237_v12  ;;  %v2249_v16 = vmul.f32 %v4067_v21, %v5412_v19  ;;  %4068 = vpow2.f32 %v3886_v31  ;;  %vm2254_vm4 = vweird.f32 %v4067_v21  ;;  %v3418_v34 = vld [vmem:[#allocation4 + $0xe] sm:$0xff]  ;;  %v3419_v12 = vld [vmem:[#allocation4 + $0x16] sm:$0xff]  ;;  %v5483_v31 = vpop.f32.mrf.mxu2 }
 0x3dc   :  { %v2246_v44 = vsel %vm2243_vm3, %v2245_v61, %v2241_v58  ;;  %4070 = vrcp.f32 %v5428_v30  ;;  %v2166_v39 = vpop.f32.mrf.mxu1  ;;  %vm2255_vm6 = vmor %vm2253_vm5, %vm2254_vm4  ;;  %v2274_v32 = vand.u32 2147483648, %v5428_v30  ;;  %v2272_v19 = vand.u32 2147483647, %v5428_v30 }
 0x3dd   :  { %2324 = vst [vmem:[%s5694_s9 + $0x8] sm:$0xff] %v2246_v44  ;;  %v2250_v25 = vsub.f32 1.0, %v2249_v16  ;;  %v2177_v57 = vadd.f32 %v2166_v39, %v2101_v33  ;;  %vm2268_vm9 = vweird.f32 %v5428_v30  ;;  %v5490_v16 = vpop.f32.mrf.mxu3  ;;  %v5493_v39 = vpop.f32.mrf.mxu0 }
 0x3de   :  { %v2275_v14 = vor.u32 1.1754944e-38, %v2274_v32  ;;  %vm2273_vm11 = vcmp.eq.f32.partialorder %v2272_v19, 8.507059e+37 }
 0x3df   :  { %v2251_v4 = vmul.f32 %v4067_v21, %v2250_v25  ;;  %v2188_v15 = vadd.f32 %v5371_v6, %v2177_v57  ;;  %4012 = vmatmul.msk.f32.vlgmr.msrb.gmra.mxu1 %vm39_vm2, %v3417_v40 }
 0x3e1   :  { %v4069_v24 = vpop.eup %4068  ;;  %v2252_v0 = vadd.f32 %v4067_v21, %v2251_v4  ;;  %v3887_v1 = vmul.f32 -1.442695, %v2188_v15 }
 0x3e2   :  { %v4071_v45 = vpop.eup %4070  ;;  %v5449_v10 = vadd.f32 1.0, %v4069_v24 }
 0x3e3   :  { %v2256_v53 = vsel %vm2255_vm6, %v4067_v21, %v2252_v0  ;;  %v2264_v13 = vmul.f32 %v4071_v45, %v5428_v30  ;;  %4072 = vpow2.f32 %v3887_v1  ;;  %vm2269_vm8 = vweird.f32 %v4071_v45 }
 0x3e4   :  { %v2261_v50 = vsel %vm2258_vm7, %v2260_v20, %v2256_v53  ;;  %4074 = vrcp.f32 %v5449_v10  ;;  %v2169_v2 = vpop.f32.mrf.mxu1  ;;  %vm2270_vm10 = vmor %vm2268_vm9, %vm2269_vm8  ;;  %v2289_v63 = vand.u32 2147483648, %v5449_v10  ;;  %v2287_v33 = vand.u32 2147483647, %v5449_v10  ;;  %v5506_v53 = vpop.f32.mrf.mxu2 }
 0x3e5   :  { %2325 = vst [vmem:[%s5694_s9 + $0x10] sm:$0xff] %v2261_v50  ;;  %v2265_v38 = vsub.f32 1.0, %v2264_v13  ;;  %v2178_v23 = vadd.f32 %v2169_v2, %v2102_v48  ;;  %v2449_v30 = vadd.f32 %v5399_v8, %v5392_v43  ;;  %vm2283_vm13 = vweird.f32 %v5449_v10 }
 0x3e6   :  { %v2290_v40 = vor.u32 1.1754944e-38, %v2289_v63  ;;  %vm2288_vm15 = vcmp.eq.f32.partialorder %v2287_v33, 8.507059e+37  ;;  %v2452_v20 = vadd.f32 %v5414_v47, %v5409_v28 }
 0x3e7   :  { %v2266_v55 = vmul.f32 %v4071_v45, %v2265_v38  ;;  %v2189_v17 = vadd.f32 %v5371_v6, %v2178_v23  ;;  %4013 = vmatmul.msk.f32.gmra.mxu1 %vm39_vm2, %v3418_v34  ;;  %v2535_v60 = vadd.f32 %v5401_v9, %v2449_v30  ;;  %v3420_v9 = vld [vmem:[#allocation4 + $0x1e] sm:$0xff]  ;;  %v5510_v34 = vpop.f32.mrf.mxu3 }
 0x3e8   :  { %v2536_v38 = vadd.f32 %v5416_v54, %v2452_v20 }
 0x3e9   :  { %v4073_v37 = vpop.eup %4072  ;;  %v2267_v26 = vadd.f32 %v4071_v45, %v2266_v55  ;;  %v3888_v42 = vmul.f32 -1.442695, %v2189_v17  ;;  %v5512_v17 = vpop.f32.mrf.mxu0 }
 0x3ea   :  { %v4075_v22 = vpop.eup %4074  ;;  %v5470_v18 = vadd.f32 1.0, %v4073_v37 }
 0x3eb   :  { %v2271_v51 = vsel %vm2270_vm10, %v4071_v45, %v2267_v26  ;;  %v2279_v6 = vmul.f32 %v4075_v22, %v5449_v10  ;;  %4076 = vpow2.f32 %v3888_v42  ;;  %vm2284_vm12 = vweird.f32 %v4075_v22  ;;  %v3421_v26 = vld [vmem:[#allocation4 + $0x26] sm:$0xff] }
 0x3ec   :  { %v2276_v59 = vsel %vm2273_vm11, %v2275_v14, %v2271_v51  ;;  %4078 = vrcp.f32 %v5470_v18  ;;  %v2588_v41 = vpop.f32.mrf.mxu1  ;;  %vm2285_vm14 = vmor %vm2283_vm13, %vm2284_vm12  ;;  %v2304_v0 = vand.u32 2147483648, %v5470_v18  ;;  %v2302_v45 = vand.u32 2147483647, %v5470_v18  ;;  %v5524_v63 = vpop.f32.mrf.mxu2 }
 0x3ed   :  { %2326 = vst [vmem:[%s5694_s9 + $0x18] sm:$0xff] %v2276_v59  ;;  %v2280_v49 = vsub.f32 1.0, %v2279_v6  ;;  %v2609_v46 = vadd.f32 %v2588_v41, %v2534_v11  ;;  %vm2298_vm1 = vweird.f32 %v5470_v18  ;;  %v2455_v14 = vadd.f32 %v5434_v3, %v5430_v36 }
 0x3ee   :  { %v2305_v23 = vor.u32 1.1754944e-38, %v2304_v0  ;;  %vm2303_vm4 = vcmp.eq.f32.partialorder %v2302_v45, 8.507059e+37 }
 0x3ef   :  { %v2281_v21 = vmul.f32 %v4075_v22, %v2280_v49  ;;  %v2620_v61 = vadd.f32 %v5476_v7, %v2609_v46  ;;  %4014 = vmatmul.msk.f32.gmra.mxu1 %vm39_vm2, %v3419_v12  ;;  %v2537_v41 = vadd.f32 %v5439_v56, %v2455_v14  ;;  %v5527_v3 = vpop.f32.mrf.mxu3 }
 0x3f1   :  { %v4077_v58 = vpop.eup %4076  ;;  %v2282_v44 = vadd.f32 %v4075_v22, %v2281_v21  ;;  %v3923_v25 = vmul.f32 -1.442695, %v2620_v61  ;;  %v5532_v61 = vpop.f32.mrf.mxu0 }
 0x3f2   :  { %v4079_v57 = vpop.eup %4078  ;;  %v2217_v4 = vadd.f32 1.0, %v4077_v58 }
 0x3f3   :  { %v2286_v29 = vsel %vm2285_vm14, %v4075_v22, %v2282_v44  ;;  %v2294_v15 = vmul.f32 %v4079_v57, %v5470_v18  ;;  %4080 = vpow2.f32 %v3923_v25  ;;  %vm2299_vm0 = vweird.f32 %v4079_v57  ;;  %v3422_v44 = vld [vmem:[#allocation4 + $0x2e] sm:$0xff] }
 0x3f4   :  { %v2291_v43 = vsel %vm2288_vm15, %v2290_v40, %v2286_v29  ;;  %4082 = vrcp.f32 %v2217_v4  ;;  %v2591_v8 = vpop.f32.mrf.mxu1  ;;  %vm2300_vm3 = vmor %vm2298_vm1, %vm2299_vm0  ;;  %v2319_v37 = vand.u32 2147483648, %v2217_v4  ;;  %v2317_v22 = vand.u32 2147483647, %v2217_v4 }
 0x3f5   :  { %2327 = vst [vmem:[%s5694_s9 + $0x20] sm:$0xff] %v2291_v43  ;;  %v2295_v5 = vsub.f32 1.0, %v2294_v15  ;;  %v2610_v24 = vadd.f32 %v2591_v8, %v2535_v60  ;;  %vm2313_vm6 = vweird.f32 %v2217_v4  ;;  %v2458_v40 = vadd.f32 %v5459_v62, %v5453_v52  ;;  %v5540_v52 = vpop.f32.mrf.mxu2 }
 0x3f6   :  { %v2320_v49 = vor.u32 1.1754944e-38, %v2319_v37  ;;  %vm2318_vm8 = vcmp.eq.f32.partialorder %v2317_v22, 8.507059e+37 }
 0x3f7   :  { %v2296_v1 = vmul.f32 %v4079_v57, %v2295_v5  ;;  %v2621_v48 = vadd.f32 %v5476_v7, %v2610_v24  ;;  %4015 = vmatmul.msk.f32.gmra.mxu1 %vm39_vm2, %v3420_v9  ;;  %v2538_v8 = vadd.f32 %v5462_v27, %v2458_v40 }
 0x3f9   :  { %v4081_v10 = vpop.eup %4080  ;;  %v2297_v13 = vadd.f32 %v4079_v57, %v2296_v1  ;;  %v3924_v50 = vmul.f32 -1.442695, %v2621_v48  ;;  %v3423_v48 = vld [vmem:[#allocation4 + $0x36] sm:$0x3] }
 0x3fa   :  { %v4083_v2 = vpop.eup %4082  ;;  %v2648_v32 = vadd.f32 1.0, %v4081_v10  ;;  %v5546_v10 = vpop.f32.mrf.mxu3 }
 0x3fb   :  { %v2301_v55 = vsel %vm2300_vm3, %v4079_v57, %v2297_v13  ;;  %v2309_v19 = vmul.f32 %v4083_v2, %v2217_v4  ;;  %4084 = vpow2.f32 %v3924_v50  ;;  %vm2314_vm5 = vweird.f32 %v4083_v2 }
 0x3fc   :  { %v2306_v28 = vsel %vm2303_vm4, %v2305_v23, %v2301_v55  ;;  %4086 = vrcp.f32 %v2648_v32  ;;  %v2594_v47 = vpop.f32.mrf.mxu1  ;;  %vm2315_vm7 = vmor %vm2313_vm6, %vm2314_vm5  ;;  %v2666_v58 = vand.u32 2147483648, %v2648_v32  ;;  %v2664_v57 = vand.u32 2147483647, %v2648_v32 }
 0x3fd   :  { %2328 = vst [vmem:[%s5694_s9 + $0x28] sm:$0xff] %v2306_v28  ;;  %v2310_v35 = vsub.f32 1.0, %v2309_v19  ;;  %v2611_v54 = vadd.f32 %v2594_v47, %v2536_v38  ;;  %vm2660_vm10 = vweird.f32 %v2648_v32  ;;  %v2461_v23 = vadd.f32 %v5490_v16, %v5483_v31  ;;  %v5560_v14 = vpop.f32.mrf.mxu2 }
 0x3fe   :  { %v2667_v5 = vor.u32 1.1754944e-38, %v2666_v58  ;;  %vm2665_vm12 = vcmp.eq.f32.partialorder %v2664_v57, 8.507059e+37 }
 0x3ff   :  { %v2311_v42 = vmul.f32 %v4083_v2, %v2310_v35  ;;  %v2622_v11 = vadd.f32 %v5476_v7, %v2611_v54  ;;  %4016 = vmatmul.msk.f32.gmra.mxu1 %vm39_vm2, %v3421_v26  ;;  %v2539_v47 = vadd.f32 %v5493_v39, %v2461_v23  ;;  %v2887_v23 = vadd.f32 %v5546_v10, %v5540_v52 }
 0x401   :  { %v4085_v18 = vpop.eup %4084  ;;  %v2312_v51 = vadd.f32 %v4083_v2, %v2311_v42  ;;  %v3925_v6 = vmul.f32 -1.442695, %v2622_v11 }
 0x402   :  { %v4087_v59 = vpop.eup %4086  ;;  %v5522_v46 = vadd.f32 1.0, %v4085_v18 }
 0x403   :  { %v2316_v12 = vsel %vm2315_vm7, %v4083_v2, %v2312_v51  ;;  %v2656_v21 = vmul.f32 %v4087_v59, %v2648_v32  ;;  %4088 = vpow2.f32 %v3925_v6  ;;  %vm2661_vm9 = vweird.f32 %v4087_v59  ;;  %v5549_v2 = vpop.f32.mrf.mxu0 }
 0x404   :  { %v2321_v33 = vsel %vm2318_vm8, %v2320_v49, %v2316_v12  ;;  %4090 = vrcp.f32 %v5522_v46  ;;  %v2597_v36 = vpop.f32.mrf.mxu1  ;;  %vm2662_vm11 = vmor %vm2660_vm10, %vm2661_vm9  ;;  %v2681_v20 = vand.u32 2147483648, %v5522_v46  ;;  %v2679_v50 = vand.u32 2147483647, %v5522_v46 }
 0x405   :  { %2329 = vst [vmem:[%s5694_s9 + $0x30] sm:$0x3] %v2321_v33  ;;  %v2657_v56 = vsub.f32 1.0, %v2656_v21  ;;  %v2612_v30 = vadd.f32 %v2597_v36, %v2537_v41  ;;  %vm2675_vm14 = vweird.f32 %v5522_v46  ;;  %v2464_v6 = vadd.f32 %v5510_v34, %v5506_v53  ;;  %v5565_v41 = vpop.f32.mrf.mxu3 }
 0x406   :  { %v2682_v35 = vor.u32 1.1754944e-38, %v2681_v20  ;;  %vm2680_vm0 = vcmp.eq.f32.partialorder %v2679_v50, 8.507059e+37 }
 0x407   :  { %v2658_v25 = vmul.f32 %v4087_v59, %v2657_v56  ;;  %v2623_v60 = vadd.f32 %v5476_v7, %v2612_v30  ;;  %4017 = vmatmul.msk.f32.gmra.mxu1 %vm39_vm2, %v3422_v44  ;;  %v2540_v33 = vadd.f32 %v5512_v17, %v2464_v6  ;;  %v2890_v6 = vadd.f32 %v5565_v41, %v5560_v14 }
 0x409   :  { %v4089_v4 = vpop.eup %4088  ;;  %v2659_v29 = vadd.f32 %v4087_v59, %v2658_v25  ;;  %v3926_v15 = vmul.f32 -1.442695, %v2623_v60 }
 0x40a   :  { %v4091_v43 = vpop.eup %4090  ;;  %v2650_v24 = vadd.f32 1.0, %v4089_v4  ;;  %v2884_v4 = vadd.f32 %v5527_v3, %v5524_v63  ;;  %v5586_v63 = vld [vmem:[%s5693_s7] ss:$0 sm:$0xff] }
 0x40b   :  { %v2663_v0 = vsel %vm2662_vm11, %v4087_v59, %v2659_v29  ;;  %v2671_v9 = vmul.f32 %v4091_v43, %v5522_v46  ;;  %4092 = vpow2.f32 %v3926_v15  ;;  %vm2676_vm13 = vweird.f32 %v4091_v43  ;;  %v5567_v46 = vpop.f32.mrf.mxu0  ;;  %v5576_v15 = vpop.f32.mrf.mxu2 }
 0x40c   :  { %v2668_v1 = vsel %vm2665_vm12, %v2667_v5, %v2663_v0  ;;  %4094 = vrcp.f32 %v2650_v24  ;;  %v2600_v45 = vpop.f32.mrf.mxu1  ;;  %vm2677_vm15 = vmor %vm2675_vm14, %vm2676_vm13  ;;  %v2696_v11 = vand.u32 2147483648, %v2650_v24  ;;  %v2694_v18 = vand.u32 2147483647, %v2650_v24 }
 0x40d   :  { %3930 = vst [vmem:[%s5694_s9 + $0x38] sm:$0xff] %v2668_v1  ;;  %v2672_v62 = vsub.f32 1.0, %v2671_v9  ;;  %v2613_v27 = vadd.f32 %v2600_v45, %v2538_v8  ;;  %vm2690_vm1 = vweird.f32 %v2650_v24  ;;  %v5579_v1 = vpop.f32.mrf.mxu3 }
 0x40e   :  { %v2697_v36 = vor.u32 1.1754944e-38, %v2696_v11  ;;  %vm2695_vm4 = vcmp.eq.f32.partialorder %v2694_v18, 8.507059e+37 }
 0x40f   :  { %v2673_v13 = vmul.f32 %v4091_v43, %v2672_v62  ;;  %v2624_v38 = vadd.f32 %v5476_v7, %v2613_v27  ;;  %4018 = vmatmul.msk.f32.gmra.mxu1 %vm39_vm2, %v3423_v48 }
 0x411   :  { %v4093_v32 = vpop.eup %4092  ;;  %v2674_v55 = vadd.f32 %v4091_v43, %v2673_v13  ;;  %v3927_v19 = vmul.f32 -1.442695, %v2624_v38 }
 0x412   :  { %v4095_v28 = vpop.eup %4094  ;;  %v2651_v54 = vadd.f32 1.0, %v4093_v32 }
 0x413   :  { %v2678_v37 = vsel %vm2677_vm15, %v4091_v43, %v2674_v55  ;;  %v2686_v26 = vmul.f32 %v4095_v28, %v2650_v24  ;;  %4096 = vpow2.f32 %v3927_v19  ;;  %vm2691_vm2 = vweird.f32 %v4095_v28 }
 0x414   :  { %v2683_v42 = vsel %vm2680_vm0, %v2682_v35, %v2678_v37  ;;  %4098 = vrcp.f32 %v2651_v54  ;;  %v2603_v22 = vpop.f32.mrf.mxu1  ;;  %vm2692_vm3 = vmor %vm2690_vm1, %vm2691_vm2  ;;  %v2711_v57 = vand.u32 2147483648, %v2651_v54  ;;  %v2709_v17 = vand.u32 2147483647, %v2651_v54  ;;  %v5595_v37 = vpop.f32.mrf.mxu2 }
 0x415   :  { %3931 = vst [vmem:[%s5694_s9 + $0x40] sm:$0xff] %v2683_v42  ;;  %v2687_v31 = vsub.f32 1.0, %v2686_v26  ;;  %v2614_v16 = vadd.f32 %v2603_v22, %v2539_v47  ;;  %vm2705_vm6 = vweird.f32 %v2651_v54  ;;  %v2972_v24 = vadd.f32 %v5532_v61, %v2884_v4  ;;  %v5597_v52 = vpop.f32.mrf.mxu3 }
 0x416   :  { %v2712_v0 = vor.u32 1.1754944e-38, %v2711_v57  ;;  %vm2710_vm8 = vcmp.eq.f32.partialorder %v2709_v17, 8.507059e+37  ;;  %v2973_v47 = vadd.f32 %v5549_v2, %v2887_v23  ;;  %v2893_v4 = vadd.f32 %v5579_v1, %v5576_v15 }
 0x417   :  { %v2688_v39 = vmul.f32 %v4095_v28, %v2687_v31  ;;  %v2625_v51 = vadd.f32 %v5476_v7, %v2614_v16 }
 0x419   :  { %v4097_v59 = vpop.eup %4096  ;;  %v2689_v49 = vadd.f32 %v4095_v28, %v2688_v39  ;;  %v3928_v12 = vmul.f32 -1.442695, %v2625_v51 }
 0x41a   :  { %v4099_v21 = vpop.eup %4098  ;;  %v2652_v56 = vadd.f32 1.0, %v4097_v59 }
 0x41b   :  { %v2693_v30 = vsel %vm2692_vm3, %v4095_v28, %v2689_v49  ;;  %v2701_v58 = vmul.f32 %v4099_v21, %v2651_v54  ;;  %4100 = vpow2.f32 %v3928_v12  ;;  %vm2706_vm5 = vweird.f32 %v4099_v21 }
 0x41c   :  { %v2698_v44 = vsel %vm2695_vm4, %v2697_v36, %v2693_v30  ;;  %4102 = vrcp.f32 %v2652_v56  ;;  %v2606_v53 = vpop.f32.mrf.mxu1  ;;  %vm2707_vm7 = vmor %vm2705_vm6, %vm2706_vm5  ;;  %v2726_v20 = vand.u32 2147483648, %v2652_v56  ;;  %v2724_v50 = vand.u32 2147483647, %v2652_v56 }
 0x41d   :  { %3932 = vst [vmem:[%s5694_s9 + $0x48] sm:$0xff] %v2698_v44  ;;  %v2702_v34 = vsub.f32 1.0, %v2701_v58  ;;  %v2615_v25 = vadd.f32 %v2606_v53, %v2540_v33  ;;  %vm2720_vm10 = vweird.f32 %v2652_v56  ;;  %v2974_v33 = vadd.f32 %v5567_v46, %v2890_v6  ;;  %v2898_v46 = vpop.f32.mrf.mxu3 }
 0x41e   :  { %v2727_v35 = vor.u32 1.1754944e-38, %v2726_v20  ;;  %vm2725_vm12 = vcmp.eq.f32.partialorder %v2724_v50, 8.507059e+37  ;;  %v2896_v50 = vadd.f32 %v5597_v52, %v5595_v37 }
 0x41f   :  { %v2703_v60 = vmul.f32 %v4099_v21, %v2702_v34  ;;  %v2626_v40 = vadd.f32 %v5476_v7, %v2615_v25  ;;  %v5581_v7 = vpop.f32.mrf.mxu0  ;;  %v5608_v34 = vpop.f32.mrf.mxu2 }
 0x421   :  { %v4101_v29 = vpop.eup %4100  ;;  %v2704_v43 = vadd.f32 %v4099_v21, %v2703_v60  ;;  %v3929_v8 = vmul.f32 -1.442695, %v2626_v40 }
 0x422   :  { %v4103_v5 = vpop.eup %4102  ;;  %v2653_v9 = vadd.f32 1.0, %v4101_v29 }
 0x423   :  { %v2708_v45 = vsel %vm2707_vm7, %v4099_v21, %v2704_v43  ;;  %v2716_v48 = vmul.f32 %v4103_v5, %v2652_v56  ;;  %4104 = vpow2.f32 %v3929_v8  ;;  %vm2721_vm9 = vweird.f32 %v4103_v5 }
 0x424   :  { %v2713_v3 = vsel %vm2710_vm8, %v2712_v0, %v2708_v45  ;;  %4106 = vrcp.f32 %v2653_v9  ;;  %v3026_v62 = vpop.f32.mrf.mxu1  ;;  %vm2722_vm11 = vmor %vm2720_vm10, %vm2721_vm9  ;;  %v2741_v11 = vand.u32 2147483648, %v2653_v9  ;;  %v2739_v18 = vand.u32 2147483647, %v2653_v9 }
 0x425   :  { %3933 = vst [vmem:[%s5694_s9 + $0x50] sm:$0xff] %v2713_v3  ;;  %v2717_v61 = vsub.f32 1.0, %v2716_v48  ;;  %v3047_v27 = vadd.f32 %v3026_v62, %v2972_v24  ;;  %vm2735_vm14 = vweird.f32 %v2653_v9  ;;  %v2975_v24 = vadd.f32 %v5581_v7, %v2893_v4  ;;  %v2901_v23 = vpop.f32.mrf.mxu3 }
 0x426   :  { %v2742_v36 = vor.u32 1.1754944e-38, %v2741_v11  ;;  %vm2740_vm0 = vcmp.eq.f32.partialorder %v2739_v18, 8.507059e+37 }
 0x427   :  { %v2718_v13 = vmul.f32 %v4103_v5, %v2717_v61  ;;  %v3058_v38 = vadd.f32 %v5586_v63, %v3047_v27  ;;  %v5602_v10 = vpop.f32.mrf.mxu0  ;;  %v2842_v27 = vpop.f32.mrf.mxu2 }
 0x429   :  { %v4105_v32 = vpop.eup %4104  ;;  %v2719_v55 = vadd.f32 %v4103_v5, %v2718_v13  ;;  %v3971_v19 = vmul.f32 -1.442695, %v3058_v38 }
 0x42a   :  { %v4107_v28 = vpop.eup %4106  ;;  %v2654_v54 = vadd.f32 1.0, %v4105_v32 }
 0x42b   :  { %v2723_v26 = vsel %vm2722_vm11, %v4103_v5, %v2719_v55  ;;  %v2731_v42 = vmul.f32 %v4107_v28, %v2653_v9  ;;  %4108 = vpow2.f32 %v3971_v19  ;;  %vm2736_vm13 = vweird.f32 %v4107_v28 }
 0x42c   :  { %v2728_v22 = vsel %vm2725_vm12, %v2727_v35, %v2723_v26  ;;  %4110 = vrcp.f32 %v2654_v54  ;;  %v3029_v31 = vpop.f32.mrf.mxu1  ;;  %vm2737_vm15 = vmor %vm2735_vm14, %vm2736_vm13  ;;  %v2756_v25 = vand.u32 2147483648, %v2654_v54  ;;  %v2754_v17 = vand.u32 2147483647, %v2654_v54 }
 0x42d   :  { %3934 = vst [vmem:[%s5694_s9 + $0x58] sm:$0xff] %v2728_v22  ;;  %v2732_v2 = vsub.f32 1.0, %v2731_v42  ;;  %v3048_v16 = vadd.f32 %v3029_v31, %v2973_v47  ;;  %vm2750_vm1 = vweird.f32 %v2654_v54  ;;  %v2976_v47 = vadd.f32 %v5602_v10, %v2896_v50 }
 0x42e   :  { %v2757_v0 = vor.u32 1.1754944e-38, %v2756_v25  ;;  %vm2755_vm4 = vcmp.eq.f32.partialorder %v2754_v17, 8.507059e+37 }
 0x42f   :  { %v2733_v39 = vmul.f32 %v4107_v28, %v2732_v2  ;;  %v3059_v51 = vadd.f32 %v5586_v63, %v3048_v16  ;;  %v5613_v57 = vpop.f32.mrf.mxu0 }
 0x431   :  { %v4109_v59 = vpop.eup %4108  ;;  %v2734_v49 = vadd.f32 %v4107_v28, %v2733_v39  ;;  %v3972_v12 = vmul.f32 -1.442695, %v3059_v51  ;;  %v2899_v39 = vadd.f32 %v2898_v46, %v5608_v34  ;;  %v3262_v51 = vpop.f32.mrf.mxu2 }
 0x432   :  { %v4111_v21 = vpop.eup %4110  ;;  %v3086_v56 = vadd.f32 1.0, %v4109_v59 }
 0x433   :  { %v2738_v30 = vsel %vm2737_vm15, %v4107_v28, %v2734_v49  ;;  %v2746_v58 = vmul.f32 %v4111_v21, %v2654_v54  ;;  %4112 = vpow2.f32 %v3972_v12  ;;  %vm2751_vm2 = vweird.f32 %v4111_v21 }
 0x434   :  { %v2743_v44 = vsel %vm2740_vm0, %v2742_v36, %v2738_v30  ;;  %4114 = vrcp.f32 %v3086_v56  ;;  %v3032_v53 = vpop.f32.mrf.mxu1  ;;  %vm2752_vm3 = vmor %vm2750_vm1, %vm2751_vm2  ;;  %v3104_v61 = vand.u32 2147483648, %v3086_v56  ;;  %v3102_v7 = vand.u32 2147483647, %v3086_v56  ;;  %v3321_v36 = vpop.f32.mrf.mxu3 }
 0x435   :  { %3935 = vst [vmem:[%s5694_s9 + $0x60] sm:$0xff] %v2743_v44  ;;  %v2747_v14 = vsub.f32 1.0, %v2746_v58  ;;  %v3049_v41 = vadd.f32 %v3032_v53, %v2974_v33  ;;  %vm3098_vm6 = vweird.f32 %v3086_v56  ;;  %v2977_v12 = vadd.f32 %v5613_v57, %v2899_v39 }
 0x436   :  { %v3105_v35 = vor.u32 1.1754944e-38, %v3104_v61  ;;  %vm3103_vm8 = vcmp.eq.f32.partialorder %v3102_v7, 8.507059e+37 }
 0x437   :  { %v2748_v60 = vmul.f32 %v4111_v21, %v2747_v14  ;;  %v3060_v40 = vadd.f32 %v5586_v63, %v3049_v41  ;;  %v2969_v32 = vpop.f32.mrf.mxu0 }
 0x439   :  { %v4113_v29 = vpop.eup %4112  ;;  %v2749_v43 = vadd.f32 %v4111_v21, %v2748_v60  ;;  %v3973_v8 = vmul.f32 -1.442695, %v3060_v40  ;;  %v2902_v60 = vadd.f32 %v2901_v23, %v2842_v27 }
 0x43a   :  { %v4115_v5 = vpop.eup %4114  ;;  %v3087_v9 = vadd.f32 1.0, %v4113_v29 }
 0x43b   :  { %v2753_v45 = vsel %vm2752_vm3, %v4111_v21, %v2749_v43  ;;  %v3094_v48 = vmul.f32 %v4115_v5, %v3086_v56  ;;  %4116 = vpow2.f32 %v3973_v8  ;;  %vm3099_vm5 = vweird.f32 %v4115_v5 }
 0x43c   :  { %v2758_v3 = vsel %vm2755_vm4, %v2757_v0, %v2753_v45  ;;  %4118 = vrcp.f32 %v3087_v9  ;;  %v3035_v62 = vpop.f32.mrf.mxu1  ;;  %vm3100_vm7 = vmor %vm3098_vm6, %vm3099_vm5  ;;  %v3119_v2 = vand.u32 2147483648, %v3087_v9  ;;  %v3117_v10 = vand.u32 2147483647, %v3087_v9 }
 0x43d   :  { %3936 = vst [vmem:[%s5694_s9 + $0x68] sm:$0x3] %v2758_v3  ;;  %v3095_v15 = vsub.f32 1.0, %v3094_v48  ;;  %v3050_v1 = vadd.f32 %v3035_v62, %v2975_v24  ;;  %vm3113_vm10 = vweird.f32 %v3087_v9  ;;  %v2978_v43 = vadd.f32 %v2969_v32, %v2902_v60  ;;  %v3265_v24 = vpop.f32.mrf.mxu2  ;;  %v3324_v3 = vpop.f32.mrf.mxu3 }
 0x43e   :  { %v3120_v21 = vor.u32 1.1754944e-38, %v3119_v2  ;;  %vm3118_vm12 = vcmp.eq.f32.partialorder %v3117_v10, 8.507059e+37  ;;  %v3325_v39 = vadd.f32 %v3324_v3, %v3265_v24 }
 0x43f   :  { %v3096_v20 = vmul.f32 %v4115_v5, %v3095_v15  ;;  %v3061_v13 = vadd.f32 %v5586_v63, %v3050_v1  ;;  %v3389_v56 = vpop.f32.mrf.mxu0 }
 0x441   :  { %v4117_v38 = vpop.eup %4116  ;;  %v3097_v55 = vadd.f32 %v4115_v5, %v3096_v20  ;;  %v3974_v19 = vmul.f32 -1.442695, %v3061_v13  ;;  %v3322_v13 = vadd.f32 %v3321_v36, %v3262_v51 }
 0x442   :  { %v4119_v28 = vpop.eup %4118  ;;  %v3088_v54 = vadd.f32 1.0, %v4117_v38 }
 0x443   :  { %v3101_v26 = vsel %vm3100_vm7, %v4115_v5, %v3097_v55  ;;  %v3109_v42 = vmul.f32 %v4119_v28, %v3087_v9  ;;  %4120 = vpow2.f32 %v3974_v19  ;;  %vm3114_vm9 = vweird.f32 %v4119_v28 }
 0x444   :  { %v3106_v22 = vsel %vm3103_vm8, %v3105_v35, %v3101_v26  ;;  %4122 = vrcp.f32 %v3088_v54  ;;  %v3038_v31 = vpop.f32.mrf.mxu1  ;;  %vm3115_vm11 = vmor %vm3113_vm10, %vm3114_vm9  ;;  %v3134_v41 = vand.u32 2147483648, %v3088_v54  ;;  %v3132_v46 = vand.u32 2147483647, %v3088_v54 }
 0x445   :  { %3978 = vst [vmem:[%s5694_s9 + $0x70] sm:$0xff] %v3106_v22  ;;  %v3110_v37 = vsub.f32 1.0, %v3109_v42  ;;  %v3051_v52 = vadd.f32 %v3038_v31, %v2976_v47  ;;  %vm3128_vm14 = vweird.f32 %v3088_v54  ;;  %v3410_v55 = vadd.f32 %v3389_v56, %v3322_v13  ;;  %v3268_v42 = vpop.f32.mrf.mxu2 }
 0x446   :  { %v3135_v8 = vor.u32 1.1754944e-38, %v3134_v41  ;;  %vm3133_vm0 = vcmp.eq.f32.partialorder %v3132_v46, 8.507059e+37 }
 0x447   :  { %v3111_v16 = vmul.f32 %v4119_v28, %v3110_v37  ;;  %v3062_v11 = vadd.f32 %v5586_v63, %v3051_v52  ;;  %v3392_v62 = vpop.f32.mrf.mxu0  ;;  %v3327_v52 = vpop.f32.mrf.mxu3 }
 0x448   :  { %v3328_v46 = vadd.f32 %v3327_v52, %v3268_v42 }
 0x449   :  { %v4121_v18 = vpop.eup %4120  ;;  %v3112_v6 = vadd.f32 %v4119_v28, %v3111_v16  ;;  %v3975_v59 = vmul.f32 -1.442695, %v3062_v11 }
 0x44a   :  { %v4123_v49 = vpop.eup %4122  ;;  %v3089_v33 = vadd.f32 1.0, %v4121_v18 }
 0x44b   :  { %v3116_v30 = vsel %vm3115_vm11, %v4119_v28, %v3112_v6  ;;  %v3124_v58 = vmul.f32 %v4123_v49, %v3088_v54  ;;  %4124 = vpow2.f32 %v3975_v59  ;;  %vm3129_vm13 = vweird.f32 %v4123_v49  ;;  %v5643_v54 = vld [vmem:[%s5693_s7] ss:$0 sm:$0xff] }
 0x44c   :  { %v3121_v44 = vsel %vm3118_vm12, %v3120_v21, %v3116_v30  ;;  %4126 = vrcp.f32 %v3089_v33  ;;  %v3041_v53 = vpop.f32.mrf.mxu1  ;;  %vm3130_vm15 = vmor %vm3128_vm14, %vm3129_vm13  ;;  %v3149_v61 = vand.u32 2147483648, %v3089_v33  ;;  %v3147_v20 = vand.u32 2147483647, %v3089_v33 }
 0x44d   :  { %3979 = vst [vmem:[%s5694_s9 + $0x78] sm:$0xff] %v3121_v44  ;;  %v3125_v34 = vsub.f32 1.0, %v3124_v58  ;;  %v3052_v14 = vadd.f32 %v3041_v53, %v2977_v12  ;;  %vm3143_vm1 = vweird.f32 %v3089_v33 }
 0x44e   :  { %v3150_v19 = vor.u32 1.1754944e-38, %v3149_v61  ;;  %vm3148_vm4 = vcmp.eq.f32.partialorder %v3147_v20, 8.507059e+37 }
 0x44f   :  { %v3126_v25 = vmul.f32 %v4123_v49, %v3125_v34  ;;  %v3063_v57 = vadd.f32 %v5586_v63, %v3052_v14  ;;  %v3395_v2 = vpop.f32.mrf.mxu0  ;;  %v3271_v34 = vpop.f32.mrf.mxu2 }
 0x450   :  { %v3330_v60 = vpop.f32.mrf.mxu3 }
 0x451   :  { %v4125_v17 = vpop.eup %4124  ;;  %v3127_v40 = vadd.f32 %v4123_v49, %v3126_v25  ;;  %v3976_v4 = vmul.f32 -1.442695, %v3063_v57 }
 0x452   :  { %v4127_v29 = vpop.eup %4126  ;;  %v3090_v5 = vadd.f32 1.0, %v4125_v17 }
 0x453   :  { %v3131_v0 = vsel %vm3130_vm15, %v4123_v49, %v3127_v40  ;;  %v3139_v9 = vmul.f32 %v4127_v29, %v3089_v33  ;;  %4128 = vpow2.f32 %v3976_v4  ;;  %vm3144_vm2 = vweird.f32 %v4127_v29 }
 0x454   :  { %v3136_v45 = vsel %vm3133_vm0, %v3135_v8, %v3131_v0  ;;  %4130 = vrcp.f32 %v3090_v5  ;;  %v3044_v48 = vpop.f32.mrf.mxu1  ;;  %vm3145_vm3 = vmor %vm3143_vm1, %vm3144_vm2  ;;  %v3164_v37 = vand.u32 2147483648, %v3090_v5  ;;  %v3162_v10 = vand.u32 2147483647, %v3090_v5 }
 0x455   :  { %3980 = vst [vmem:[%s5694_s9 + $0x80] sm:$0xff] %v3136_v45  ;;  %v3140_v15 = vsub.f32 1.0, %v3139_v9  ;;  %v3053_v1 = vadd.f32 %v3044_v48, %v2978_v43  ;;  %vm3158_vm6 = vweird.f32 %v3090_v5  ;;  %v3411_v49 = vadd.f32 %v3392_v62, %v3325_v39 }
 0x456   :  { %v3165_v12 = vor.u32 1.1754944e-38, %v3164_v37  ;;  %vm3163_vm8 = vcmp.eq.f32.partialorder %v3162_v10, 8.507059e+37  ;;  %v3412_v43 = vadd.f32 %v3395_v2, %v3328_v46 }
 0x457   :  { %v3141_v27 = vmul.f32 %v4127_v29, %v3140_v15  ;;  %v3064_v7 = vadd.f32 %v5586_v63, %v3053_v1  ;;  %v3398_v17 = vpop.f32.mrf.mxu0 }
 0x459   :  { %v4129_v50 = vpop.eup %4128  ;;  %v3142_v38 = vadd.f32 %v4127_v29, %v3141_v27  ;;  %v3977_v23 = vmul.f32 -1.442695, %v3064_v7  ;;  %v3331_v27 = vadd.f32 %v3330_v60, %v3271_v34  ;;  %v3274_v7 = vpop.f32.mrf.mxu2 }
 0x45a   :  { %v4131_v32 = vpop.eup %4130  ;;  %v3091_v28 = vadd.f32 1.0, %v4129_v50 }
 0x45b   :  { %v3146_v47 = vsel %vm3145_vm3, %v4127_v29, %v3142_v38  ;;  %v3154_v35 = vmul.f32 %v4131_v32, %v3090_v5  ;;  %4132 = vpow2.f32 %v3977_v23  ;;  %vm3159_vm5 = vweird.f32 %v4131_v32 }
 0x45c   :  { %v3151_v63 = vsel %vm3148_vm4, %v3150_v19, %v3146_v47  ;;  %4134 = vrcp.f32 %v3091_v28  ;;  %v3464_v26 = vpop.f32.mrf.mxu1  ;;  %vm3160_vm7 = vmor %vm3158_vm6, %vm3159_vm5  ;;  %v3179_v53 = vand.u32 2147483648, %v3091_v28  ;;  %v3177_v41 = vand.u32 2147483647, %v3091_v28  ;;  %v3333_v19 = vpop.f32.mrf.mxu3 }
 0x45d   :  { %3981 = vst [vmem:[%s5694_s9 + $0x88] sm:$0xff] %v3151_v63  ;;  %v3155_v22 = vsub.f32 1.0, %v3154_v35  ;;  %v3485_v31 = vadd.f32 %v3464_v26, %v3410_v55  ;;  %vm3173_vm10 = vweird.f32 %v3091_v28  ;;  %v3413_v23 = vadd.f32 %v3398_v17, %v3331_v27 }
 0x45e   :  { %v3180_v8 = vor.u32 1.1754944e-38, %v3179_v53  ;;  %vm3178_vm12 = vcmp.eq.f32.partialorder %v3177_v41, 8.507059e+37 }
 0x45f   :  { %v3156_v16 = vmul.f32 %v4131_v32, %v3155_v22  ;;  %v3496_v11 = vadd.f32 %v5643_v54, %v3485_v31 }
 0x461   :  { %v4133_v18 = vpop.eup %4132  ;;  %v3157_v51 = vadd.f32 %v4131_v32, %v3156_v16  ;;  %v4019_v6 = vmul.f32 -1.442695, %v3496_v11  ;;  %v3334_v16 = vadd.f32 %v3333_v19, %v3274_v7 }
 0x462   :  { %v4135_v59 = vpop.eup %4134  ;;  %v3092_v21 = vadd.f32 1.0, %v4133_v18 }
 0x463   :  { %v3161_v33 = vsel %vm3160_vm7, %v4131_v32, %v3157_v51  ;;  %v3169_v36 = vmul.f32 %v4135_v59, %v3091_v28  ;;  %4136 = vpow2.f32 %v4019_v6  ;;  %vm3174_vm9 = vweird.f32 %v4135_v59  ;;  %v3401_v28 = vpop.f32.mrf.mxu0 }
 0x464   :  { %v3166_v56 = vsel %vm3163_vm8, %v3165_v12, %v3161_v33  ;;  %4138 = vrcp.f32 %v3092_v21  ;;  %v3467_v30 = vpop.f32.mrf.mxu1  ;;  %vm3175_vm11 = vmor %vm3173_vm10, %vm3174_vm9  ;;  %v3194_v62 = vand.u32 2147483648, %v3092_v21  ;;  %v3192_v1 = vand.u32 2147483647, %v3092_v21 }
 0x465   :  { %3982 = vst [vmem:[%s5694_s9 + $0x90] sm:$0xff] %v3166_v56  ;;  %v3170_v58 = vsub.f32 1.0, %v3169_v36  ;;  %v3486_v44 = vadd.f32 %v3467_v30, %v3411_v49  ;;  %vm3188_vm14 = vweird.f32 %v3092_v21  ;;  %v3414_v51 = vadd.f32 %v3401_v28, %v3334_v16  ;;  %v3277_v49 = vpop.f32.mrf.mxu2  ;;  %v3336_v56 = vpop.f32.mrf.mxu3 }
 0x466   :  { %v3195_v32 = vor.u32 1.1754944e-38, %v3194_v62  ;;  %vm3193_vm0 = vcmp.eq.f32.partialorder %v3192_v1, 8.507059e+37 }
 0x467   :  { %v3171_v14 = vmul.f32 %v4135_v59, %v3170_v58  ;;  %v3497_v25 = vadd.f32 %v5643_v54, %v3486_v44 }
 0x469   :  { %v4137_v57 = vpop.eup %4136  ;;  %v3172_v40 = vadd.f32 %v4135_v59, %v3171_v14  ;;  %v4020_v4 = vmul.f32 -1.442695, %v3497_v25  ;;  %v3337_v25 = vadd.f32 %v3336_v56, %v3277_v49 }
 0x46a   :  { %v4139_v29 = vpop.eup %4138  ;;  %v3524_v5 = vadd.f32 1.0, %v4137_v57 }
 0x46b   :  { %v3176_v24 = vsel %vm3175_vm11, %v4135_v59, %v3172_v40  ;;  %v3184_v0 = vmul.f32 %v4139_v29, %v3092_v21  ;;  %4140 = vpow2.f32 %v4020_v4  ;;  %vm3189_vm13 = vweird.f32 %v4139_v29  ;;  %v3404_v30 = vpop.f32.mrf.mxu0 }
 0x46c   :  { %v3181_v9 = vsel %vm3178_vm12, %v3180_v8, %v3176_v24  ;;  %4142 = vrcp.f32 %v3524_v5  ;;  %v3470_v45 = vpop.f32.mrf.mxu1  ;;  %vm3190_vm15 = vmor %vm3188_vm14, %vm3189_vm13  ;;  %v3542_v31 = vand.u32 2147483648, %v3524_v5  ;;  %v3540_v52 = vand.u32 2147483647, %v3524_v5 }
 0x46d   :  { %3983 = vst [vmem:[%s5694_s9 + $0x98] sm:$0xff] %v3181_v9  ;;  %v3185_v48 = vsub.f32 1.0, %v3184_v0  ;;  %v3487_v3 = vadd.f32 %v3470_v45, %v3412_v43  ;;  %vm3536_vm1 = vweird.f32 %v3524_v5  ;;  %v3415_v40 = vadd.f32 %v3404_v30, %v3337_v25  ;;  %v3280_v0 = vpop.f32.mrf.mxu2 }
 0x46e   :  { %v3543_v6 = vor.u32 1.1754944e-38, %v3542_v31  ;;  %vm3541_vm4 = vcmp.eq.f32.partialorder %v3540_v52, 8.507059e+37 }
 0x46f   :  { %v3186_v15 = vmul.f32 %v4139_v29, %v3185_v48  ;;  %v3498_v61 = vadd.f32 %v5643_v54, %v3487_v3  ;;  %v3339_v3 = vpop.f32.mrf.mxu3 }
 0x470   :  { %v3340_v27 = vadd.f32 %v3339_v3, %v3280_v0 }
 0x471   :  { %v4141_v20 = vpop.eup %4140  ;;  %v3187_v13 = vadd.f32 %v4139_v29, %v3186_v15  ;;  %v4021_v50 = vmul.f32 -1.442695, %v3498_v61 }
 0x472   :  { %v4143_v38 = vpop.eup %4142  ;;  %v3525_v55 = vadd.f32 1.0, %v4141_v20 }
 0x473   :  { %v3191_v47 = vsel %vm3190_vm15, %v4139_v29, %v3187_v13  ;;  %v3532_v35 = vmul.f32 %v4143_v38, %v3524_v5  ;;  %4144 = vpow2.f32 %v4021_v50  ;;  %vm3537_vm2 = vweird.f32 %v4143_v38  ;;  %v3407_v62 = vpop.f32.mrf.mxu0 }
 0x474   :  { %v3196_v63 = vsel %vm3193_vm0, %v3195_v32, %v3191_v47  ;;  %4146 = vrcp.f32 %v3525_v55  ;;  %v3473_v26 = vpop.f32.mrf.mxu1  ;;  %vm3538_vm3 = vmor %vm3536_vm1, %vm3537_vm2  ;;  %v3557_v53 = vand.u32 2147483648, %v3525_v55  ;;  %v3555_v14 = vand.u32 2147483647, %v3525_v55 }
 0x475   :  { %3984 = vst [vmem:[%s5694_s9 + $0xa0] sm:$0x3] %v3196_v63  ;;  %v3533_v42 = vsub.f32 1.0, %v3532_v35  ;;  %v3488_v22 = vadd.f32 %v3473_v26, %v3413_v23  ;;  %vm3551_vm6 = vweird.f32 %v3525_v55 }
 0x476   :  { %v3558_v4 = vor.u32 1.1754944e-38, %v3557_v53  ;;  %vm3556_vm8 = vcmp.eq.f32.partialorder %v3555_v14, 8.507059e+37 }
 0x477   :  { %v3534_v37 = vmul.f32 %v4143_v38, %v3533_v42  ;;  %v3499_v2 = vadd.f32 %v5643_v54, %v3488_v22 }
 0x479   :  { %v4145_v10 = vpop.eup %4144  ;;  %v3535_v11 = vadd.f32 %v4143_v38, %v3534_v37  ;;  %v4022_v39 = vmul.f32 -1.442695, %v3499_v2 }
 0x47a   :  { %v4147_v18 = vpop.eup %4146  ;;  %v3526_v59 = vadd.f32 1.0, %v4145_v10 }
 0x47b   :  { %v3539_v12 = vsel %vm3538_vm3, %v4143_v38, %v3535_v11  ;;  %v3547_v21 = vmul.f32 %v4147_v18, %v3525_v55  ;;  %4148 = vpow2.f32 %v4022_v39  ;;  %vm3552_vm5 = vweird.f32 %v4147_v18 }
 0x47c   :  { %v3544_v33 = vsel %vm3541_vm4, %v3543_v6, %v3539_v12  ;;  %4150 = vrcp.f32 %v3526_v59  ;;  %v3476_v36 = vpop.f32.mrf.mxu1  ;;  %vm3553_vm7 = vmor %vm3551_vm6, %vm3552_vm5  ;;  %v3572_v48 = vand.u32 2147483648, %v3526_v59  ;;  %v3570_v1 = vand.u32 2147483647, %v3526_v59 }
 0x47d   :  { %4026 = vst [vmem:[%s5694_s9 + $0xa8] sm:$0xff] %v3544_v33  ;;  %v3548_v58 = vsub.f32 1.0, %v3547_v21  ;;  %v3489_v44 = vadd.f32 %v3476_v36, %v3414_v51  ;;  %vm3566_vm10 = vweird.f32 %v3526_v59  ;;  %v3416_v38 = vadd.f32 %v3407_v62, %v3340_v27 }
 0x47e   :  { %v3573_v23 = vor.u32 1.1754944e-38, %v3572_v48  ;;  %vm3571_vm12 = vcmp.eq.f32.partialorder %v3570_v1, 8.507059e+37 }
 0x47f   :  { %v3549_v34 = vmul.f32 %v4147_v18, %v3548_v58  ;;  %v3500_v41 = vadd.f32 %v5643_v54, %v3489_v44 }
 0x481   :  { %v4149_v46 = vpop.eup %4148  ;;  %v3550_v57 = vadd.f32 %v4147_v18, %v3549_v34  ;;  %v4023_v60 = vmul.f32 -1.442695, %v3500_v41 }
 0x482   :  { %v4151_v17 = vpop.eup %4150  ;;  %v3527_v29 = vadd.f32 1.0, %v4149_v46 }
 0x483   :  { %v3554_v43 = vsel %vm3553_vm7, %v4147_v18, %v3550_v57  ;;  %v3562_v8 = vmul.f32 %v4151_v17, %v3526_v59  ;;  %4152 = vpow2.f32 %v4023_v60  ;;  %vm3567_vm9 = vweird.f32 %v4151_v17 }
 0x484   :  { %v3559_v5 = vsel %vm3556_vm8, %v3558_v4, %v3554_v43  ;;  %4154 = vrcp.f32 %v3527_v29  ;;  %v3479_v24 = vpop.f32.mrf.mxu1  ;;  %vm3568_vm11 = vmor %vm3566_vm10, %vm3567_vm9  ;;  %v3587_v26 = vand.u32 2147483648, %v3527_v29  ;;  %v3585_v22 = vand.u32 2147483647, %v3527_v29 }
 0x485   :  { %4027 = vst [vmem:[%s5694_s9 + $0xb0] sm:$0xff] %v3559_v5  ;;  %v3563_v9 = vsub.f32 1.0, %v3562_v8  ;;  %v3490_v45 = vadd.f32 %v3479_v24, %v3415_v40  ;;  %vm3581_vm14 = vweird.f32 %v3527_v29 }
 0x486   :  { %v3588_v10 = vor.u32 1.1754944e-38, %v3587_v26  ;;  %vm3586_vm0 = vcmp.eq.f32.partialorder %v3585_v22, 8.507059e+37 }
 0x487   :  { %v3564_v15 = vmul.f32 %v4151_v17, %v3563_v9  ;;  %v3501_v61 = vadd.f32 %v5643_v54, %v3490_v45 }
 0x489   :  { %v4153_v20 = vpop.eup %4152  ;;  %v3565_v7 = vadd.f32 %v4151_v17, %v3564_v15  ;;  %v4024_v13 = vmul.f32 -1.442695, %v3501_v61 }
 0x48a   :  { %v4155_v50 = vpop.eup %4154  ;;  %v3528_v32 = vadd.f32 1.0, %v4153_v20 }
 0x48b   :  { %v3569_v55 = vsel %vm3568_vm11, %v4151_v17, %v3565_v7  ;;  %v3577_v19 = vmul.f32 %v4155_v50, %v3527_v29  ;;  %4156 = vpow2.f32 %v4024_v13  ;;  %vm3582_vm13 = vweird.f32 %v4155_v50 }
 0x48c   :  { %v3574_v28 = vsel %vm3571_vm12, %v3573_v23, %v3569_v55  ;;  %4158 = vrcp.f32 %v3528_v32  ;;  %v3482_v47 = vpop.f32.mrf.mxu1  ;;  %vm3583_vm15 = vmor %vm3581_vm14, %vm3582_vm13  ;;  %v3600_v49 = vand.u32 2147483647, %v3528_v32  ;;  %vm3596_vm1 = vweird.f32 %v3528_v32 }
 0x48d   :  { %4028 = vst [vmem:[%s5694_s9 + $0xb8] sm:$0xff] %v3574_v28  ;;  %v3578_v35 = vsub.f32 1.0, %v3577_v19  ;;  %v3491_v63 = vadd.f32 %v3482_v47, %v3416_v38 }
 0x48e   :  { %vm3601_vm4 = vcmp.eq.f32.partialorder %v3600_v49, 8.507059e+37 }
 0x48f   :  { %v3579_v42 = vmul.f32 %v4155_v50, %v3578_v35  ;;  %v3502_v31 = vadd.f32 %v5643_v54, %v3491_v63  ;;  %v3602_v54 = vand.u32 2147483648, %v3528_v32 }
 0x491   :  { %v4157_v37 = vpop.eup %4156  ;;  %v3580_v52 = vadd.f32 %v4155_v50, %v3579_v42  ;;  %v4025_v2 = vmul.f32 -1.442695, %v3502_v31  ;;  %v3603_v36 = vor.u32 1.1754944e-38, %v3602_v54 }
 0x492   :  { %v4159_v16 = vpop.eup %4158  ;;  %v3529_v11 = vadd.f32 1.0, %v4157_v37 }
 0x493   :  { %v3584_v39 = vsel %vm3583_vm15, %v4155_v50, %v3580_v52  ;;  %v3592_v18 = vmul.f32 %v4159_v16, %v3528_v32  ;;  %4160 = vpow2.f32 %v4025_v2  ;;  %vm3597_vm2 = vweird.f32 %v4159_v16 }
 0x494   :  { %v3589_v51 = vsel %vm3586_vm0, %v3588_v10, %v3584_v39  ;;  %4162 = vrcp.f32 %v3529_v11  ;;  %vm3598_vm3 = vmor %vm3596_vm1, %vm3597_vm2  ;;  %v3617_v34 = vand.u32 2147483648, %v3529_v11  ;;  %v3615_v41 = vand.u32 2147483647, %v3529_v11 }
 0x495   :  { %4029 = vst [vmem:[%s5694_s9 + $0xc0] sm:$0xff] %v3589_v51  ;;  %v3593_v6 = vsub.f32 1.0, %v3592_v18  ;;  %vm3611_vm6 = vweird.f32 %v3529_v11 }
 0x496   :  { %v3618_v57 = vor.u32 1.1754944e-38, %v3617_v34  ;;  %vm3616_vm8 = vcmp.eq.f32.partialorder %v3615_v41, 8.507059e+37 }
 0x497   :  { %v3594_v59 = vmul.f32 %v4159_v16, %v3593_v6 }
 0x499   :  { %v4161_v12 = vpop.eup %4160  ;;  %v3595_v21 = vadd.f32 %v4159_v16, %v3594_v59 }
 0x49a   :  { %v4163_v33 = vpop.eup %4162  ;;  %v3530_v56 = vadd.f32 1.0, %v4161_v12 }
 0x49b   :  { %v3599_v30 = vsel %vm3598_vm3, %v4159_v16, %v3595_v21  ;;  %v3607_v58 = vmul.f32 %v4163_v33, %v3529_v11  ;;  %vm3612_vm5 = vweird.f32 %v4163_v33 }
 0x49c   :  { %v3604_v44 = vsel %vm3601_vm4, %v3603_v36, %v3599_v30  ;;  %4164 = vrcp.f32 %v3530_v56  ;;  %vm3613_vm7 = vmor %vm3611_vm6, %vm3612_vm5  ;;  %v3632_v29 = vand.u32 2147483648, %v3530_v56  ;;  %v3630_v8 = vand.u32 2147483647, %v3530_v56 }
 0x49d   :  { %4030 = vst [vmem:[%s5694_s9 + $0xc8] sm:$0xff] %v3604_v44  ;;  %v3608_v53 = vsub.f32 1.0, %v3607_v58  ;;  %vm3626_vm10 = vweird.f32 %v3530_v56 }
 0x49e   :  { %v3633_v24 = vor.u32 1.1754944e-38, %v3632_v29  ;;  %vm3631_vm12 = vcmp.eq.f32.partialorder %v3630_v8, 8.507059e+37 }
 0x49f   :  { %v3609_v14 = vmul.f32 %v4163_v33, %v3608_v53 }
 0x4a1   :  { %v3610_v25 = vadd.f32 %v4163_v33, %v3609_v14 }
 0x4a2   :  { %v4165_v46 = vpop.eup %4164 }
 0x4a3   :  { %v3614_v60 = vsel %vm3613_vm7, %v4163_v33, %v3610_v25  ;;  %v3622_v17 = vmul.f32 %v4165_v46, %v3530_v56  ;;  %vm3627_vm9 = vweird.f32 %v4165_v46 }
 0x4a4   :  { %v3619_v40 = vsel %vm3616_vm8, %v3618_v57, %v3614_v60  ;;  %vm3628_vm11 = vmor %vm3626_vm10, %vm3627_vm9 }
 0x4a5   :  { %4031 = vst [vmem:[%s5694_s9 + $0xd0] sm:$0xff] %v3619_v40  ;;  %v3623_v4 = vsub.f32 1.0, %v3622_v17 }
 0x4a7   :  { %v3624_v43 = vmul.f32 %v4165_v46, %v3623_v4 }
 0x4a9   :  { %v3625_v5 = vadd.f32 %v4165_v46, %v3624_v43 }
 0x4ab   :  { %v3629_v0 = vsel %vm3628_vm11, %v4165_v46, %v3625_v5 }
 0x4ac   :  { %v3634_v9 = vsel %vm3631_vm12, %v3633_v24, %v3629_v0 }
 0x4ad   :  { %4032 = vst [vmem:[%s5694_s9 + $0xd8] sm:$0x3] %v3634_v9 }

</bundles_post_ra>
